<compile_context>
chip_gen: v7x
topology: tpu7x:2x2x1
jax: 0.10.0
libtpu: 0.0.40
codegen_flags: <defaults>
</compile_context>

<pallas_src>
import jax
import jax.numpy as jnp
from jax.experimental import pallas as pl
from jax.experimental.pallas import tpu as pltpu

# Small shapes consistent with the module's constructor arguments.
NODE_IN = 5      # node_input_dim
EDGE_IN = 1      # edge_input_dim
HIDDEN = 32      # hidden_dim (kept small so edge-MLP weights stay modest)
CLS_HID = 32     # classifier hidden width (fixed to 32 in the module)

N_NODES = 12
N_EDGES = 16
NUM_GRAPHS = 2
BN_EPS = 1e-5

WE2B_K = HIDDEN * HIDDEN           # 1024 (contraction dim of edge-MLP2 layer 2)
N_CHUNKS = 4
CHUNK_K = WE2B_K // N_CHUNKS       # 256-row bf16 slices streamed from HBM


def _make_kernel(d_in, hidden):
    out_ch = hidden

    def kernel(x_ref, ea_ref, g_ref, s_ref, p_ref,
               we1a_ref, be1a_ref, we1b_ref, be1b_ref,
               wr1_ref, bcv1_ref, g1_ref, b1_ref,
               we2a_ref, be2a_ref, we2b_hbm_ref, be2b_ref,
               wr2_ref, bcv2_ref, g2_ref, b2_ref,
               wc1_ref, bc1_ref, wc2_ref, bc2_ref,
               out_ref,
               we2b_buf, dma_sem):
        f32 = jnp.float32
        bf16 = jnp.bfloat16

        def chunk_copy(c, slot):
            # [CHUNK_K, WE2B_K] bf16 slice of we2b, HBM -> VMEM double buffer.
            return pltpu.make_async_copy(
                we2b_hbm_ref.at[pl.ds(c * CHUNK_K, CHUNK_K), :],
                we2b_buf.at[slot],
                dma_sem.at[slot])

        # Start streaming the first we2b chunk immediately; it is consumed only
        # after edge-MLP1 / conv1 / norm1 / relu, so this DMA is hidden.
        chunk_copy(0, 0).start()

        x = x_ref[...]        # [N, d_in]
        ea = ea_ref[...]      # [E, 1]
        G = g_ref[...]        # [E, N]   one-hot(source)            -> gather x[src]
        S = s_ref[...]        # [N, E]   (1/in_degree) one-hot(dst) -> scatter-mean
        P = p_ref[...]        # [B, N]   (1/graph_size) one-hot     -> global_mean_pool

        def relu(v):
            return jnp.maximum(v, 0.0)

        def nnconv(h_in, w_edge, w_root, bias, in_ch):
            # per-edge source features: one dense one-hot gather matmul
            x_src = jnp.dot(G, h_in, preferred_element_type=f32)       # [E, in_ch]
            # per-edge messages on the VPU (broadcast FMAs), then a SINGLE
            # scatter-mean matmul on the MXU (replaces in_ch serialized,
            # heavily padded M=N K=E matmuls).
            msg = x_src[:, 0:1] * w_edge[:, 0:out_ch]                  # [E, out]
            for i in range(1, in_ch):                                  # static unroll
                msg = msg + x_src[:, i:i + 1] * w_edge[:, i * out_ch:(i + 1) * out_ch]
            agg = jnp.dot(S, msg, preferred_element_type=f32)          # [N, out]
            root = jnp.dot(h_in, w_root, preferred_element_type=f32)   # [N, out]
            return agg + root + bias

        def batchnorm(h, gamma, beta):
            mu = jnp.mean(h, axis=0, keepdims=True)
            var = jnp.mean(jnp.square(h - mu), axis=0, keepdims=True)
            return (h - mu) * jax.lax.rsqrt(var + BN_EPS) * gamma + beta

        # ---- edge MLP 1: Linear(1, .) -> ReLU -> Linear ----
        h1 = relu(ea * we1a_ref[...] + be1a_ref[...])                  # [E, d_in*H] f32
        w_e1 = jnp.dot(h1.astype(bf16), we1b_ref[...],                 # bf16 x bf16 MXU
                       preferred_element_type=f32) + be1b_ref[...]     # [E, d_in*H] f32

        # ---- conv1 -> norm1 -> relu (overlapped with we2b chunk-0 DMA) ----
        h = nnconv(x, w_e1, wr1_ref[...], bcv1_ref[...], d_in)
        h = relu(batchnorm(h, g1_ref[...], b1_ref[...]))

        # ---- edge MLP 2: layer 1 on the VPU; layer 2 K-chunked so each MXU
        #      partial product overlaps the DMA of the next we2b chunk ----
        h2 = relu(ea * we2a_ref[...] + be2a_ref[...]).astype(bf16)     # [E, K] bf16
        w_e2 = None
        for c in range(N_CHUNKS):                                      # static unroll
            slot = c & 1
            chunk_copy(c, slot).wait()
            if c + 1 < N_CHUNKS:
                chunk_copy(c + 1, 1 - slot).start()
            part = jnp.dot(h2[:, c * CHUNK_K:(c + 1) * CHUNK_K],
                           we2b_buf[slot],
                           preferred_element_type=f32)                 # [E, H*H] f32
            w_e2 = part if w_e2 is None else w_e2 + part
        w_e2 = w_e2 + be2b_ref[...]

        # ---- conv2 -> norm2 -> relu ----
        h = nnconv(h, w_e2, wr2_ref[...], bcv2_ref[...], hidden)
        h = relu(batchnorm(h, g2_ref[...], b2_ref[...]))

        # ---- global_mean_pool + classifier ----
        pooled = jnp.dot(P, h, preferred_element_type=f32)             # [B, hidden]
        c1 = relu(jnp.dot(pooled, wc1_ref[...], preferred_element_type=f32)
                  + bc1_ref[...])
        # TODO(synk): Dropout(0.2) applied as identity (eval-mode); training RNG mask not reproduced.
        out_ref[...] = jnp.dot(c1, wc2_ref[...], preferred_element_type=f32) + bc2_ref[...]

    return kernel


def init_params(key):
    def dense(k, fan_in, fan_out):
        k1, k2 = jax.random.split(k)
        lim = 1.0 / jnp.sqrt(jnp.float32(fan_in))
        w = jax.random.uniform(k1, (fan_in, fan_out), jnp.float32, -lim, lim)
        b = jax.random.uniform(k2, (1, fan_out), jnp.float32, -lim, lim)
        return w, b

    keys = jax.random.split(key, 10)
    # edge_mlp1: Linear(1, H*node_in) -> ReLU -> Linear(H*node_in, H*node_in)
    we1a, be1a = dense(keys[0], EDGE_IN, HIDDEN * NODE_IN)
    we1b, be1b = dense(keys[1], HIDDEN * NODE_IN, HIDDEN * NODE_IN)
    # conv1 root weight + bias
    wr1, bcv1 = dense(keys[2], NODE_IN, HIDDEN)
    # norm1 affine (PyTorch default init: weight=1, bias=0)
    g1 = jnp.ones((1, HIDDEN), jnp.float32)
    b1 = jnp.zeros((1, HIDDEN), jnp.float32)
    # edge_mlp2: Linear(1, H*H) -> ReLU -> Linear(H*H, H*H)
    we2a, be2a = dense(keys[3], EDGE_IN, HIDDEN * HIDDEN)
    we2b, be2b = dense(keys[4], HIDDEN * HIDDEN, HIDDEN * HIDDEN)
    # conv2 root weight + bias
    wr2, bcv2 = dense(keys[5], HIDDEN, HIDDEN)
    g2 = jnp.ones((1, HIDDEN), jnp.float32)
    b2 = jnp.zeros((1, HIDDEN), jnp.float32)
    # classifier: Linear(H, 32) -> ReLU -> Dropout -> Linear(32, 1)
    wc1, bc1 = dense(keys[6], HIDDEN, CLS_HID)
    wc2, bc2 = dense(keys[7], CLS_HID, 1)
    return [we1a, be1a, we1b, be1b, wr1, bcv1, g1, b1,
            we2a, be2a, we2b, be2b, wr2, bcv2, g2, b2,
            wc1, bc1, wc2, bc2]


def gnn_forward(params, x, edge_index, edge_attr, batch, num_graphs):
    n = x.shape[0]
    src, dst = edge_index[0], edge_index[1]
    # dense gather / scatter-mean / pool-mean operators (glue, plain JAX)
    G = jax.nn.one_hot(src, n, dtype=jnp.float32)                       # [E, N]
    T = jax.nn.one_hot(dst, n, dtype=jnp.float32).T                     # [N, E]
    S = T / jnp.maximum(T.sum(axis=1, keepdims=True), 1.0)              # scatter-mean
    Pm = jax.nn.one_hot(batch, num_graphs, dtype=jnp.float32).T         # [B, N]
    Pm = Pm / jnp.maximum(Pm.sum(axis=1, keepdims=True), 1.0)           # global_mean_pool

    # Cast the two large edge-MLP second-layer weights to bf16 (halves the
    # dominant HBM traffic); everything else stays f32 — no bf16 VPU on v5e.
    kparams = list(params)
    kparams[2] = kparams[2].astype(jnp.bfloat16)    # we1b  [160, 160]
    kparams[10] = kparams[10].astype(jnp.bfloat16)  # we2b  [1024, 1024]

    kernel = _make_kernel(x.shape[1], HIDDEN)
    inputs = [x, edge_attr, G, S, Pm, *kparams]

    in_specs = [pl.BlockSpec(memory_space=pltpu.MemorySpace.VMEM)] * len(inputs)
    # we2b stays in HBM; it is streamed in K-chunks overlapping its own matmul.
    WE2B_IDX = 5 + 10
    in_specs[WE2B_IDX] = pl.BlockSpec(memory_space=pl.ANY)

    return pl.pallas_call(
        kernel,
        out_shape=jax.ShapeDtypeStruct((num_graphs, 1), jnp.float32),
        in_specs=in_specs,
        out_specs=pl.BlockSpec(memory_space=pltpu.MemorySpace.VMEM),
        scratch_shapes=[
            pltpu.VMEM((2, CHUNK_K, WE2B_K), jnp.bfloat16),  # we2b double buffer (1 MiB)
            pltpu.SemaphoreType.DMA((2,)),
        ],
        compiler_params=pltpu.CompilerParams(
            vmem_limit_bytes=16 * 1024 * 1024),
    )(*inputs)


def gnn_reference(params, x, edge_index, edge_attr, batch, num_graphs):
    (we1a, be1a, we1b, be1b, wr1, bcv1, g1, b1,
     we2a, be2a, we2b, be2b, wr2, bcv2, g2, b2,
     wc1, bc1, wc2, bc2) = params
    src, dst = edge_index[0], edge_index[1]
    n = x.shape[0]
    e = edge_attr.shape[0]

    def edge_mlp(wa, ba, wb, bb):
        return jax.nn.relu(edge_attr @ wa + ba) @ wb + bb

    def nnconv(h, w_edge, in_ch, out_ch, wr, bias):
        W = w_edge.reshape(e, in_ch, out_ch)
        msg = jnp.einsum('ei,eio->eo', h[src], W)
        agg_sum = jnp.zeros((n, out_ch), jnp.float32).at[dst].add(msg)
        deg = jnp.zeros((n,), jnp.float32).at[dst].add(1.0)
        agg = agg_sum / jnp.maximum(deg, 1.0)[:, None]
        return agg + h @ wr + bias

    def bn(h, gamma, beta):
        mu = h.mean(0, keepdims=True)
        var = ((h - mu) ** 2).mean(0, keepdims=True)
        return (h - mu) / jnp.sqrt(var + BN_EPS) * gamma + beta

    h = jax.nn.relu(bn(nnconv(x, edge_mlp(we1a, be1a, we1b, be1b), NODE_IN, HIDDEN, wr1, bcv1), g1, b1))
    h = jax.nn.relu(bn(nnconv(h, edge_mlp(we2a, be2a, we2b, be2b), HIDDEN, HIDDEN, wr2, bcv2), g2, b2))
    Pm = jax.nn.one_hot(batch, num_graphs, dtype=jnp.float32).T
    pooled = (Pm @ h) / jnp.maximum(Pm.sum(1, keepdims=True), 1.0)
    c = jax.nn.relu(pooled @ wc1 + bc1)
    return c @ wc2 + bc2


if __name__ == "__main__":
    key = jax.random.PRNGKey(0)
    k_x, k_src, k_dst, k_ea, k_p = jax.random.split(key, 5)

    x = jax.random.normal(k_x, (N_NODES, NODE_IN), jnp.float32)
    # edges stay within each graph (first 6 nodes -> graph 0, last 6 -> graph 1)
    src0 = jax.random.randint(k_src, (N_EDGES // 2,), 0, N_NODES // 2)
    dst0 = jax.random.randint(k_dst, (N_EDGES // 2,), 0, N_NODES // 2)
    src1 = jax.random.randint(jax.random.fold_in(k_src, 1), (N_EDGES // 2,),
                              N_NODES // 2, N_NODES)
    dst1 = jax.random.randint(jax.random.fold_in(k_dst, 1), (N_EDGES // 2,),
                              N_NODES // 2, N_NODES)
    edge_index = jnp.stack([jnp.concatenate([src0, src1]),
                            jnp.concatenate([dst0, dst1])], axis=0).astype(jnp.int32)
    edge_attr = jax.random.normal(k_ea, (N_EDGES, EDGE_IN), jnp.float32)
    batch = jnp.concatenate([jnp.zeros((N_NODES // 2,), jnp.int32),
                             jnp.ones((N_NODES // 2,), jnp.int32)])

    params = init_params(k_p)

    out = gnn_forward(params, x, edge_index, edge_attr, batch, NUM_GRAPHS)
    out = jax.block_until_ready(out)

    ref = gnn_reference(params, x, edge_index, edge_attr, batch, NUM_GRAPHS)
    # Tolerance widened vs. pure f32: the two edge-MLP second-layer weights
    # (and the corresponding matmul LHS) are bf16 on the kernel path.
    if not jnp.allclose(out, ref, atol=2e-2, rtol=2e-2):
        raise AssertionError(f"Pallas kernel mismatch: {out} vs {ref}")

    print("KERNEL_OK")
</pallas_src>

<mosaic_0001>
module attributes {stable_mosaic.version = 11 : i64} {
  func.func @kernel(%arg0: memref<12x5xf32, #tpu.memory_space<vmem>>, %arg1: memref<16x1xf32, #tpu.memory_space<vmem>>, %arg2: memref<16x12xf32, #tpu.memory_space<vmem>>, %arg3: memref<12x16xf32, #tpu.memory_space<vmem>>, %arg4: memref<2x12xf32, #tpu.memory_space<vmem>>, %arg5: memref<1x160xf32, #tpu.memory_space<vmem>>, %arg6: memref<1x160xf32, #tpu.memory_space<vmem>>, %arg7: memref<160x160xbf16, #tpu.memory_space<vmem>>, %arg8: memref<1x160xf32, #tpu.memory_space<vmem>>, %arg9: memref<5x32xf32, #tpu.memory_space<vmem>>, %arg10: memref<1x32xf32, #tpu.memory_space<vmem>>, %arg11: memref<1x32xf32, #tpu.memory_space<vmem>>, %arg12: memref<1x32xf32, #tpu.memory_space<vmem>>, %arg13: memref<1x1024xf32, #tpu.memory_space<vmem>>, %arg14: memref<1x1024xf32, #tpu.memory_space<vmem>>, %arg15: memref<1024x1024xbf16, #tpu.memory_space<any>>, %arg16: memref<1x1024xf32, #tpu.memory_space<vmem>>, %arg17: memref<32x32xf32, #tpu.memory_space<vmem>>, %arg18: memref<1x32xf32, #tpu.memory_space<vmem>>, %arg19: memref<1x32xf32, #tpu.memory_space<vmem>>, %arg20: memref<1x32xf32, #tpu.memory_space<vmem>>, %arg21: memref<32x32xf32, #tpu.memory_space<vmem>>, %arg22: memref<1x32xf32, #tpu.memory_space<vmem>>, %arg23: memref<32x1xf32, #tpu.memory_space<vmem>>, %arg24: memref<1x1xf32, #tpu.memory_space<vmem>>, %arg25: memref<2x1xf32, #tpu.memory_space<vmem>>, %arg26: memref<2x256x1024xbf16, #tpu.memory_space<vmem>>, %arg27: memref<2x!tpu.dma_semaphore, #tpu.memory_space<semaphore_mem>>) attributes {dimension_semantics = [], scalar_prefetch = 0 : i64, scratch_operands = 2 : i64, tpu.core_type = #tpu.core_type<tc>} {
    %c0_i32 = arith.constant 0 : i32
    %c0_i32_0 = arith.constant 0 : i32
    %c0_i32_1 = arith.constant 0 : i32
    %c0_i32_2 = arith.constant 0 : i32
    %0 = tpu.memref_slice %arg15[%c0_i32_1, %c0_i32_2] : memref<1024x1024xbf16, #tpu.memory_space<any>> -> memref<256x1024xbf16, #tpu.memory_space<any>>
    %c0_i32_3 = arith.constant 0 : i32
    %c0_i32_4 = arith.constant 0 : i32
    %1 = tpu.memref_slice %arg26[%c0_i32, %c0_i32_3, %c0_i32_4] : memref<2x256x1024xbf16, #tpu.memory_space<vmem>> -> memref<1x256x1024xbf16, #tpu.memory_space<vmem>>
    %2 = tpu.memref_squeeze %1 : memref<1x256x1024xbf16, #tpu.memory_space<vmem>> -> memref<256x1024xbf16, #tpu.memory_space<vmem>>
    %3 = tpu.memref_slice %arg27[%c0_i32_0] : memref<2x!tpu.dma_semaphore, #tpu.memory_space<semaphore_mem>> -> memref<1x!tpu.dma_semaphore, #tpu.memory_space<semaphore_mem>>
    %4 = tpu.memref_squeeze %3 : memref<1x!tpu.dma_semaphore, #tpu.memory_space<semaphore_mem>> -> memref<!tpu.dma_semaphore, #tpu.memory_space<semaphore_mem>>
    tpu.enqueue_dma source(%0 : memref<256x1024xbf16, #tpu.memory_space<any>>) target(%2 : memref<256x1024xbf16, #tpu.memory_space<vmem>>) target_semaphore(%4 : memref<!tpu.dma_semaphore, #tpu.memory_space<semaphore_mem>>)
    %c0 = arith.constant 0 : index
    %c0_5 = arith.constant 0 : index
    %5 = vector.load %arg0[%c0, %c0_5] : memref<12x5xf32, #tpu.memory_space<vmem>>, vector<12x5xf32>
    %c0_6 = arith.constant 0 : index
    %c0_7 = arith.constant 0 : index
    %6 = vector.load %arg1[%c0_6, %c0_7] : memref<16x1xf32, #tpu.memory_space<vmem>>, vector<16x1xf32>
    %c0_8 = arith.constant 0 : index
    %c0_9 = arith.constant 0 : index
    %7 = vector.load %arg2[%c0_8, %c0_9] : memref<16x12xf32, #tpu.memory_space<vmem>>, vector<16x12xf32>
    %c0_10 = arith.constant 0 : index
    %c0_11 = arith.constant 0 : index
    %8 = vector.load %arg3[%c0_10, %c0_11] : memref<12x16xf32, #tpu.memory_space<vmem>>, vector<12x16xf32>
    %c0_12 = arith.constant 0 : index
    %c0_13 = arith.constant 0 : index
    %9 = vector.load %arg4[%c0_12, %c0_13] : memref<2x12xf32, #tpu.memory_space<vmem>>, vector<2x12xf32>
    %c0_14 = arith.constant 0 : index
    %c0_15 = arith.constant 0 : index
    %10 = vector.load %arg5[%c0_14, %c0_15] : memref<1x160xf32, #tpu.memory_space<vmem>>, vector<1x160xf32>
    %11 = vector.broadcast %6 : vector<16x1xf32> to vector<16x160xf32>
    %12 = vector.broadcast %10 : vector<1x160xf32> to vector<16x160xf32>
    %13 = arith.mulf %11, %12 : vector<16x160xf32>
    %c0_16 = arith.constant 0 : index
    %c0_17 = arith.constant 0 : index
    %14 = vector.load %arg6[%c0_16, %c0_17] : memref<1x160xf32, #tpu.memory_space<vmem>>, vector<1x160xf32>
    %15 = vector.broadcast %14 : vector<1x160xf32> to vector<16x160xf32>
    %16 = arith.addf %13, %15 : vector<16x160xf32>
    %cst = arith.constant 0.000000e+00 : f32
    %17 = vector.broadcast %cst : f32 to vector<16x160xf32>
    %18 = arith.maximumf %16, %17 : vector<16x160xf32>
    %19 = arith.truncf %18 : vector<16x160xf32> to vector<16x160xbf16>
    %c0_18 = arith.constant 0 : index
    %c0_19 = arith.constant 0 : index
    %20 = vector.load %arg7[%c0_18, %c0_19] : memref<160x160xbf16, #tpu.memory_space<vmem>>, vector<160x160xbf16>
    %cst_20 = arith.constant dense<0.000000e+00> : vector<16x160xf32>
    %21 = tpu.matmul %19, %20, %cst_20 {dimension_numbers = #tpu.dot_dimension_numbers<[1], [0], [0], [1], [0, 0, 1, 1], [], []>} : vector<16x160xbf16>, vector<160x160xbf16>, vector<16x160xf32> -> vector<16x160xf32>
    %c0_21 = arith.constant 0 : index
    %c0_22 = arith.constant 0 : index
    %22 = vector.load %arg8[%c0_21, %c0_22] : memref<1x160xf32, #tpu.memory_space<vmem>>, vector<1x160xf32>
    %23 = vector.broadcast %22 : vector<1x160xf32> to vector<16x160xf32>
    %24 = arith.addf %21, %23 : vector<16x160xf32>
    %c0_23 = arith.constant 0 : index
    %c0_24 = arith.constant 0 : index
    %25 = vector.load %arg9[%c0_23, %c0_24] : memref<5x32xf32, #tpu.memory_space<vmem>>, vector<5x32xf32>
    %c0_25 = arith.constant 0 : index
    %c0_26 = arith.constant 0 : index
    %26 = vector.load %arg10[%c0_25, %c0_26] : memref<1x32xf32, #tpu.memory_space<vmem>>, vector<1x32xf32>
    %cst_27 = arith.constant dense<0.000000e+00> : vector<16x5xf32>
    %27 = tpu.matmul %7, %5, %cst_27 {dimension_numbers = #tpu.dot_dimension_numbers<[1], [0], [0], [1], [0, 0, 1, 1], [], []>} : vector<16x12xf32>, vector<12x5xf32>, vector<16x5xf32> -> vector<16x5xf32>
    %28 = vector.extract_strided_slice %27 {offsets = [0, 0], sizes = [16, 1], strides = [1, 1]} : vector<16x5xf32> to vector<16x1xf32>
    %29 = vector.extract_strided_slice %24 {offsets = [0, 0], sizes = [16, 32], strides = [1, 1]} : vector<16x160xf32> to vector<16x32xf32>
    %30 = vector.broadcast %28 : vector<16x1xf32> to vector<16x32xf32>
    %31 = arith.mulf %30, %29 : vector<16x32xf32>
    %32 = vector.extract_strided_slice %27 {offsets = [0, 1], sizes = [16, 1], strides = [1, 1]} : vector<16x5xf32> to vector<16x1xf32>
    %33 = vector.extract_strided_slice %24 {offsets = [0, 32], sizes = [16, 32], strides = [1, 1]} : vector<16x160xf32> to vector<16x32xf32>
    %34 = vector.broadcast %32 : vector<16x1xf32> to vector<16x32xf32>
    %35 = arith.mulf %34, %33 : vector<16x32xf32>
    %36 = arith.addf %31, %35 : vector<16x32xf32>
    %37 = vector.extract_strided_slice %27 {offsets = [0, 2], sizes = [16, 1], strides = [1, 1]} : vector<16x5xf32> to vector<16x1xf32>
    %38 = vector.extract_strided_slice %24 {offsets = [0, 64], sizes = [16, 32], strides = [1, 1]} : vector<16x160xf32> to vector<16x32xf32>
    %39 = vector.broadcast %37 : vector<16x1xf32> to vector<16x32xf32>
    %40 = arith.mulf %39, %38 : vector<16x32xf32>
    %41 = arith.addf %36, %40 : vector<16x32xf32>
    %42 = vector.extract_strided_slice %27 {offsets = [0, 3], sizes = [16, 1], strides = [1, 1]} : vector<16x5xf32> to vector<16x1xf32>
    %43 = vector.extract_strided_slice %24 {offsets = [0, 96], sizes = [16, 32], strides = [1, 1]} : vector<16x160xf32> to vector<16x32xf32>
    %44 = vector.broadcast %42 : vector<16x1xf32> to vector<16x32xf32>
    %45 = arith.mulf %44, %43 : vector<16x32xf32>
    %46 = arith.addf %41, %45 : vector<16x32xf32>
    %47 = vector.extract_strided_slice %27 {offsets = [0, 4], sizes = [16, 1], strides = [1, 1]} : vector<16x5xf32> to vector<16x1xf32>
    %48 = vector.extract_strided_slice %24 {offsets = [0, 128], sizes = [16, 32], strides = [1, 1]} : vector<16x160xf32> to vector<16x32xf32>
    %49 = vector.broadcast %47 : vector<16x1xf32> to vector<16x32xf32>
    %50 = arith.mulf %49, %48 : vector<16x32xf32>
    %51 = arith.addf %46, %50 : vector<16x32xf32>
    %cst_28 = arith.constant dense<0.000000e+00> : vector<12x32xf32>
    %52 = tpu.matmul %8, %51, %cst_28 {dimension_numbers = #tpu.dot_dimension_numbers<[1], [0], [0], [1], [0, 0, 1, 1], [], []>} : vector<12x16xf32>, vector<16x32xf32>, vector<12x32xf32> -> vector<12x32xf32>
    %cst_29 = arith.constant dense<0.000000e+00> : vector<12x32xf32>
    %53 = tpu.matmul %5, %25, %cst_29 {dimension_numbers = #tpu.dot_dimension_numbers<[1], [0], [0], [1], [0, 0, 1, 1], [], []>} : vector<12x5xf32>, vector<5x32xf32>, vector<12x32xf32> -> vector<12x32xf32>
    %54 = arith.addf %52, %53 : vector<12x32xf32>
    %55 = vector.broadcast %26 : vector<1x32xf32> to vector<12x32xf32>
    %56 = arith.addf %54, %55 : vector<12x32xf32>
    %c0_30 = arith.constant 0 : index
    %c0_31 = arith.constant 0 : index
    %57 = vector.load %arg11[%c0_30, %c0_31] : memref<1x32xf32, #tpu.memory_space<vmem>>, vector<1x32xf32>
    %c0_32 = arith.constant 0 : index
    %c0_33 = arith.constant 0 : index
    %58 = vector.load %arg12[%c0_32, %c0_33] : memref<1x32xf32, #tpu.memory_space<vmem>>, vector<1x32xf32>
    %cst_34 = arith.constant dense<0.000000e+00> : vector<32xf32>
    %59 = vector.multi_reduction <add>, %56, %cst_34 [0] : vector<12x32xf32> to vector<32xf32>
    %60 = vector.shape_cast %59 : vector<32xf32> to vector<1x32xf32>
    %cst_35 = arith.constant 1.200000e+01 : f32
    %61 = vector.broadcast %cst_35 : f32 to vector<1x32xf32>
    %62 = arith.divf %60, %61 : vector<1x32xf32>
    %63 = vector.broadcast %62 : vector<1x32xf32> to vector<12x32xf32>
    %64 = arith.subf %56, %63 : vector<12x32xf32>
    %65 = arith.mulf %64, %64 : vector<12x32xf32>
    %cst_36 = arith.constant dense<0.000000e+00> : vector<32xf32>
    %66 = vector.multi_reduction <add>, %65, %cst_36 [0] : vector<12x32xf32> to vector<32xf32>
    %67 = vector.shape_cast %66 : vector<32xf32> to vector<1x32xf32>
    %cst_37 = arith.constant 1.200000e+01 : f32
    %68 = vector.broadcast %cst_37 : f32 to vector<1x32xf32>
    %69 = arith.divf %67, %68 : vector<1x32xf32>
    %70 = vector.broadcast %62 : vector<1x32xf32> to vector<12x32xf32>
    %71 = arith.subf %56, %70 : vector<12x32xf32>
    %cst_38 = arith.constant 9.99999974E-6 : f32
    %72 = vector.broadcast %cst_38 : f32 to vector<1x32xf32>
    %73 = arith.addf %69, %72 : vector<1x32xf32>
    %74 = math.rsqrt %73 : vector<1x32xf32>
    %75 = vector.broadcast %74 : vector<1x32xf32> to vector<12x32xf32>
    %76 = arith.mulf %71, %75 : vector<12x32xf32>
    %77 = vector.broadcast %57 : vector<1x32xf32> to vector<12x32xf32>
    %78 = arith.mulf %76, %77 : vector<12x32xf32>
    %79 = vector.broadcast %58 : vector<1x32xf32> to vector<12x32xf32>
    %80 = arith.addf %78, %79 : vector<12x32xf32>
    %cst_39 = arith.constant 0.000000e+00 : f32
    %81 = vector.broadcast %cst_39 : f32 to vector<12x32xf32>
    %82 = arith.maximumf %80, %81 : vector<12x32xf32>
    %c0_40 = arith.constant 0 : index
    %c0_41 = arith.constant 0 : index
    %83 = vector.load %arg13[%c0_40, %c0_41] : memref<1x1024xf32, #tpu.memory_space<vmem>>, vector<1x1024xf32>
    %84 = vector.broadcast %6 : vector<16x1xf32> to vector<16x1024xf32>
    %85 = vector.broadcast %83 : vector<1x1024xf32> to vector<16x1024xf32>
    %86 = arith.mulf %84, %85 : vector<16x1024xf32>
    %c0_42 = arith.constant 0 : index
    %c0_43 = arith.constant 0 : index
    %87 = vector.load %arg14[%c0_42, %c0_43] : memref<1x1024xf32, #tpu.memory_space<vmem>>, vector<1x1024xf32>
    %88 = vector.broadcast %87 : vector<1x1024xf32> to vector<16x1024xf32>
    %89 = arith.addf %86, %88 : vector<16x1024xf32>
    %cst_44 = arith.constant 0.000000e+00 : f32
    %90 = vector.broadcast %cst_44 : f32 to vector<16x1024xf32>
    %91 = arith.maximumf %89, %90 : vector<16x1024xf32>
    %92 = arith.truncf %91 : vector<16x1024xf32> to vector<16x1024xbf16>
    %c0_i32_45 = arith.constant 0 : i32
    %c0_i32_46 = arith.constant 0 : i32
    %c0_i32_47 = arith.constant 0 : i32
    %c0_i32_48 = arith.constant 0 : i32
    %93 = tpu.memref_slice %arg15[%c0_i32_47, %c0_i32_48] : memref<1024x1024xbf16, #tpu.memory_space<any>> -> memref<256x1024xbf16, #tpu.memory_space<any>>
    %c0_i32_49 = arith.constant 0 : i32
    %c0_i32_50 = arith.constant 0 : i32
    %94 = tpu.memref_slice %arg26[%c0_i32_45, %c0_i32_49, %c0_i32_50] : memref<2x256x1024xbf16, #tpu.memory_space<vmem>> -> memref<1x256x1024xbf16, #tpu.memory_space<vmem>>
    %95 = tpu.memref_squeeze %94 : memref<1x256x1024xbf16, #tpu.memory_space<vmem>> -> memref<256x1024xbf16, #tpu.memory_space<vmem>>
    %96 = tpu.memref_slice %arg27[%c0_i32_46] : memref<2x!tpu.dma_semaphore, #tpu.memory_space<semaphore_mem>> -> memref<1x!tpu.dma_semaphore, #tpu.memory_space<semaphore_mem>>
    %97 = tpu.memref_squeeze %96 : memref<1x!tpu.dma_semaphore, #tpu.memory_space<semaphore_mem>> -> memref<!tpu.dma_semaphore, #tpu.memory_space<semaphore_mem>>
    tpu.wait_dma2 semaphore(%97 : memref<!tpu.dma_semaphore, #tpu.memory_space<semaphore_mem>>) src(%93 : memref<256x1024xbf16, #tpu.memory_space<any>>) dst(%95 : memref<256x1024xbf16, #tpu.memory_space<vmem>>)
    %c1_i32 = arith.constant 1 : i32
    %c1_i32_51 = arith.constant 1 : i32
    %c256_i32 = arith.constant 256 : i32
    %c0_i32_52 = arith.constant 0 : i32
    %98 = tpu.memref_slice %arg15[%c256_i32, %c0_i32_52] : memref<1024x1024xbf16, #tpu.memory_space<any>> -> memref<256x1024xbf16, #tpu.memory_space<any>>
    %c0_i32_53 = arith.constant 0 : i32
    %c0_i32_54 = arith.constant 0 : i32
    %99 = tpu.memref_slice %arg26[%c1_i32, %c0_i32_53, %c0_i32_54] : memref<2x256x1024xbf16, #tpu.memory_space<vmem>> -> memref<1x256x1024xbf16, #tpu.memory_space<vmem>>
    %100 = tpu.memref_squeeze %99 : memref<1x256x1024xbf16, #tpu.memory_space<vmem>> -> memref<256x1024xbf16, #tpu.memory_space<vmem>>
    %101 = tpu.memref_slice %arg27[%c1_i32_51] : memref<2x!tpu.dma_semaphore, #tpu.memory_space<semaphore_mem>> -> memref<1x!tpu.dma_semaphore, #tpu.memory_space<semaphore_mem>>
    %102 = tpu.memref_squeeze %101 : memref<1x!tpu.dma_semaphore, #tpu.memory_space<semaphore_mem>> -> memref<!tpu.dma_semaphore, #tpu.memory_space<semaphore_mem>>
    tpu.enqueue_dma source(%98 : memref<256x1024xbf16, #tpu.memory_space<any>>) target(%100 : memref<256x1024xbf16, #tpu.memory_space<vmem>>) target_semaphore(%102 : memref<!tpu.dma_semaphore, #tpu.memory_space<semaphore_mem>>)
    %103 = vector.extract_strided_slice %92 {offsets = [0, 0], sizes = [16, 256], strides = [1, 1]} : vector<16x1024xbf16> to vector<16x256xbf16>
    %c0_55 = arith.constant 0 : index
    %c0_56 = arith.constant 0 : index
    %c0_57 = arith.constant 0 : index
    %104 = vector.load %arg26[%c0_55, %c0_56, %c0_57] : memref<2x256x1024xbf16, #tpu.memory_space<vmem>>, vector<1x256x1024xbf16>
    %105 = vector.shape_cast %104 : vector<1x256x1024xbf16> to vector<256x1024xbf16>
    %cst_58 = arith.constant dense<0.000000e+00> : vector<16x1024xf32>
    %106 = tpu.matmul %103, %105, %cst_58 {dimension_numbers = #tpu.dot_dimension_numbers<[1], [0], [0], [1], [0, 0, 1, 1], [], []>} : vector<16x256xbf16>, vector<256x1024xbf16>, vector<16x1024xf32> -> vector<16x1024xf32>
    %c1_i32_59 = arith.constant 1 : i32
    %c1_i32_60 = arith.constant 1 : i32
    %c256_i32_61 = arith.constant 256 : i32
    %c0_i32_62 = arith.constant 0 : i32
    %107 = tpu.memref_slice %arg15[%c256_i32_61, %c0_i32_62] : memref<1024x1024xbf16, #tpu.memory_space<any>> -> memref<256x1024xbf16, #tpu.memory_space<any>>
    %c0_i32_63 = arith.constant 0 : i32
    %c0_i32_64 = arith.constant 0 : i32
    %108 = tpu.memref_slice %arg26[%c1_i32_59, %c0_i32_63, %c0_i32_64] : memref<2x256x1024xbf16, #tpu.memory_space<vmem>> -> memref<1x256x1024xbf16, #tpu.memory_space<vmem>>
    %109 = tpu.memref_squeeze %108 : memref<1x256x1024xbf16, #tpu.memory_space<vmem>> -> memref<256x1024xbf16, #tpu.memory_space<vmem>>
    %110 = tpu.memref_slice %arg27[%c1_i32_60] : memref<2x!tpu.dma_semaphore, #tpu.memory_space<semaphore_mem>> -> memref<1x!tpu.dma_semaphore, #tpu.memory_space<semaphore_mem>>
    %111 = tpu.memref_squeeze %110 : memref<1x!tpu.dma_semaphore, #tpu.memory_space<semaphore_mem>> -> memref<!tpu.dma_semaphore, #tpu.memory_space<semaphore_mem>>
    tpu.wait_dma2 semaphore(%111 : memref<!tpu.dma_semaphore, #tpu.memory_space<semaphore_mem>>) src(%107 : memref<256x1024xbf16, #tpu.memory_space<any>>) dst(%109 : memref<256x1024xbf16, #tpu.memory_space<vmem>>)
    %c0_i32_65 = arith.constant 0 : i32
    %c0_i32_66 = arith.constant 0 : i32
    %c512_i32 = arith.constant 512 : i32
    %c0_i32_67 = arith.constant 0 : i32
    %112 = tpu.memref_slice %arg15[%c512_i32, %c0_i32_67] : memref<1024x1024xbf16, #tpu.memory_space<any>> -> memref<256x1024xbf16, #tpu.memory_space<any>>
    %c0_i32_68 = arith.constant 0 : i32
    %c0_i32_69 = arith.constant 0 : i32
    %113 = tpu.memref_slice %arg26[%c0_i32_65, %c0_i32_68, %c0_i32_69] : memref<2x256x1024xbf16, #tpu.memory_space<vmem>> -> memref<1x256x1024xbf16, #tpu.memory_space<vmem>>
    %114 = tpu.memref_squeeze %113 : memref<1x256x1024xbf16, #tpu.memory_space<vmem>> -> memref<256x1024xbf16, #tpu.memory_space<vmem>>
    %115 = tpu.memref_slice %arg27[%c0_i32_66] : memref<2x!tpu.dma_semaphore, #tpu.memory_space<semaphore_mem>> -> memref<1x!tpu.dma_semaphore, #tpu.memory_space<semaphore_mem>>
    %116 = tpu.memref_squeeze %115 : memref<1x!tpu.dma_semaphore, #tpu.memory_space<semaphore_mem>> -> memref<!tpu.dma_semaphore, #tpu.memory_space<semaphore_mem>>
    tpu.enqueue_dma source(%112 : memref<256x1024xbf16, #tpu.memory_space<any>>) target(%114 : memref<256x1024xbf16, #tpu.memory_space<vmem>>) target_semaphore(%116 : memref<!tpu.dma_semaphore, #tpu.memory_space<semaphore_mem>>)
    %117 = vector.extract_strided_slice %92 {offsets = [0, 256], sizes = [16, 256], strides = [1, 1]} : vector<16x1024xbf16> to vector<16x256xbf16>
    %c1 = arith.constant 1 : index
    %c0_70 = arith.constant 0 : index
    %c0_71 = arith.constant 0 : index
    %118 = vector.load %arg26[%c1, %c0_70, %c0_71] : memref<2x256x1024xbf16, #tpu.memory_space<vmem>>, vector<1x256x1024xbf16>
    %119 = vector.shape_cast %118 : vector<1x256x1024xbf16> to vector<256x1024xbf16>
    %cst_72 = arith.constant dense<0.000000e+00> : vector<16x1024xf32>
    %120 = tpu.matmul %117, %119, %cst_72 {dimension_numbers = #tpu.dot_dimension_numbers<[1], [0], [0], [1], [0, 0, 1, 1], [], []>} : vector<16x256xbf16>, vector<256x1024xbf16>, vector<16x1024xf32> -> vector<16x1024xf32>
    %121 = arith.addf %106, %120 : vector<16x1024xf32>
    %c0_i32_73 = arith.constant 0 : i32
    %c0_i32_74 = arith.constant 0 : i32
    %c512_i32_75 = arith.constant 512 : i32
    %c0_i32_76 = arith.constant 0 : i32
    %122 = tpu.memref_slice %arg15[%c512_i32_75, %c0_i32_76] : memref<1024x1024xbf16, #tpu.memory_space<any>> -> memref<256x1024xbf16, #tpu.memory_space<any>>
    %c0_i32_77 = arith.constant 0 : i32
    %c0_i32_78 = arith.constant 0 : i32
    %123 = tpu.memref_slice %arg26[%c0_i32_73, %c0_i32_77, %c0_i32_78] : memref<2x256x1024xbf16, #tpu.memory_space<vmem>> -> memref<1x256x1024xbf16, #tpu.memory_space<vmem>>
    %124 = tpu.memref_squeeze %123 : memref<1x256x1024xbf16, #tpu.memory_space<vmem>> -> memref<256x1024xbf16, #tpu.memory_space<vmem>>
    %125 = tpu.memref_slice %arg27[%c0_i32_74] : memref<2x!tpu.dma_semaphore, #tpu.memory_space<semaphore_mem>> -> memref<1x!tpu.dma_semaphore, #tpu.memory_space<semaphore_mem>>
    %126 = tpu.memref_squeeze %125 : memref<1x!tpu.dma_semaphore, #tpu.memory_space<semaphore_mem>> -> memref<!tpu.dma_semaphore, #tpu.memory_space<semaphore_mem>>
    tpu.wait_dma2 semaphore(%126 : memref<!tpu.dma_semaphore, #tpu.memory_space<semaphore_mem>>) src(%122 : memref<256x1024xbf16, #tpu.memory_space<any>>) dst(%124 : memref<256x1024xbf16, #tpu.memory_space<vmem>>)
    %c1_i32_79 = arith.constant 1 : i32
    %c1_i32_80 = arith.constant 1 : i32
    %c768_i32 = arith.constant 768 : i32
    %c0_i32_81 = arith.constant 0 : i32
    %127 = tpu.memref_slice %arg15[%c768_i32, %c0_i32_81] : memref<1024x1024xbf16, #tpu.memory_space<any>> -> memref<256x1024xbf16, #tpu.memory_space<any>>
    %c0_i32_82 = arith.constant 0 : i32
    %c0_i32_83 = arith.constant 0 : i32
    %128 = tpu.memref_slice %arg26[%c1_i32_79, %c0_i32_82, %c0_i32_83] : memref<2x256x1024xbf16, #tpu.memory_space<vmem>> -> memref<1x256x1024xbf16, #tpu.memory_space<vmem>>
    %129 = tpu.memref_squeeze %128 : memref<1x256x1024xbf16, #tpu.memory_space<vmem>> -> memref<256x1024xbf16, #tpu.memory_space<vmem>>
    %130 = tpu.memref_slice %arg27[%c1_i32_80] : memref<2x!tpu.dma_semaphore, #tpu.memory_space<semaphore_mem>> -> memref<1x!tpu.dma_semaphore, #tpu.memory_space<semaphore_mem>>
    %131 = tpu.memref_squeeze %130 : memref<1x!tpu.dma_semaphore, #tpu.memory_space<semaphore_mem>> -> memref<!tpu.dma_semaphore, #tpu.memory_space<semaphore_mem>>
    tpu.enqueue_dma source(%127 : memref<256x1024xbf16, #tpu.memory_space<any>>) target(%129 : memref<256x1024xbf16, #tpu.memory_space<vmem>>) target_semaphore(%131 : memref<!tpu.dma_semaphore, #tpu.memory_space<semaphore_mem>>)
    %132 = vector.extract_strided_slice %92 {offsets = [0, 512], sizes = [16, 256], strides = [1, 1]} : vector<16x1024xbf16> to vector<16x256xbf16>
    %c0_84 = arith.constant 0 : index
    %c0_85 = arith.constant 0 : index
    %c0_86 = arith.constant 0 : index
    %133 = vector.load %arg26[%c0_84, %c0_85, %c0_86] : memref<2x256x1024xbf16, #tpu.memory_space<vmem>>, vector<1x256x1024xbf16>
    %134 = vector.shape_cast %133 : vector<1x256x1024xbf16> to vector<256x1024xbf16>
    %cst_87 = arith.constant dense<0.000000e+00> : vector<16x1024xf32>
    %135 = tpu.matmul %132, %134, %cst_87 {dimension_numbers = #tpu.dot_dimension_numbers<[1], [0], [0], [1], [0, 0, 1, 1], [], []>} : vector<16x256xbf16>, vector<256x1024xbf16>, vector<16x1024xf32> -> vector<16x1024xf32>
    %136 = arith.addf %121, %135 : vector<16x1024xf32>
    %c1_i32_88 = arith.constant 1 : i32
    %c1_i32_89 = arith.constant 1 : i32
    %c768_i32_90 = arith.constant 768 : i32
    %c0_i32_91 = arith.constant 0 : i32
    %137 = tpu.memref_slice %arg15[%c768_i32_90, %c0_i32_91] : memref<1024x1024xbf16, #tpu.memory_space<any>> -> memref<256x1024xbf16, #tpu.memory_space<any>>
    %c0_i32_92 = arith.constant 0 : i32
    %c0_i32_93 = arith.constant 0 : i32
    %138 = tpu.memref_slice %arg26[%c1_i32_88, %c0_i32_92, %c0_i32_93] : memref<2x256x1024xbf16, #tpu.memory_space<vmem>> -> memref<1x256x1024xbf16, #tpu.memory_space<vmem>>
    %139 = tpu.memref_squeeze %138 : memref<1x256x1024xbf16, #tpu.memory_space<vmem>> -> memref<256x1024xbf16, #tpu.memory_space<vmem>>
    %140 = tpu.memref_slice %arg27[%c1_i32_89] : memref<2x!tpu.dma_semaphore, #tpu.memory_space<semaphore_mem>> -> memref<1x!tpu.dma_semaphore, #tpu.memory_space<semaphore_mem>>
    %141 = tpu.memref_squeeze %140 : memref<1x!tpu.dma_semaphore, #tpu.memory_space<semaphore_mem>> -> memref<!tpu.dma_semaphore, #tpu.memory_space<semaphore_mem>>
    tpu.wait_dma2 semaphore(%141 : memref<!tpu.dma_semaphore, #tpu.memory_space<semaphore_mem>>) src(%137 : memref<256x1024xbf16, #tpu.memory_space<any>>) dst(%139 : memref<256x1024xbf16, #tpu.memory_space<vmem>>)
    %142 = vector.extract_strided_slice %92 {offsets = [0, 768], sizes = [16, 256], strides = [1, 1]} : vector<16x1024xbf16> to vector<16x256xbf16>
    %c1_94 = arith.constant 1 : index
    %c0_95 = arith.constant 0 : index
    %c0_96 = arith.constant 0 : index
    %143 = vector.load %arg26[%c1_94, %c0_95, %c0_96] : memref<2x256x1024xbf16, #tpu.memory_space<vmem>>, vector<1x256x1024xbf16>
    %144 = vector.shape_cast %143 : vector<1x256x1024xbf16> to vector<256x1024xbf16>
    %cst_97 = arith.constant dense<0.000000e+00> : vector<16x1024xf32>
    %145 = tpu.matmul %142, %144, %cst_97 {dimension_numbers = #tpu.dot_dimension_numbers<[1], [0], [0], [1], [0, 0, 1, 1], [], []>} : vector<16x256xbf16>, vector<256x1024xbf16>, vector<16x1024xf32> -> vector<16x1024xf32>
    %146 = arith.addf %136, %145 : vector<16x1024xf32>
    %c0_98 = arith.constant 0 : index
    %c0_99 = arith.constant 0 : index
    %147 = vector.load %arg16[%c0_98, %c0_99] : memref<1x1024xf32, #tpu.memory_space<vmem>>, vector<1x1024xf32>
    %148 = vector.broadcast %147 : vector<1x1024xf32> to vector<16x1024xf32>
    %149 = arith.addf %146, %148 : vector<16x1024xf32>
    %c0_100 = arith.constant 0 : index
    %c0_101 = arith.constant 0 : index
    %150 = vector.load %arg17[%c0_100, %c0_101] : memref<32x32xf32, #tpu.memory_space<vmem>>, vector<32x32xf32>
    %c0_102 = arith.constant 0 : index
    %c0_103 = arith.constant 0 : index
    %151 = vector.load %arg18[%c0_102, %c0_103] : memref<1x32xf32, #tpu.memory_space<vmem>>, vector<1x32xf32>
    %cst_104 = arith.constant dense<0.000000e+00> : vector<16x32xf32>
    %152 = tpu.matmul %7, %82, %cst_104 {dimension_numbers = #tpu.dot_dimension_numbers<[1], [0], [0], [1], [0, 0, 1, 1], [], []>} : vector<16x12xf32>, vector<12x32xf32>, vector<16x32xf32> -> vector<16x32xf32>
    %153 = vector.extract_strided_slice %152 {offsets = [0, 0], sizes = [16, 1], strides = [1, 1]} : vector<16x32xf32> to vector<16x1xf32>
    %154 = vector.extract_strided_slice %149 {offsets = [0, 0], sizes = [16, 32], strides = [1, 1]} : vector<16x1024xf32> to vector<16x32xf32>
    %155 = vector.broadcast %153 : vector<16x1xf32> to vector<16x32xf32>
    %156 = arith.mulf %155, %154 : vector<16x32xf32>
    %157 = vector.extract_strided_slice %152 {offsets = [0, 1], sizes = [16, 1], strides = [1, 1]} : vector<16x32xf32> to vector<16x1xf32>
    %158 = vector.extract_strided_slice %149 {offsets = [0, 32], sizes = [16, 32], strides = [1, 1]} : vector<16x1024xf32> to vector<16x32xf32>
    %159 = vector.broadcast %157 : vector<16x1xf32> to vector<16x32xf32>
    %160 = arith.mulf %159, %158 : vector<16x32xf32>
    %161 = arith.addf %156, %160 : vector<16x32xf32>
    %162 = vector.extract_strided_slice %152 {offsets = [0, 2], sizes = [16, 1], strides = [1, 1]} : vector<16x32xf32> to vector<16x1xf32>
    %163 = vector.extract_strided_slice %149 {offsets = [0, 64], sizes = [16, 32], strides = [1, 1]} : vector<16x1024xf32> to vector<16x32xf32>
    %164 = vector.broadcast %162 : vector<16x1xf32> to vector<16x32xf32>
    %165 = arith.mulf %164, %163 : vector<16x32xf32>
    %166 = arith.addf %161, %165 : vector<16x32xf32>
    %167 = vector.extract_strided_slice %152 {offsets = [0, 3], sizes = [16, 1], strides = [1, 1]} : vector<16x32xf32> to vector<16x1xf32>
    %168 = vector.extract_strided_slice %149 {offsets = [0, 96], sizes = [16, 32], strides = [1, 1]} : vector<16x1024xf32> to vector<16x32xf32>
    %169 = vector.broadcast %167 : vector<16x1xf32> to vector<16x32xf32>
    %170 = arith.mulf %169, %168 : vector<16x32xf32>
    %171 = arith.addf %166, %170 : vector<16x32xf32>
    %172 = vector.extract_strided_slice %152 {offsets = [0, 4], sizes = [16, 1], strides = [1, 1]} : vector<16x32xf32> to vector<16x1xf32>
    %173 = vector.extract_strided_slice %149 {offsets = [0, 128], sizes = [16, 32], strides = [1, 1]} : vector<16x1024xf32> to vector<16x32xf32>
    %174 = vector.broadcast %172 : vector<16x1xf32> to vector<16x32xf32>
    %175 = arith.mulf %174, %173 : vector<16x32xf32>
    %176 = arith.addf %171, %175 : vector<16x32xf32>
    %177 = vector.extract_strided_slice %152 {offsets = [0, 5], sizes = [16, 1], strides = [1, 1]} : vector<16x32xf32> to vector<16x1xf32>
    %178 = vector.extract_strided_slice %149 {offsets = [0, 160], sizes = [16, 32], strides = [1, 1]} : vector<16x1024xf32> to vector<16x32xf32>
    %179 = vector.broadcast %177 : vector<16x1xf32> to vector<16x32xf32>
    %180 = arith.mulf %179, %178 : vector<16x32xf32>
    %181 = arith.addf %176, %180 : vector<16x32xf32>
    %182 = vector.extract_strided_slice %152 {offsets = [0, 6], sizes = [16, 1], strides = [1, 1]} : vector<16x32xf32> to vector<16x1xf32>
    %183 = vector.extract_strided_slice %149 {offsets = [0, 192], sizes = [16, 32], strides = [1, 1]} : vector<16x1024xf32> to vector<16x32xf32>
    %184 = vector.broadcast %182 : vector<16x1xf32> to vector<16x32xf32>
    %185 = arith.mulf %184, %183 : vector<16x32xf32>
    %186 = arith.addf %181, %185 : vector<16x32xf32>
    %187 = vector.extract_strided_slice %152 {offsets = [0, 7], sizes = [16, 1], strides = [1, 1]} : vector<16x32xf32> to vector<16x1xf32>
    %188 = vector.extract_strided_slice %149 {offsets = [0, 224], sizes = [16, 32], strides = [1, 1]} : vector<16x1024xf32> to vector<16x32xf32>
    %189 = vector.broadcast %187 : vector<16x1xf32> to vector<16x32xf32>
    %190 = arith.mulf %189, %188 : vector<16x32xf32>
    %191 = arith.addf %186, %190 : vector<16x32xf32>
    %192 = vector.extract_strided_slice %152 {offsets = [0, 8], sizes = [16, 1], strides = [1, 1]} : vector<16x32xf32> to vector<16x1xf32>
    %193 = vector.extract_strided_slice %149 {offsets = [0, 256], sizes = [16, 32], strides = [1, 1]} : vector<16x1024xf32> to vector<16x32xf32>
    %194 = vector.broadcast %192 : vector<16x1xf32> to vector<16x32xf32>
    %195 = arith.mulf %194, %193 : vector<16x32xf32>
    %196 = arith.addf %191, %195 : vector<16x32xf32>
    %197 = vector.extract_strided_slice %152 {offsets = [0, 9], sizes = [16, 1], strides = [1, 1]} : vector<16x32xf32> to vector<16x1xf32>
    %198 = vector.extract_strided_slice %149 {offsets = [0, 288], sizes = [16, 32], strides = [1, 1]} : vector<16x1024xf32> to vector<16x32xf32>
    %199 = vector.broadcast %197 : vector<16x1xf32> to vector<16x32xf32>
    %200 = arith.mulf %199, %198 : vector<16x32xf32>
    %201 = arith.addf %196, %200 : vector<16x32xf32>
    %202 = vector.extract_strided_slice %152 {offsets = [0, 10], sizes = [16, 1], strides = [1, 1]} : vector<16x32xf32> to vector<16x1xf32>
    %203 = vector.extract_strided_slice %149 {offsets = [0, 320], sizes = [16, 32], strides = [1, 1]} : vector<16x1024xf32> to vector<16x32xf32>
    %204 = vector.broadcast %202 : vector<16x1xf32> to vector<16x32xf32>
    %205 = arith.mulf %204, %203 : vector<16x32xf32>
    %206 = arith.addf %201, %205 : vector<16x32xf32>
    %207 = vector.extract_strided_slice %152 {offsets = [0, 11], sizes = [16, 1], strides = [1, 1]} : vector<16x32xf32> to vector<16x1xf32>
    %208 = vector.extract_strided_slice %149 {offsets = [0, 352], sizes = [16, 32], strides = [1, 1]} : vector<16x1024xf32> to vector<16x32xf32>
    %209 = vector.broadcast %207 : vector<16x1xf32> to vector<16x32xf32>
    %210 = arith.mulf %209, %208 : vector<16x32xf32>
    %211 = arith.addf %206, %210 : vector<16x32xf32>
    %212 = vector.extract_strided_slice %152 {offsets = [0, 12], sizes = [16, 1], strides = [1, 1]} : vector<16x32xf32> to vector<16x1xf32>
    %213 = vector.extract_strided_slice %149 {offsets = [0, 384], sizes = [16, 32], strides = [1, 1]} : vector<16x1024xf32> to vector<16x32xf32>
    %214 = vector.broadcast %212 : vector<16x1xf32> to vector<16x32xf32>
    %215 = arith.mulf %214, %213 : vector<16x32xf32>
    %216 = arith.addf %211, %215 : vector<16x32xf32>
    %217 = vector.extract_strided_slice %152 {offsets = [0, 13], sizes = [16, 1], strides = [1, 1]} : vector<16x32xf32> to vector<16x1xf32>
    %218 = vector.extract_strided_slice %149 {offsets = [0, 416], sizes = [16, 32], strides = [1, 1]} : vector<16x1024xf32> to vector<16x32xf32>
    %219 = vector.broadcast %217 : vector<16x1xf32> to vector<16x32xf32>
    %220 = arith.mulf %219, %218 : vector<16x32xf32>
    %221 = arith.addf %216, %220 : vector<16x32xf32>
    %222 = vector.extract_strided_slice %152 {offsets = [0, 14], sizes = [16, 1], strides = [1, 1]} : vector<16x32xf32> to vector<16x1xf32>
    %223 = vector.extract_strided_slice %149 {offsets = [0, 448], sizes = [16, 32], strides = [1, 1]} : vector<16x1024xf32> to vector<16x32xf32>
    %224 = vector.broadcast %222 : vector<16x1xf32> to vector<16x32xf32>
    %225 = arith.mulf %224, %223 : vector<16x32xf32>
    %226 = arith.addf %221, %225 : vector<16x32xf32>
    %227 = vector.extract_strided_slice %152 {offsets = [0, 15], sizes = [16, 1], strides = [1, 1]} : vector<16x32xf32> to vector<16x1xf32>
    %228 = vector.extract_strided_slice %149 {offsets = [0, 480], sizes = [16, 32], strides = [1, 1]} : vector<16x1024xf32> to vector<16x32xf32>
    %229 = vector.broadcast %227 : vector<16x1xf32> to vector<16x32xf32>
    %230 = arith.mulf %229, %228 : vector<16x32xf32>
    %231 = arith.addf %226, %230 : vector<16x32xf32>
    %232 = vector.extract_strided_slice %152 {offsets = [0, 16], sizes = [16, 1], strides = [1, 1]} : vector<16x32xf32> to vector<16x1xf32>
    %233 = vector.extract_strided_slice %149 {offsets = [0, 512], sizes = [16, 32], strides = [1, 1]} : vector<16x1024xf32> to vector<16x32xf32>
    %234 = vector.broadcast %232 : vector<16x1xf32> to vector<16x32xf32>
    %235 = arith.mulf %234, %233 : vector<16x32xf32>
    %236 = arith.addf %231, %235 : vector<16x32xf32>
    %237 = vector.extract_strided_slice %152 {offsets = [0, 17], sizes = [16, 1], strides = [1, 1]} : vector<16x32xf32> to vector<16x1xf32>
    %238 = vector.extract_strided_slice %149 {offsets = [0, 544], sizes = [16, 32], strides = [1, 1]} : vector<16x1024xf32> to vector<16x32xf32>
    %239 = vector.broadcast %237 : vector<16x1xf32> to vector<16x32xf32>
    %240 = arith.mulf %239, %238 : vector<16x32xf32>
    %241 = arith.addf %236, %240 : vector<16x32xf32>
    %242 = vector.extract_strided_slice %152 {offsets = [0, 18], sizes = [16, 1], strides = [1, 1]} : vector<16x32xf32> to vector<16x1xf32>
    %243 = vector.extract_strided_slice %149 {offsets = [0, 576], sizes = [16, 32], strides = [1, 1]} : vector<16x1024xf32> to vector<16x32xf32>
    %244 = vector.broadcast %242 : vector<16x1xf32> to vector<16x32xf32>
    %245 = arith.mulf %244, %243 : vector<16x32xf32>
    %246 = arith.addf %241, %245 : vector<16x32xf32>
    %247 = vector.extract_strided_slice %152 {offsets = [0, 19], sizes = [16, 1], strides = [1, 1]} : vector<16x32xf32> to vector<16x1xf32>
    %248 = vector.extract_strided_slice %149 {offsets = [0, 608], sizes = [16, 32], strides = [1, 1]} : vector<16x1024xf32> to vector<16x32xf32>
    %249 = vector.broadcast %247 : vector<16x1xf32> to vector<16x32xf32>
    %250 = arith.mulf %249, %248 : vector<16x32xf32>
    %251 = arith.addf %246, %250 : vector<16x32xf32>
    %252 = vector.extract_strided_slice %152 {offsets = [0, 20], sizes = [16, 1], strides = [1, 1]} : vector<16x32xf32> to vector<16x1xf32>
    %253 = vector.extract_strided_slice %149 {offsets = [0, 640], sizes = [16, 32], strides = [1, 1]} : vector<16x1024xf32> to vector<16x32xf32>
    %254 = vector.broadcast %252 : vector<16x1xf32> to vector<16x32xf32>
    %255 = arith.mulf %254, %253 : vector<16x32xf32>
    %256 = arith.addf %251, %255 : vector<16x32xf32>
    %257 = vector.extract_strided_slice %152 {offsets = [0, 21], sizes = [16, 1], strides = [1, 1]} : vector<16x32xf32> to vector<16x1xf32>
    %258 = vector.extract_strided_slice %149 {offsets = [0, 672], sizes = [16, 32], strides = [1, 1]} : vector<16x1024xf32> to vector<16x32xf32>
    %259 = vector.broadcast %257 : vector<16x1xf32> to vector<16x32xf32>
    %260 = arith.mulf %259, %258 : vector<16x32xf32>
    %261 = arith.addf %256, %260 : vector<16x32xf32>
    %262 = vector.extract_strided_slice %152 {offsets = [0, 22], sizes = [16, 1], strides = [1, 1]} : vector<16x32xf32> to vector<16x1xf32>
    %263 = vector.extract_strided_slice %149 {offsets = [0, 704], sizes = [16, 32], strides = [1, 1]} : vector<16x1024xf32> to vector<16x32xf32>
    %264 = vector.broadcast %262 : vector<16x1xf32> to vector<16x32xf32>
    %265 = arith.mulf %264, %263 : vector<16x32xf32>
    %266 = arith.addf %261, %265 : vector<16x32xf32>
    %267 = vector.extract_strided_slice %152 {offsets = [0, 23], sizes = [16, 1], strides = [1, 1]} : vector<16x32xf32> to vector<16x1xf32>
    %268 = vector.extract_strided_slice %149 {offsets = [0, 736], sizes = [16, 32], strides = [1, 1]} : vector<16x1024xf32> to vector<16x32xf32>
    %269 = vector.broadcast %267 : vector<16x1xf32> to vector<16x32xf32>
    %270 = arith.mulf %269, %268 : vector<16x32xf32>
    %271 = arith.addf %266, %270 : vector<16x32xf32>
    %272 = vector.extract_strided_slice %152 {offsets = [0, 24], sizes = [16, 1], strides = [1, 1]} : vector<16x32xf32> to vector<16x1xf32>
    %273 = vector.extract_strided_slice %149 {offsets = [0, 768], sizes = [16, 32], strides = [1, 1]} : vector<16x1024xf32> to vector<16x32xf32>
    %274 = vector.broadcast %272 : vector<16x1xf32> to vector<16x32xf32>
    %275 = arith.mulf %274, %273 : vector<16x32xf32>
    %276 = arith.addf %271, %275 : vector<16x32xf32>
    %277 = vector.extract_strided_slice %152 {offsets = [0, 25], sizes = [16, 1], strides = [1, 1]} : vector<16x32xf32> to vector<16x1xf32>
    %278 = vector.extract_strided_slice %149 {offsets = [0, 800], sizes = [16, 32], strides = [1, 1]} : vector<16x1024xf32> to vector<16x32xf32>
    %279 = vector.broadcast %277 : vector<16x1xf32> to vector<16x32xf32>
    %280 = arith.mulf %279, %278 : vector<16x32xf32>
    %281 = arith.addf %276, %280 : vector<16x32xf32>
    %282 = vector.extract_strided_slice %152 {offsets = [0, 26], sizes = [16, 1], strides = [1, 1]} : vector<16x32xf32> to vector<16x1xf32>
    %283 = vector.extract_strided_slice %149 {offsets = [0, 832], sizes = [16, 32], strides = [1, 1]} : vector<16x1024xf32> to vector<16x32xf32>
    %284 = vector.broadcast %282 : vector<16x1xf32> to vector<16x32xf32>
    %285 = arith.mulf %284, %283 : vector<16x32xf32>
    %286 = arith.addf %281, %285 : vector<16x32xf32>
    %287 = vector.extract_strided_slice %152 {offsets = [0, 27], sizes = [16, 1], strides = [1, 1]} : vector<16x32xf32> to vector<16x1xf32>
    %288 = vector.extract_strided_slice %149 {offsets = [0, 864], sizes = [16, 32], strides = [1, 1]} : vector<16x1024xf32> to vector<16x32xf32>
    %289 = vector.broadcast %287 : vector<16x1xf32> to vector<16x32xf32>
    %290 = arith.mulf %289, %288 : vector<16x32xf32>
    %291 = arith.addf %286, %290 : vector<16x32xf32>
    %292 = vector.extract_strided_slice %152 {offsets = [0, 28], sizes = [16, 1], strides = [1, 1]} : vector<16x32xf32> to vector<16x1xf32>
    %293 = vector.extract_strided_slice %149 {offsets = [0, 896], sizes = [16, 32], strides = [1, 1]} : vector<16x1024xf32> to vector<16x32xf32>
    %294 = vector.broadcast %292 : vector<16x1xf32> to vector<16x32xf32>
    %295 = arith.mulf %294, %293 : vector<16x32xf32>
    %296 = arith.addf %291, %295 : vector<16x32xf32>
    %297 = vector.extract_strided_slice %152 {offsets = [0, 29], sizes = [16, 1], strides = [1, 1]} : vector<16x32xf32> to vector<16x1xf32>
    %298 = vector.extract_strided_slice %149 {offsets = [0, 928], sizes = [16, 32], strides = [1, 1]} : vector<16x1024xf32> to vector<16x32xf32>
    %299 = vector.broadcast %297 : vector<16x1xf32> to vector<16x32xf32>
    %300 = arith.mulf %299, %298 : vector<16x32xf32>
    %301 = arith.addf %296, %300 : vector<16x32xf32>
    %302 = vector.extract_strided_slice %152 {offsets = [0, 30], sizes = [16, 1], strides = [1, 1]} : vector<16x32xf32> to vector<16x1xf32>
    %303 = vector.extract_strided_slice %149 {offsets = [0, 960], sizes = [16, 32], strides = [1, 1]} : vector<16x1024xf32> to vector<16x32xf32>
    %304 = vector.broadcast %302 : vector<16x1xf32> to vector<16x32xf32>
    %305 = arith.mulf %304, %303 : vector<16x32xf32>
    %306 = arith.addf %301, %305 : vector<16x32xf32>
    %307 = vector.extract_strided_slice %152 {offsets = [0, 31], sizes = [16, 1], strides = [1, 1]} : vector<16x32xf32> to vector<16x1xf32>
    %308 = vector.extract_strided_slice %149 {offsets = [0, 992], sizes = [16, 32], strides = [1, 1]} : vector<16x1024xf32> to vector<16x32xf32>
    %309 = vector.broadcast %307 : vector<16x1xf32> to vector<16x32xf32>
    %310 = arith.mulf %309, %308 : vector<16x32xf32>
    %311 = arith.addf %306, %310 : vector<16x32xf32>
    %cst_105 = arith.constant dense<0.000000e+00> : vector<12x32xf32>
    %312 = tpu.matmul %8, %311, %cst_105 {dimension_numbers = #tpu.dot_dimension_numbers<[1], [0], [0], [1], [0, 0, 1, 1], [], []>} : vector<12x16xf32>, vector<16x32xf32>, vector<12x32xf32> -> vector<12x32xf32>
    %cst_106 = arith.constant dense<0.000000e+00> : vector<12x32xf32>
    %313 = tpu.matmul %82, %150, %cst_106 {dimension_numbers = #tpu.dot_dimension_numbers<[1], [0], [0], [1], [0, 0, 1, 1], [], []>} : vector<12x32xf32>, vector<32x32xf32>, vector<12x32xf32> -> vector<12x32xf32>
    %314 = arith.addf %312, %313 : vector<12x32xf32>
    %315 = vector.broadcast %151 : vector<1x32xf32> to vector<12x32xf32>
    %316 = arith.addf %314, %315 : vector<12x32xf32>
    %c0_107 = arith.constant 0 : index
    %c0_108 = arith.constant 0 : index
    %317 = vector.load %arg19[%c0_107, %c0_108] : memref<1x32xf32, #tpu.memory_space<vmem>>, vector<1x32xf32>
    %c0_109 = arith.constant 0 : index
    %c0_110 = arith.constant 0 : index
    %318 = vector.load %arg20[%c0_109, %c0_110] : memref<1x32xf32, #tpu.memory_space<vmem>>, vector<1x32xf32>
    %cst_111 = arith.constant dense<0.000000e+00> : vector<32xf32>
    %319 = vector.multi_reduction <add>, %316, %cst_111 [0] : vector<12x32xf32> to vector<32xf32>
    %320 = vector.shape_cast %319 : vector<32xf32> to vector<1x32xf32>
    %cst_112 = arith.constant 1.200000e+01 : f32
    %321 = vector.broadcast %cst_112 : f32 to vector<1x32xf32>
    %322 = arith.divf %320, %321 : vector<1x32xf32>
    %323 = vector.broadcast %322 : vector<1x32xf32> to vector<12x32xf32>
    %324 = arith.subf %316, %323 : vector<12x32xf32>
    %325 = arith.mulf %324, %324 : vector<12x32xf32>
    %cst_113 = arith.constant dense<0.000000e+00> : vector<32xf32>
    %326 = vector.multi_reduction <add>, %325, %cst_113 [0] : vector<12x32xf32> to vector<32xf32>
    %327 = vector.shape_cast %326 : vector<32xf32> to vector<1x32xf32>
    %cst_114 = arith.constant 1.200000e+01 : f32
    %328 = vector.broadcast %cst_114 : f32 to vector<1x32xf32>
    %329 = arith.divf %327, %328 : vector<1x32xf32>
    %330 = vector.broadcast %322 : vector<1x32xf32> to vector<12x32xf32>
    %331 = arith.subf %316, %330 : vector<12x32xf32>
    %cst_115 = arith.constant 9.99999974E-6 : f32
    %332 = vector.broadcast %cst_115 : f32 to vector<1x32xf32>
    %333 = arith.addf %329, %332 : vector<1x32xf32>
    %334 = math.rsqrt %333 : vector<1x32xf32>
    %335 = vector.broadcast %334 : vector<1x32xf32> to vector<12x32xf32>
    %336 = arith.mulf %331, %335 : vector<12x32xf32>
    %337 = vector.broadcast %317 : vector<1x32xf32> to vector<12x32xf32>
    %338 = arith.mulf %336, %337 : vector<12x32xf32>
    %339 = vector.broadcast %318 : vector<1x32xf32> to vector<12x32xf32>
    %340 = arith.addf %338, %339 : vector<12x32xf32>
    %cst_116 = arith.constant 0.000000e+00 : f32
    %341 = vector.broadcast %cst_116 : f32 to vector<12x32xf32>
    %342 = arith.maximumf %340, %341 : vector<12x32xf32>
    %cst_117 = arith.constant dense<0.000000e+00> : vector<2x32xf32>
    %343 = tpu.matmul %9, %342, %cst_117 {dimension_numbers = #tpu.dot_dimension_numbers<[1], [0], [0], [1], [0, 0, 1, 1], [], []>} : vector<2x12xf32>, vector<12x32xf32>, vector<2x32xf32> -> vector<2x32xf32>
    %c0_118 = arith.constant 0 : index
    %c0_119 = arith.constant 0 : index
    %344 = vector.load %arg21[%c0_118, %c0_119] : memref<32x32xf32, #tpu.memory_space<vmem>>, vector<32x32xf32>
    %cst_120 = arith.constant dense<0.000000e+00> : vector<2x32xf32>
    %345 = tpu.matmul %343, %344, %cst_120 {dimension_numbers = #tpu.dot_dimension_numbers<[1], [0], [0], [1], [0, 0, 1, 1], [], []>} : vector<2x32xf32>, vector<32x32xf32>, vector<2x32xf32> -> vector<2x32xf32>
    %c0_121 = arith.constant 0 : index
    %c0_122 = arith.constant 0 : index
    %346 = vector.load %arg22[%c0_121, %c0_122] : memref<1x32xf32, #tpu.memory_space<vmem>>, vector<1x32xf32>
    %347 = vector.broadcast %346 : vector<1x32xf32> to vector<2x32xf32>
    %348 = arith.addf %345, %347 : vector<2x32xf32>
    %cst_123 = arith.constant 0.000000e+00 : f32
    %349 = vector.broadcast %cst_123 : f32 to vector<2x32xf32>
    %350 = arith.maximumf %348, %349 : vector<2x32xf32>
    %c0_124 = arith.constant 0 : index
    %c0_125 = arith.constant 0 : index
    %351 = vector.load %arg23[%c0_124, %c0_125] : memref<32x1xf32, #tpu.memory_space<vmem>>, vector<32x1xf32>
    %cst_126 = arith.constant dense<0.000000e+00> : vector<2x1xf32>
    %352 = tpu.matmul %350, %351, %cst_126 {dimension_numbers = #tpu.dot_dimension_numbers<[1], [0], [0], [1], [0, 0, 1, 1], [], []>} : vector<2x32xf32>, vector<32x1xf32>, vector<2x1xf32> -> vector<2x1xf32>
    %c0_127 = arith.constant 0 : index
    %c0_128 = arith.constant 0 : index
    %353 = vector.load %arg24[%c0_127, %c0_128] : memref<1x1xf32, #tpu.memory_space<vmem>>, vector<1x1xf32>
    %354 = vector.broadcast %353 : vector<1x1xf32> to vector<2x1xf32>
    %355 = arith.addf %352, %354 : vector<2x1xf32>
    %c0_129 = arith.constant 0 : index
    %c0_130 = arith.constant 0 : index
    %356 = vector.load %arg25[%c0_129, %c0_130] : memref<2x1xf32, #tpu.memory_space<vmem>>, vector<2x1xf32>
    tpu.vector_store %arg25[%c0_129, %c0_130], %355 {strides = array<i32>} : memref<2x1xf32, #tpu.memory_space<vmem>>, vector<2x1xf32>,
    return
  }
}

</mosaic_0001>

<bundles_post_ra>
// kernel: tpu_custom_call.1
= control target key start
LH: loop header
LB: loop body
LE: loop exit
PB: predicated region body
PF: predicated region fallthrough
CT: control target
= control target key end

     0   :  { %s6176_s0 = inlined_call_operand.vmem [shape: f32[12,5], index: 0, kind: input, shape index: {}]   ;;  %s6177_s1 = inlined_call_operand.vmem [shape: f32[16,1], index: 1, kind: input, shape index: {}]   ;;  %s6178_s2 = inlined_call_operand.hbm [shape: f32[16,12], index: 2, kind: input, shape index: {}]   ;;  %s6179_s3 = inlined_call_operand.hbm [shape: f32[12,16], index: 3, kind: input, shape index: {}]   ;;  %s6180_s4 = inlined_call_operand.hbm [shape: f32[2,12], index: 4, kind: input, shape index: {}]   ;;  %s6181_s5 = inlined_call_operand.hbm [shape: f32[1,160], index: 5, kind: input, shape index: {}]   ;;  %s6182_s6 = inlined_call_operand.hbm [shape: f32[1,160], index: 6, kind: input, shape index: {}]   ;;  %s6183_s7 = inlined_call_operand.hbm [shape: bf16[160,160], index: 7, kind: input, shape index: {}]   ;;  %s6184_s8 = inlined_call_operand.hbm [shape: f32[1,160], index: 8, kind: input, shape index: {}]   ;;  %s6185_s9 = inlined_call_operand.hbm [shape: f32[5,32], index: 9, kind: input, shape index: {}]   ;;  %s6186_s10 = inlined_call_operand.hbm [shape: f32[1,32], index: 10, kind: input, shape index: {}]   ;;  %s6187_s11 = inlined_call_operand.hbm [shape: f32[1,32], index: 11, kind: input, shape index: {}]   ;;  %s6188_s12 = inlined_call_operand.hbm [shape: f32[1,32], index: 12, kind: input, shape index: {}]   ;;  %s6189_s13 = inlined_call_operand.hbm [shape: f32[1,1024], index: 13, kind: input, shape index: {}]   ;;  %s6190_s14 = inlined_call_operand.hbm [shape: f32[1,1024], index: 14, kind: input, shape index: {}]   ;;  %s6191_s15 = inlined_call_operand.hbm [shape: bf16[1024,1024], index: 15, kind: input, shape index: {}]   ;;  %s6192_s16 = inlined_call_operand.hbm [shape: f32[1,1024], index: 16, kind: input, shape index: {}]   ;;  %s6193_s17 = inlined_call_operand.hbm [shape: f32[32,32], index: 17, kind: input, shape index: {}]   ;;  %s6194_s18 = inlined_call_operand.hbm [shape: f32[1,32], index: 18, kind: input, shape index: {}]   ;;  %s6195_s19 = inlined_call_operand.hbm [shape: f32[1,32], index: 19, kind: input, shape index: {}]   ;;  %s6196_s20 = inlined_call_operand.hbm [shape: f32[1,32], index: 20, kind: input, shape index: {}]   ;;  %s6197_s21 = inlined_call_operand.hbm [shape: f32[32,32], index: 21, kind: input, shape index: {}]   ;;  %s6198_s22 = inlined_call_operand.hbm [shape: f32[1,32], index: 22, kind: input, shape index: {}]   ;;  %s6199_s23 = inlined_call_operand.vmem [shape: f32[32,1], index: 23, kind: input, shape index: {}]   ;;  %s6200_s24 = inlined_call_operand.<no memory space> [shape: f32[1,1], index: 24, kind: input, shape index: {}]   ;;  %s6201_s25 = inlined_call_operand.vmem [shape: f32[2,1], index: 25, kind: output, shape index: {}]  }
   0x1   :  { %6249 = sst [smem:[#allocation160_spill]] %s6176_s0  ;;  %v30_v0 = vstv %s6200_s24 }
   0x2   :  { %6250 = sst [smem:[#allocation161_spill]] %s6177_s1  ;;  %31 = vst [vmem:[#allocation4] sm:$0x1] %v30_v0 }
   0x3   :  { %6251 = sst [smem:[#allocation162_spill]] %s6178_s2 }
   0x4   :  { %6252 = sst [smem:[#allocation163_spill]] %s6179_s3 }
   0x5   :  { %6253 = sst [smem:[#allocation164_spill]] %s6180_s4 }
   0x6   :  { %6254 = sst [smem:[#allocation165_spill]] %s6181_s5 }
   0x7   :  { %6255 = sst [smem:[#allocation166_spill]] %s6182_s6 }
   0x8   :  { %6256 = sst [smem:[#allocation167_spill]] %s6183_s7 }
   0x9   :  { %6257 = sst [smem:[#allocation168_spill]] %s6184_s8 }
   0xa   :  { %6258 = sst [smem:[#allocation169_spill]] %s6185_s9 }
   0xb   :  { %6259 = sst [smem:[#allocation170_spill]] %s6201_s25 }
   0xc   :  { %32 = vsyncpa [#allocation6], 0 }
   0xd   :  { %33 = vsyncpa [#allocation8], 0 }
   0xe   :  { %34 = vsyncpa [#allocation11], 0 }
   0xf   :  { %35 = vsyncpa [#allocation14], 0 }
  0x10   :  { %36 = vsyncpa [#allocation17], 0 }
  0x11   :  { %37 = vsyncpa [#allocation20], 0 }
  0x12   :  { %38 = vsyncpa [#allocation23], 0 }
  0x13   :  { %39 = vsyncpa [#allocation26], 0 }
  0x14   :  { %40 = vsyncpa [#allocation29], 0 }
  0x15   :  { %41 = vsyncpa [#allocation32], 0 }
  0x16   :  { %42 = vsyncpa [#allocation35], 0  ;;  %s4599_s6 = smov [#allocation7]   ;;  %s4600_s7 = smov [#allocation10]  }
  0x17   :  { %s64_s30 = sshll.u32 %s4599_s6, 4  ;;  %s87_s3 = sshll.u32 %s4600_s7, 4  ;;  %s65_s30 = int_to_ptr.vmem [resolvable:$true] %s64_s30  ;;  %s88_s3 = int_to_ptr.vmem [resolvable:$true] %s87_s3 }
  0x18   :  { %s6260_s1 = sld [smem:[#allocation163_spill]] }
  0x1e   :  { %s4129_s8 = scalar_lea.hbm %s6260_s1, 256 }
  0x1f   :  { %p4130_p0 = scmp.ne.s32.totalorder %s6260_s1, %s4129_s8  ;;  %p4133_p1 = scmp.lt.u32.totalorder %s4129_s8, %s6260_s1 }
  0x21   :  { %p4135_p2 = pnand %p4133_p1, %p4130_p0 }
  0x23   :  { %4138 = shalt.err (!%p4135_p2)
}
  0x24   :  { %s4139_s5 = scalar_lea.vmem %s65_s30, 256  ;;  %p4144_p4 = scmp.lt.s32.totalorder %s65_s30, %s65_s30 }
  0x25   :  { %p4140_p3 = scmp.ne.s32.totalorder %s65_s30, %s4139_s5  ;;  %p4145_p5 = scmp.lt.s32.totalorder %s4139_s5, %s4139_s5 }
  0x27   :  { %p4146_p6 = por %p4145_p5, %p4144_p4 }
  0x29   :  { %p4147_p7 = pnand %p4146_p6, %p4140_p3 }
  0x2b   :  { %4150 = shalt.err (!%p4147_p7)
}
  0x2c   :  { %s6212_s0 = smov 128   ;;  %s6214_s29 = smov 8  }
  0x2d   :  { %70 = dma.hbm_to_vmem [thread:$0]  %s6260_s1, 256, %s65_s30, [#allocation8], %s6212_s0, %s6212_s0, %s6214_s29  }
  0x2e   :  { %s6261_s24 = sld [smem:[#allocation165_spill]] }
  0x34   :  { %s4151_s8 = scalar_lea.hbm %s6261_s24, 32 }
  0x35   :  { %p4152_p8 = scmp.ne.s32.totalorder %s6261_s24, %s4151_s8  ;;  %p4155_p9 = scmp.lt.u32.totalorder %s4151_s8, %s6261_s24 }
  0x37   :  { %p4157_p10 = pnand %p4155_p9, %p4152_p8 }
  0x39   :  { %4160 = shalt.err (!%p4157_p10)
}
  0x3a   :  { %s4161_s5 = scalar_lea.vmem %s88_s3, 32  ;;  %p4166_p12 = scmp.lt.s32.totalorder %s88_s3, %s88_s3 }
  0x3b   :  { %p4162_p11 = scmp.ne.s32.totalorder %s88_s3, %s4161_s5  ;;  %p4167_p13 = scmp.lt.s32.totalorder %s4161_s5, %s4161_s5 }
  0x3d   :  { %p4168_p0 = por %p4167_p13, %p4166_p12 }
  0x3f   :  { %p4169_p1 = pnand %p4168_p0, %p4162_p11 }
  0x41   :  { %4172 = shalt.err (!%p4169_p1)
}
  0x42   :  { %90 = dma.hbm_to_vmem [thread:$0]  %s6261_s24, 32, %s88_s3, [#allocation11]  }
  0x43   :  { %s4603_s2 = smov [#allocation13]   ;;  %s4604_s7 = smov [#allocation16]  }
  0x44   :  { %s106_s6 = sshll.u32 %s4603_s2, 4  ;;  %s129_s26 = sshll.u32 %s4604_s7, 4  ;;  %s107_s6 = int_to_ptr.vmem [resolvable:$true] %s106_s6  ;;  %s130_s26 = int_to_ptr.vmem [resolvable:$true] %s129_s26 }
  0x45   :  { %s6262_s4 = sld [smem:[#allocation167_spill]] }
  0x4b   :  { %s4173_s28 = scalar_lea.hbm %s6262_s4, 2560 }
  0x4c   :  { %p4174_p2 = scmp.ne.s32.totalorder %s6262_s4, %s4173_s28  ;;  %p4177_p3 = scmp.lt.u32.totalorder %s4173_s28, %s6262_s4 }
  0x4e   :  { %p4179_p4 = pnand %p4177_p3, %p4174_p2 }
  0x50   :  { %4182 = shalt.err (!%p4179_p4)
}
  0x51   :  { %s4183_s3 = scalar_lea.vmem %s107_s6, 2560  ;;  %p4188_p6 = scmp.lt.s32.totalorder %s107_s6, %s107_s6 }
  0x52   :  { %p4184_p5 = scmp.ne.s32.totalorder %s107_s6, %s4183_s3  ;;  %p4189_p7 = scmp.lt.s32.totalorder %s4183_s3, %s4183_s3 }
  0x54   :  { %p4190_p8 = por %p4189_p7, %p4188_p6 }
  0x56   :  { %p4191_p9 = pnand %p4190_p8, %p4184_p5 }
  0x58   :  { %4194 = shalt.err (!%p4191_p9)
}
  0x59   :  { %s6263_s24 = smov 8   ;;  %s6264_s30 = smov 128  }
  0x5a   :  { %112 = dma.hbm_to_vmem [thread:$0]  %s6262_s4, 2560, %s107_s6, [#allocation14], %s6264_s30, %s6264_s30, %s6263_s24  }
  0x5b   :  { %s6265_s29 = sld [smem:[#allocation169_spill]] }
  0x61   :  { %s4195_s8 = scalar_lea.hbm %s6265_s29, 128 }
  0x62   :  { %p4196_p10 = scmp.ne.s32.totalorder %s6265_s29, %s4195_s8  ;;  %p4199_p11 = scmp.lt.u32.totalorder %s4195_s8, %s6265_s29 }
  0x64   :  { %p4201_p12 = pnand %p4199_p11, %p4196_p10 }
  0x66   :  { %4204 = shalt.err (!%p4201_p12)
}
  0x67   :  { %s4205_s3 = scalar_lea.vmem %s130_s26, 128  ;;  %p4210_p0 = scmp.lt.s32.totalorder %s130_s26, %s130_s26 }
  0x68   :  { %p4206_p13 = scmp.ne.s32.totalorder %s130_s26, %s4205_s3  ;;  %p4211_p1 = scmp.lt.s32.totalorder %s4205_s3, %s4205_s3 }
  0x6a   :  { %p4212_p2 = por %p4211_p1, %p4210_p0 }
  0x6c   :  { %p4213_p3 = pnand %p4212_p2, %p4206_p13 }
  0x6e   :  { %4216 = shalt.err (!%p4213_p3)
}
  0x6f   :  { %132 = dma.hbm_to_vmem [thread:$0]  %s6265_s29, 128, %s130_s26, [#allocation17]  }
  0x70   :  { %s4605_s1 = smov [#allocation19]   ;;  %s4606_s0 = smov [#allocation22]  }
  0x71   :  { %s149_s2 = sshll.u32 %s4605_s1, 4  ;;  %s169_s7 = sshll.u32 %s4606_s0, 4  ;;  %s150_s2 = int_to_ptr.vmem [resolvable:$true] %s149_s2  ;;  %s170_s7 = int_to_ptr.vmem [resolvable:$true] %s169_s7 }
  0x72   :  { %s4217_s28 = scalar_lea.hbm %s6187_s11, 16 }
  0x73   :  { %p4218_p4 = scmp.ne.s32.totalorder %s6187_s11, %s4217_s28  ;;  %p4221_p5 = scmp.lt.u32.totalorder %s4217_s28, %s6187_s11 }
  0x75   :  { %p4223_p6 = pnand %p4221_p5, %p4218_p4 }
  0x77   :  { %4226 = shalt.err (!%p4223_p6)
}
  0x78   :  { %s4227_s26 = scalar_lea.vmem %s150_s2, 16  ;;  %s4231_s29 = scalar_lea.vmem %s150_s2, 32 }
  0x79   :  { %p4228_p7 = scmp.ne.s32.totalorder %s150_s2, %s4227_s26  ;;  %p4232_p8 = scmp.lt.s32.totalorder %s150_s2, %s150_s2 }
  0x7a   :  { %p4233_p9 = scmp.lt.s32.totalorder %s4231_s29, %s4227_s26 }
  0x7c   :  { %p4234_p10 = por %p4233_p9, %p4232_p8 }
  0x7e   :  { %p4235_p11 = pnand %p4234_p10, %p4228_p7 }
  0x80   :  { %4238 = shalt.err (!%p4235_p11)
}
  0x81   :  { %152 = dma.hbm_to_vmem [thread:$0]  %s6187_s11, 16, %s150_s2, [#allocation20]  }
  0x82   :  { %s4239_s8 = scalar_lea.hbm %s6189_s13, 128 }
  0x83   :  { %p4240_p12 = scmp.ne.s32.totalorder %s6189_s13, %s4239_s8  ;;  %p4243_p13 = scmp.lt.u32.totalorder %s4239_s8, %s6189_s13 }
  0x85   :  { %p4245_p0 = pnand %p4243_p13, %p4240_p12 }
  0x87   :  { %4248 = shalt.err (!%p4245_p0)
}
  0x88   :  { %s4249_s5 = scalar_lea.vmem %s170_s7, 128  ;;  %p4254_p2 = scmp.lt.s32.totalorder %s170_s7, %s170_s7 }
  0x89   :  { %p4250_p1 = scmp.ne.s32.totalorder %s170_s7, %s4249_s5  ;;  %p4255_p3 = scmp.lt.s32.totalorder %s4249_s5, %s4249_s5 }
  0x8b   :  { %p4256_p4 = por %p4255_p3, %p4254_p2 }
  0x8d   :  { %p4257_p5 = pnand %p4256_p4, %p4250_p1 }
  0x8f   :  { %4260 = shalt.err (!%p4257_p5)
}
  0x90   :  { %172 = dma.hbm_to_vmem [thread:$0]  %s6189_s13, 128, %s170_s7, [#allocation23]  }
  0x91   :  { %s4607_s3 = smov [#allocation25]   ;;  %s4608_s29 = smov [#allocation28]  }
  0x92   :  { %s189_s26 = sshll.u32 %s4607_s3, 4  ;;  %s211_s6 = sshll.u32 %s4608_s29, 4  ;;  %s190_s26 = int_to_ptr.vmem [resolvable:$true] %s189_s26  ;;  %s212_s6 = int_to_ptr.vmem [resolvable:$true] %s211_s6 }
  0x93   :  { %s4261_s0 = scalar_lea.hbm %s6192_s16, 128 }
  0x94   :  { %p4262_p6 = scmp.ne.s32.totalorder %s6192_s16, %s4261_s0  ;;  %p4265_p7 = scmp.lt.u32.totalorder %s4261_s0, %s6192_s16 }
  0x96   :  { %p4267_p8 = pnand %p4265_p7, %p4262_p6 }
  0x98   :  { %4270 = shalt.err (!%p4267_p8)
}
  0x99   :  { %s4271_s13 = scalar_lea.vmem %s190_s26, 128  ;;  %p4276_p10 = scmp.lt.s32.totalorder %s190_s26, %s190_s26 }
  0x9a   :  { %p4272_p9 = scmp.ne.s32.totalorder %s190_s26, %s4271_s13  ;;  %p4277_p11 = scmp.lt.s32.totalorder %s4271_s13, %s4271_s13 }
  0x9c   :  { %p4278_p12 = por %p4277_p11, %p4276_p10 }
  0x9e   :  { %p4279_p13 = pnand %p4278_p12, %p4272_p9 }
  0xa0   :  { %4282 = shalt.err (!%p4279_p13)
}
  0xa1   :  { %192 = dma.hbm_to_vmem [thread:$0]  %s6192_s16, 128, %s190_s26, [#allocation26]  }
  0xa2   :  { %s4283_s2 = scalar_lea.hbm %s6194_s18, 16 }
  0xa3   :  { %p4284_p0 = scmp.ne.s32.totalorder %s6194_s18, %s4283_s2  ;;  %p4287_p1 = scmp.lt.u32.totalorder %s4283_s2, %s6194_s18 }
  0xa5   :  { %p4289_p2 = pnand %p4287_p1, %p4284_p0 }
  0xa7   :  { %4292 = shalt.err (!%p4289_p2)
}
  0xa8   :  { %s4293_s0 = scalar_lea.vmem %s212_s6, 16  ;;  %s4297_s8 = scalar_lea.vmem %s212_s6, 32 }
  0xa9   :  { %p4294_p3 = scmp.ne.s32.totalorder %s212_s6, %s4293_s0  ;;  %p4298_p4 = scmp.lt.s32.totalorder %s212_s6, %s212_s6 }
  0xaa   :  { %p4299_p5 = scmp.lt.s32.totalorder %s4297_s8, %s4293_s0 }
  0xac   :  { %p4300_p6 = por %p4299_p5, %p4298_p4 }
  0xae   :  { %p4301_p7 = pnand %p4300_p6, %p4294_p3 }
  0xb0   :  { %4304 = shalt.err (!%p4301_p7)
}
  0xb1   :  { %214 = dma.hbm_to_vmem [thread:$0]  %s6194_s18, 16, %s212_s6, [#allocation29]  }
  0xb2   :  { %s4609_s25 = smov [#allocation31]   ;;  %s4610_s28 = smov [#allocation5]  }
  0xb3   :  { %s231_s27 = sshll.u32 %s4609_s25, 4  ;;  %s52_s13 = sshll.u32 %s4610_s28, 4  ;;  %s232_s27 = int_to_ptr.vmem [resolvable:$true] %s231_s27  ;;  %s4907_s13 = int_to_ptr.vmem [resolvable:$true] %s52_s13 }
  0xb4   :  { %s4305_s5 = scalar_lea.hbm %s6196_s20, 16 }
  0xb5   :  { %p4306_p8 = scmp.ne.s32.totalorder %s6196_s20, %s4305_s5  ;;  %p4309_p9 = scmp.lt.u32.totalorder %s4305_s5, %s6196_s20 }
  0xb7   :  { %p4311_p10 = pnand %p4309_p9, %p4306_p8 }
  0xb9   :  { %4314 = shalt.err (!%p4311_p10)
}
  0xba   :  { %s4315_s18 = scalar_lea.vmem %s232_s27, 16  ;;  %s4319_s6 = scalar_lea.vmem %s232_s27, 32 }
  0xbb   :  { %p4316_p11 = scmp.ne.s32.totalorder %s232_s27, %s4315_s18  ;;  %p4320_p12 = scmp.lt.s32.totalorder %s232_s27, %s232_s27 }
  0xbc   :  { %p4321_p13 = scmp.lt.s32.totalorder %s4319_s6, %s4315_s18 }
  0xbe   :  { %p4322_p0 = por %p4321_p13, %p4320_p12 }
  0xc0   :  { %p4323_p1 = pnand %p4322_p0, %p4316_p11 }
  0xc2   :  { %4326 = shalt.err (!%p4323_p1)
}
  0xc3   :  { %234 = dma.hbm_to_vmem [thread:$0]  %s6196_s20, 16, %s232_s27, [#allocation32]  }
  0xc4   :  { %s6266_s16 = sld [smem:[#allocation162_spill]] }
  0xca   :  { %s4327_s26 = scalar_lea.hbm %s6266_s16, 256 }
  0xcb   :  { %p4328_p2 = scmp.ne.s32.totalorder %s6266_s16, %s4327_s26  ;;  %p4331_p3 = scmp.lt.u32.totalorder %s4327_s26, %s6266_s16 }
  0xcd   :  { %p4333_p4 = pnand %p4331_p3, %p4328_p2 }
  0xcf   :  { %4336 = shalt.err (!%p4333_p4)
}
  0xd0   :  { %s4337_s5 = scalar_lea.vmem %s4907_s13, 256  ;;  %p4342_p6 = scmp.lt.s32.totalorder %s4907_s13, %s4907_s13 }
  0xd1   :  { %p4338_p5 = scmp.ne.s32.totalorder %s4907_s13, %s4337_s5  ;;  %p4343_p7 = scmp.lt.s32.totalorder %s4337_s5, %s4337_s5 }
  0xd3   :  { %p4344_p8 = por %p4343_p7, %p4342_p6 }
  0xd5   :  { %p4345_p9 = pnand %p4344_p8, %p4338_p5 }
  0xd7   :  { %4348 = shalt.err (!%p4345_p9)
}
  0xd8   :  { %58 = dma.hbm_to_vmem [thread:$0]  %s6266_s16, 256, %s4907_s13, [#allocation6], %s6264_s30, %s6264_s30, %s6263_s24  }
  0xd9   :  { %s4611_s11 = smov [#allocation9]   ;;  %s4612_s3 = smov [#allocation12]  }
  0xda   :  { %s77_s2 = sshll.u32 %s4611_s11, 4  ;;  %s97_s29 = sshll.u32 %s4612_s3, 4  ;;  %s78_s2 = int_to_ptr.vmem [resolvable:$true] %s77_s2  ;;  %s98_s29 = int_to_ptr.vmem [resolvable:$true] %s97_s29 }
  0xdb   :  { %s6267_s4 = sld [smem:[#allocation164_spill]] }
  0xe1   :  { %s4349_s1 = scalar_lea.hbm %s6267_s4, 32 }
  0xe2   :  { %p4350_p10 = scmp.ne.s32.totalorder %s6267_s4, %s4349_s1  ;;  %p4353_p11 = scmp.lt.u32.totalorder %s4349_s1, %s6267_s4 }
  0xe4   :  { %p4355_p12 = pnand %p4353_p11, %p4350_p10 }
  0xe6   :  { %4358 = shalt.err (!%p4355_p12)
}
  0xe7   :  { %s4359_s13 = scalar_lea.vmem %s78_s2, 32  ;;  %p4364_p0 = scmp.lt.s32.totalorder %s78_s2, %s78_s2 }
  0xe8   :  { %p4360_p13 = scmp.ne.s32.totalorder %s78_s2, %s4359_s13  ;;  %p4365_p1 = scmp.lt.s32.totalorder %s4359_s13, %s4359_s13 }
  0xea   :  { %p4366_p2 = por %p4365_p1, %p4364_p0 }
  0xec   :  { %p4367_p3 = pnand %p4366_p2, %p4360_p13 }
  0xee   :  { %4370 = shalt.err (!%p4367_p3)
}
  0xef   :  { %80 = dma.hbm_to_vmem [thread:$0]  %s6267_s4, 32, %s78_s2, [#allocation8]  }
  0xf0   :  { %s6268_s5 = sld [smem:[#allocation166_spill]] }
  0xf6   :  { %s4371_s20 = scalar_lea.hbm %s6268_s5, 32 }
  0xf7   :  { %p4372_p4 = scmp.ne.s32.totalorder %s6268_s5, %s4371_s20  ;;  %p4375_p5 = scmp.lt.u32.totalorder %s4371_s20, %s6268_s5 }
  0xf9   :  { %p4377_p6 = pnand %p4375_p5, %p4372_p4 }
  0xfb   :  { %4380 = shalt.err (!%p4377_p6)
}
  0xfc   :  { %s4381_s6 = scalar_lea.vmem %s98_s29, 32  ;;  %p4386_p8 = scmp.lt.s32.totalorder %s98_s29, %s98_s29 }
  0xfd   :  { %p4382_p7 = scmp.ne.s32.totalorder %s98_s29, %s4381_s6  ;;  %p4387_p9 = scmp.lt.s32.totalorder %s4381_s6, %s4381_s6 }
  0xff   :  { %p4388_p10 = por %p4387_p9, %p4386_p8 }
 0x101   :  { %p4389_p11 = pnand %p4388_p10, %p4382_p7 }
 0x103   :  { %4392 = shalt.err (!%p4389_p11)
}
 0x104   :  { %100 = dma.hbm_to_vmem [thread:$0]  %s6268_s5, 32, %s98_s29, [#allocation11]  }
 0x105   :  { %s4613_s1 = smov [#allocation15]   ;;  %s4614_s8 = smov [#allocation18]  }
 0x106   :  { %s119_s0 = sshll.u32 %s4613_s1, 4  ;;  %s139_s26 = sshll.u32 %s4614_s8, 4  ;;  %s120_s0 = int_to_ptr.vmem [resolvable:$true] %s119_s0  ;;  %s140_s26 = int_to_ptr.vmem [resolvable:$true] %s139_s26 }
 0x107   :  { %s6269_s16 = sld [smem:[#allocation168_spill]] }
 0x10d   :  { %s4393_s28 = scalar_lea.hbm %s6269_s16, 32 }
 0x10e   :  { %p4394_p12 = scmp.ne.s32.totalorder %s6269_s16, %s4393_s28  ;;  %p4397_p13 = scmp.lt.u32.totalorder %s4393_s28, %s6269_s16 }
 0x110   :  { %p4399_p0 = pnand %p4397_p13, %p4394_p12 }
 0x112   :  { %4402 = shalt.err (!%p4399_p0)
}
 0x113   :  { %s4403_s29 = scalar_lea.vmem %s120_s0, 32  ;;  %p4408_p2 = scmp.lt.s32.totalorder %s120_s0, %s120_s0 }
 0x114   :  { %p4404_p1 = scmp.ne.s32.totalorder %s120_s0, %s4403_s29  ;;  %p4409_p3 = scmp.lt.s32.totalorder %s4403_s29, %s4403_s29 }
 0x116   :  { %p4410_p4 = por %p4409_p3, %p4408_p2 }
 0x118   :  { %p4411_p5 = pnand %p4410_p4, %p4404_p1 }
 0x11a   :  { %4414 = shalt.err (!%p4411_p5)
}
 0x11b   :  { %122 = dma.hbm_to_vmem [thread:$0]  %s6269_s16, 32, %s120_s0, [#allocation14]  }
 0x11c   :  { %s4415_s6 = scalar_lea.hbm %s6186_s10, 16 }
 0x11d   :  { %p4416_p6 = scmp.ne.s32.totalorder %s6186_s10, %s4415_s6  ;;  %p4419_p7 = scmp.lt.u32.totalorder %s4415_s6, %s6186_s10 }
 0x11f   :  { %p4421_p8 = pnand %p4419_p7, %p4416_p6 }
 0x121   :  { %4424 = shalt.err (!%p4421_p8)
}
 0x122   :  { %s4425_s25 = scalar_lea.vmem %s140_s26, 16  ;;  %s4429_s13 = scalar_lea.vmem %s140_s26, 32 }
 0x123   :  { %p4426_p9 = scmp.ne.s32.totalorder %s140_s26, %s4425_s25  ;;  %p4430_p10 = scmp.lt.s32.totalorder %s140_s26, %s140_s26 }
 0x124   :  { %p4431_p11 = scmp.lt.s32.totalorder %s4429_s13, %s4425_s25 }
 0x126   :  { %p4432_p12 = por %p4431_p11, %p4430_p10 }
 0x128   :  { %p4433_p13 = pnand %p4432_p12, %p4426_p9 }
 0x12a   :  { %4436 = shalt.err (!%p4433_p13)
}
 0x12b   :  { %142 = dma.hbm_to_vmem [thread:$0]  %s6186_s10, 16, %s140_s26, [#allocation17]  }
 0x12c   :  { %s4615_s28 = smov [#allocation21]   ;;  %s4616_s9 = smov [#allocation24]  }
 0x12d   :  { %s159_s7 = sshll.u32 %s4615_s28, 4  ;;  %s179_s20 = sshll.u32 %s4616_s9, 4  ;;  %s160_s7 = int_to_ptr.vmem [resolvable:$true] %s159_s7  ;;  %s180_s20 = int_to_ptr.vmem [resolvable:$true] %s179_s20 }
 0x12e   :  { %s4437_s5 = scalar_lea.hbm %s6188_s12, 16 }
 0x12f   :  { %p4438_p0 = scmp.ne.s32.totalorder %s6188_s12, %s4437_s5  ;;  %p4441_p1 = scmp.lt.u32.totalorder %s4437_s5, %s6188_s12 }
 0x131   :  { %p4443_p2 = pnand %p4441_p1, %p4438_p0 }
 0x133   :  { %4446 = shalt.err (!%p4443_p2)
}
 0x134   :  { %s4447_s10 = scalar_lea.vmem %s160_s7, 16  ;;  %s4451_s26 = scalar_lea.vmem %s160_s7, 32 }
 0x135   :  { %p4448_p3 = scmp.ne.s32.totalorder %s160_s7, %s4447_s10  ;;  %p4452_p4 = scmp.lt.s32.totalorder %s160_s7, %s160_s7 }
 0x136   :  { %p4453_p5 = scmp.lt.s32.totalorder %s4451_s26, %s4447_s10 }
 0x138   :  { %p4454_p6 = por %p4453_p5, %p4452_p4 }
 0x13a   :  { %p4455_p7 = pnand %p4454_p6, %p4448_p3 }
 0x13c   :  { %4458 = shalt.err (!%p4455_p7)
}
 0x13d   :  { %162 = dma.hbm_to_vmem [thread:$0]  %s6188_s12, 16, %s160_s7, [#allocation20]  }
 0x13e   :  { %s4459_s25 = scalar_lea.hbm %s6190_s14, 128 }
 0x13f   :  { %p4460_p8 = scmp.ne.s32.totalorder %s6190_s14, %s4459_s25  ;;  %p4463_p9 = scmp.lt.u32.totalorder %s4459_s25, %s6190_s14 }
 0x141   :  { %p4465_p10 = pnand %p4463_p9, %p4460_p8 }
 0x143   :  { %4468 = shalt.err (!%p4465_p10)
}
 0x144   :  { %s4469_s9 = scalar_lea.vmem %s180_s20, 128  ;;  %p4474_p12 = scmp.lt.s32.totalorder %s180_s20, %s180_s20 }
 0x145   :  { %p4470_p11 = scmp.ne.s32.totalorder %s180_s20, %s4469_s9  ;;  %p4475_p13 = scmp.lt.s32.totalorder %s4469_s9, %s4469_s9 }
 0x147   :  { %p4476_p0 = por %p4475_p13, %p4474_p12 }
 0x149   :  { %p4477_p1 = pnand %p4476_p0, %p4470_p11 }
 0x14b   :  { %4480 = shalt.err (!%p4477_p1)
}
 0x14c   :  { %182 = dma.hbm_to_vmem [thread:$0]  %s6190_s14, 128, %s180_s20, [#allocation23]  }
 0x14d   :  { %s4617_s27 = smov [#allocation27]   ;;  %s4618_s5 = smov [#allocation30]  }
 0x14e   :  { %s198_s29 = sshll.u32 %s4617_s27, 4  ;;  %s221_s11 = sshll.u32 %s4618_s5, 4  ;;  %s199_s29 = int_to_ptr.vmem [resolvable:$true] %s198_s29  ;;  %s222_s11 = int_to_ptr.vmem [resolvable:$true] %s221_s11 }
 0x14f   :  { %s4481_s6 = scalar_lea.hbm %s6193_s17, 512 }
 0x150   :  { %p4482_p2 = scmp.ne.s32.totalorder %s6193_s17, %s4481_s6  ;;  %p4485_p3 = scmp.lt.u32.totalorder %s4481_s6, %s6193_s17 }
 0x152   :  { %p4487_p4 = pnand %p4485_p3, %p4482_p2 }
 0x154   :  { %4490 = shalt.err (!%p4487_p4)
}
 0x155   :  { %s4491_s14 = scalar_lea.vmem %s199_s29, 512  ;;  %p4496_p6 = scmp.lt.s32.totalorder %s199_s29, %s199_s29 }
 0x156   :  { %p4492_p5 = scmp.ne.s32.totalorder %s199_s29, %s4491_s14  ;;  %p4497_p7 = scmp.lt.s32.totalorder %s4491_s14, %s4491_s14 }
 0x158   :  { %p4498_p8 = por %p4497_p7, %p4496_p6 }
 0x15a   :  { %p4499_p9 = pnand %p4498_p8, %p4492_p5 }
 0x15c   :  { %4502 = shalt.err (!%p4499_p9)
}
 0x15d   :  { %204 = dma.hbm_to_vmem [thread:$0]  %s6193_s17, 512, %s199_s29, [#allocation26], %s6264_s30, %s6264_s30, %s6263_s24  }
 0x15e   :  { %s4503_s13 = scalar_lea.hbm %s6195_s19, 16 }
 0x15f   :  { %p4504_p10 = scmp.ne.s32.totalorder %s6195_s19, %s4503_s13  ;;  %p4507_p11 = scmp.lt.u32.totalorder %s4503_s13, %s6195_s19 }
 0x161   :  { %p4509_p12 = pnand %p4507_p11, %p4504_p10 }
 0x163   :  { %4512 = shalt.err (!%p4509_p12)
}
 0x164   :  { %s4513_s12 = scalar_lea.vmem %s222_s11, 16  ;;  %s4517_s7 = scalar_lea.vmem %s222_s11, 32 }
 0x165   :  { %p4514_p13 = scmp.ne.s32.totalorder %s222_s11, %s4513_s12  ;;  %p4518_p0 = scmp.lt.s32.totalorder %s222_s11, %s222_s11 }
 0x166   :  { %p4519_p1 = scmp.lt.s32.totalorder %s4517_s7, %s4513_s12 }
 0x168   :  { %p4520_p2 = por %p4519_p1, %p4518_p0 }
 0x16a   :  { %p4521_p3 = pnand %p4520_p2, %p4514_p13 }
 0x16c   :  { %4524 = shalt.err (!%p4521_p3)
}
 0x16d   :  { %224 = dma.hbm_to_vmem [thread:$0]  %s6195_s19, 16, %s222_s11, [#allocation29]  }
 0x16e   :  { %s4619_s29 = smov [#allocation33]   ;;  %s4620_s3 = smov [#allocation34]  }
 0x16f   :  { %s240_s5 = sshll.u32 %s4619_s29, 4  ;;  %s253_s18 = sshll.u32 %s4620_s3, 4  ;;  %s241_s5 = int_to_ptr.vmem [resolvable:$true] %s240_s5  ;;  %s254_s18 = int_to_ptr.vmem [resolvable:$true] %s253_s18 }
 0x170   :  { %s4525_s26 = scalar_lea.hbm %s6197_s21, 512 }
 0x171   :  { %p4526_p4 = scmp.ne.s32.totalorder %s6197_s21, %s4525_s26  ;;  %p4529_p5 = scmp.lt.u32.totalorder %s4525_s26, %s6197_s21 }
 0x173   :  { %p4531_p6 = pnand %p4529_p5, %p4526_p4 }
 0x175   :  { %4534 = shalt.err (!%p4531_p6)
}
 0x176   :  { %s4535_s19 = scalar_lea.vmem %s241_s5, 512  ;;  %p4540_p8 = scmp.lt.s32.totalorder %s241_s5, %s241_s5 }
 0x177   :  { %p4536_p7 = scmp.ne.s32.totalorder %s241_s5, %s4535_s19  ;;  %p4541_p9 = scmp.lt.s32.totalorder %s4535_s19, %s4535_s19 }
 0x179   :  { %p4542_p10 = por %p4541_p9, %p4540_p8 }
 0x17b   :  { %p4543_p11 = pnand %p4542_p10, %p4536_p7 }
 0x17d   :  { %4546 = shalt.err (!%p4543_p11)
}
 0x17e   :  { %246 = dma.hbm_to_vmem [thread:$0]  %s6197_s21, 512, %s241_s5, [#allocation32], %s6264_s30, %s6264_s30, %s6263_s24  }
 0x17f   :  { %s4547_s13 = scalar_lea.hbm %s6198_s22, 16 }
 0x180   :  { %p4548_p12 = scmp.ne.s32.totalorder %s6198_s22, %s4547_s13  ;;  %p4551_p13 = scmp.lt.u32.totalorder %s4547_s13, %s6198_s22 }
 0x182   :  { %p4553_p0 = pnand %p4551_p13, %p4548_p12 }
 0x184   :  { %4556 = shalt.err (!%p4553_p0)
}
 0x185   :  { %s4557_s12 = scalar_lea.vmem %s254_s18, 16  ;;  %s4561_s7 = scalar_lea.vmem %s254_s18, 32 }
 0x186   :  { %p4558_p1 = scmp.ne.s32.totalorder %s254_s18, %s4557_s12  ;;  %p4562_p2 = scmp.lt.s32.totalorder %s254_s18, %s254_s18 }
 0x187   :  { %p4563_p3 = scmp.lt.s32.totalorder %s4561_s7, %s4557_s12 }
 0x189   :  { %p4564_p4 = por %p4563_p3, %p4562_p2 }
 0x18b   :  { %p4565_p5 = pnand %p4564_p4, %p4558_p1 }
 0x18d   :  { %4568 = shalt.err (!%p4565_p5)
}
 0x18e   :  { %256 = dma.hbm_to_vmem [thread:$0]  %s6198_s22, 16, %s254_s18, [#allocation35]  }
 0x18f   :  { %4569 = dma.done.wait [#allocation6], 256  }
 0x190   :  { %4570 = vsyncadd [#allocation6], 4294967040 }
 0x191   :  { %4571 = dma.done.wait [#allocation8], 288  }
 0x192   :  { %4572 = vsyncadd [#allocation8], 4294967008 }
 0x193   :  { %4573 = dma.done.wait [#allocation11], 64  }
 0x194   :  { %4574 = vsyncadd [#allocation11], 4294967232 }
 0x195   :  { %4575 = dma.done.wait [#allocation14], 2592  }
 0x196   :  { %4576 = vsyncadd [#allocation14], 4294964704 }
 0x197   :  { %4577 = dma.done.wait [#allocation17], 144  }
 0x198   :  { %4578 = vsyncadd [#allocation17], 4294967152 }
 0x199   :  { %4579 = dma.done.wait [#allocation20], 32  }
 0x19a   :  { %4580 = vsyncadd [#allocation20], 4294967264 }
 0x19b   :  { %4581 = dma.done.wait [#allocation23], 256  }
 0x19c   :  { %4582 = vsyncadd [#allocation23], 4294967040 }
 0x19d   :  { %4583 = dma.done.wait [#allocation26], 640  }
 0x19e   :  { %4584 = vsyncadd [#allocation26], 4294966656 }
 0x19f   :  { %4585 = dma.done.wait [#allocation29], 32  }
 0x1a0   :  { %4586 = vsyncadd [#allocation29], 4294967264 }
 0x1a1   :  { %4587 = dma.done.wait [#allocation32], 528  }
 0x1a2   :  { %4588 = vsyncadd [#allocation32], 4294966768 }
 0x1a3   :  { %4589 = dma.done.wait [#allocation35], 16  }
 0x1a4   :  { %4590 = vsyncadd [#allocation35], 4294967280  ;;  %s326_s22 = sld [smem:[#allocation0]]   ;;  %s4621_s27 = smov 1024   ;;  %v6216_v1 = vmov 0   ;;  %vm602_vm0 = vcmask 1043456   ;;  %v378_v33 = vlaneseq }
 0x1a5   :  { %338 = sst [smem:[#allocation37]] %s4621_s27  ;;  %4020 = vset.pattern.permute.xlu0 %v6216_v1  ;;  %s4623_s29 = smov 64   ;;  %vm595_vm1 = vcmask 97280   ;;  %vm4630_vm2 = vmmov 1   ;;  %v6273_v6 = vmov 0  ;;  %v6218_v24 = vmov 1  }
 0x1a6   :  { %340 = sst [smem:[#allocation37 + $0x1]] %s4621_s27  ;;  %s4624_s5 = smov 2   ;;  %vm5104_vm3 = vmpackc.low %vm602_vm0, %vm4630_vm2  ;;  %4021 = vset.pattern.permute.xlu1 %v6218_v24  ;;  %v6220_v32 = vmov 2   ;;  %v379_v34 = vshrl.u32 %v378_v33, 7  ;;  %vm546_vm4 = vcmask 261120   ;;  %vm771_vm5 = vcmask 1044480  }
 0x1a7   :  { %342 = sst [smem:[#allocation37 + $0x2]] %s6263_s24  ;;  %s4625_s3 = smov [#allocation2]   ;;  %v6274_v6 = vsel %vm5104_vm3, 4294967295, %v6273_v6  ;;  %vm765_vm6 = vcmask 39936   ;;  %vm850_vm7 = vcmask 130048   ;;  %vm943_vm8 = vcmask 257024  }
 0x1a8   :  { %344 = sst [smem:[#allocation37 + $0x3]] %s4623_s29  ;;  %s5074_s18 = sshll.u32 %s4625_s3, 4  ;;  %v5127_v35 = vsub.s32 2, %v379_v34  ;;  %v5129_v36 = vsub.s32 3, %v379_v34  ;;  %v5131_v37 = vsub.s32 4, %v379_v34  ;;  %v5133_v38 = vsub.s32 5, %v379_v34  ;;  %s335_s18 = int_to_ptr.vmem [resolvable:$true] %s5074_s18 }
 0x1a9   :  { %346 = sst [smem:[#allocation37 + $0x4]] %s6264_s30  ;;  %s4626_s10 = smov 512   ;;  %v5135_v40 = vsub.s32 6, %v379_v34  ;;  %v5137_v41 = vsub.s32 7, %v379_v34  ;;  %v5139_v43 = vsub.s32 0, %v379_v34  ;;  %v5141_v44 = vsub.s32 1, %v379_v34 }
 0x1aa   :  { %348 = sst [smem:[#allocation37 + $0x5]] %s4624_s5  ;;  %s3682_s6 = sshll.u32 %s326_s22, 26 }
 0x1ab   :  { %350 = sst [smem:[#allocation37 + $0x6]] %s4626_s10  ;;  %s5077_s26 = sadd.s32 134217728, %s3682_s6 }
 0x1ac   :  { %352 = sst [smem:[#allocation37 + $0x7]] %s4623_s29  ;;  %s4627_s2 = smov 4  }
 0x1ad   :  { %354 = sst [smem:[#allocation37 + $0x8]] %s4627_s2  ;;  %s4628_s4 = smov [#allocation3]  }
 0x1ae   :  { %s4629_s14 = smov [#allocation36]   ;;  %s4635_s7 = smov 96  }
 0x1af   :  { %356 = dma.general %s6191_s15, 16384, %s335_s18, %s4628_s4, %s4629_s14, [#allocation37], %s5077_s26, 0  }
 0x1b0   :  { %v5089_v2 = vld [vmem:[#allocation9] sm:$0x3]  ;;  %s6271_s8 = sld [smem:[#allocation161_spill]]  ;;  %s6272_s0 = sld [smem:[#allocation160_spill]]  ;;  %6275 = vst [vmem:[#allocation60_spill] sm:$0xff] %v6274_v6  ;;  %v5121_v13 = vld [vmem:[#allocation5 + $0x8] sm:$0xff] }
 0x1b1   :  { %6270 = vst [vmem:[#allocation59_spill] sm:$0xff] %v5089_v2  ;;  %v5108_v7 = vld [vmem:[#allocation5] sm:$0xff]  ;;  %v4030_v10 = vld [vmem:[#allocation13 + $0x4] ss:$8 sps:$4 sm:$0xff]   ;;  %6277 = vst [vmem:[#allocation62_spill] sm:$0xff] %v5121_v13  ;;  %s4636_s21 = smov 32  }
 0x1b2   :  { %6276 = vst [vmem:[#allocation61_spill] sm:$0xff] %v5108_v7  ;;  %3782 = vmatprep.mubr.msk.f32.mxu1 %vm595_vm1, %v5108_v7  ;;  %v4032_v11 = vld [vmem:[#allocation13] ss:$8 sps:$4 sm:$0xff]   ;;  %v4033_v12 = vld [vmem:[#allocation13 + $0x14] ss:$8 sps:$4 sm:$0xff]   ;;  %550 = vmatprep.subr.bf16.mxu0 %v4030_v10  ;;  %6278 = vst [vmem:[#allocation63_spill] sm:$0xff] %v5127_v35 }
 0x1b3   :  { %551 = vmatpush1.bf16.msra.mxu0 %v4032_v11  ;;  %v4035_v14 = vld [vmem:[#allocation13 + $0x10] ss:$8 sps:$4 sm:$0xff]   ;;  %v4036_v15 = vld [vmem:[#allocation13 + $0x24] ss:$8 sps:$4 sm:$0xff]   ;;  %v4038_v16 = vld [vmem:[#allocation13 + $0x20] ss:$8 sps:$4 sm:$0xff]  }
 0x1b4   :  { %552 = vmatprep.subr.bf16.mxu0 %v4033_v12  ;;  %v4039_v17 = vld [vmem:[#allocation13 + $0x34] ss:$8 sps:$4 sm:$0xff]   ;;  %v4041_v18 = vld [vmem:[#allocation13 + $0x30] ss:$8 sps:$4 sm:$0xff]   ;;  %v4042_v19 = vld [vmem:[#allocation13 + $0x44] ss:$8 sps:$4 sm:$0xff]  }
 0x1b5   :  { %v4044_v20 = vld [vmem:[#allocation13 + $0x40] ss:$8 sps:$4 sm:$0xff]   ;;  %v4045_v21 = vld [vmem:[#allocation13 + $0x54] ss:$8 sps:$4 sm:$0xff]   ;;  %v4047_v22 = vld [vmem:[#allocation13 + $0x50] ss:$8 sps:$4 sm:$0xff]  }
 0x1b6   :  { %v359_v3 = vld [vmem:[%s6271_s8] sm:$0xff]  ;;  %v5102_v5 = vld [vmem:[%s6272_s0 + $0x8] sm:$0xf]  ;;  %6279 = vst [vmem:[#allocation64_spill] sm:$0xff] %v5129_v36  ;;  %6280 = vst [vmem:[#allocation65_spill] sm:$0xff] %v5131_v37 }
 0x1b7   :  { %v5097_v4 = vld [vmem:[%s6272_s0] sm:$0xff]  ;;  %369 = vperm.xlu0 %4020, %v359_v3   ;;  %v360_v9 = vld [vmem:[%s6271_s8 + $0x8] sm:$0xff]  ;;  %553 = vmatpush1.bf16.msra.mxu0 %v4035_v14  ;;  %6281 = vst [vmem:[#allocation66_spill] sm:$0xff] %v5133_v38  ;;  %v990_v39 = vld [vmem:[#allocation22] sm:$0xff] }
 0x1b8   :  { %v3851_v8 = vpack.c.bf16 %v5102_v5, %v5097_v4  ;;  %554 = vmatprep.subr.bf16.mxu0 %v4036_v15  ;;  %v4048_v23 = vld [vmem:[#allocation13 + $0x64] ss:$8 sps:$4 sm:$0xff]   ;;  %v4050_v25 = vld [vmem:[#allocation13 + $0x60] ss:$8 sps:$4 sm:$0xff]   ;;  %v4051_v26 = vld [vmem:[#allocation13 + $0x74] ss:$8 sps:$4 sm:$0xff]   ;;  %v1003_v46 = vrot.slane %v990_v39, %v5127_v35  ;;  %v1007_v47 = vrot.slane %v990_v39, %v5129_v36  ;;  %v1011_v48 = vrot.slane %v990_v39, %v5131_v37 }
 0x1b9   :  { %v4053_v27 = vld [vmem:[#allocation13 + $0x70] ss:$8 sps:$4 sm:$0xff]   ;;  %v4054_v28 = vld [vmem:[#allocation13 + $0x84] ss:$8 sps:$4 sm:$0xff]   ;;  %v4056_v29 = vld [vmem:[#allocation13 + $0x80] ss:$8 sps:$4 sm:$0xff]   ;;  %v1015_v49 = vrot.slane %v990_v39, %v5133_v38  ;;  %v1019_v50 = vrot.slane %v990_v39, %v5135_v40  ;;  %v1023_v51 = vrot.slane %v990_v39, %v5137_v41  ;;  %v995_v58 = vrot.slane %v990_v39, %v5139_v43 }
 0x1ba   :  { %3853 = vmatprep.subr.msk.bf16.mxu1 %vm5104_vm3, %v3851_v8  ;;  %v4057_v30 = vld [vmem:[#allocation13 + $0x94] ss:$8 sps:$4 sm:$0xff]   ;;  %v4059_v31 = vld [vmem:[#allocation13 + $0x90] ss:$8 sps:$4 sm:$0xff]   ;;  %6282 = vst [vmem:[#allocation67_spill] sm:$0xff] %v5135_v40  ;;  %6283 = vst [vmem:[#allocation68_spill] sm:$0xff] %v5137_v41  ;;  %v999_v61 = vrot.slane %v990_v39, %v5141_v44 }
 0x1bb   :  { %3856 = vmatpush3.bf16.msk.msra.mxu1 %vm5104_vm3, %v3851_v8  ;;  %374 = vperm.xlu0 %4020, %v360_v9   ;;  %v1048_v42 = vld [vmem:[#allocation24] sm:$0xff]  ;;  %6284 = vst [vmem:[#allocation69_spill] sm:$0xff] %v5139_v43  ;;  %6285 = vst [vmem:[#allocation70_spill] sm:$0xff] %v5141_v44 }
 0x1bc   :  { %555 = vmatpush1.bf16.msra.mxu0 %v4038_v16  ;;  %v366_v45 = vld [vmem:[#allocation10] sm:$0x3]  ;;  %v1061_v52 = vrot.slane %v1048_v42, %v5127_v35  ;;  %v1065_v53 = vrot.slane %v1048_v42, %v5129_v36  ;;  %v392_v54 = vld [vmem:[#allocation12] sm:$0x3]  ;;  %v1069_v55 = vrot.slane %v1048_v42, %v5131_v37  ;;  %v1073_v56 = vrot.slane %v1048_v42, %v5133_v38 }
 0x1bd   :  { %556 = vmatprep.subr.bf16.mxu0 %v4039_v17  ;;  %v385_v57 = vrot.slane %v366_v45, %v5141_v44  ;;  %v1077_v59 = vrot.slane %v1048_v42, %v5135_v40  ;;  %v1081_v60 = vrot.slane %v1048_v42, %v5137_v41  ;;  %v5159_v62 = vrot.slane %v1048_v42, %v5139_v43 }
 0x1be   :  { %3783 = vmatmul.mubr.msk.f32.vlgmr.msra.gmra.mrb[0].mxu1 %vm595_vm1, %v5121_v13  ;;  %v5164_v0 = vrot.slane %v366_v45, %v5139_v43  ;;  %v5167_v3 = vrot.slane %v392_v54, %v5139_v43  ;;  %v401_v8 = vrot.slane %v392_v54, %v5141_v44  ;;  %v1057_v9 = vrot.slane %v1048_v42, %v5141_v44 }
 0x1bf   :  { %4024 = vset.pattern.permute.xlu0 %v6220_v32  ;;  %3787 = vmatprep.mubr.msk.f32.mxu1 %vm765_vm6, %v5097_v4 }
 0x1c0   :  { %557 = vmatpush1.bf16.msra.mxu0 %v4041_v18 }
 0x1c1   :  { %558 = vmatprep.subr.bf16.mxu0 %v4042_v19 }
 0x1c4   :  { %559 = vmatpush1.bf16.msra.mxu0 %v4044_v20 }
 0x1c5   :  { %560 = vmatprep.subr.bf16.mxu0 %v4045_v21 }
 0x1c8   :  { %561 = vmatpush1.bf16.msra.mxu0 %v4047_v22 }
 0x1c9   :  { %562 = vmatprep.subr.bf16.mxu0 %v4048_v23 }
 0x1cc   :  { %563 = vmatpush1.bf16.msra.mxu0 %v4050_v25 }
 0x1cd   :  { %564 = vmatprep.subr.bf16.mxu0 %v4051_v26 }
 0x1d0   :  { %565 = vmatpush1.bf16.msra.mxu0 %v4053_v27 }
 0x1d1   :  { %566 = vmatprep.subr.bf16.mxu0 %v4054_v28 }
 0x1d4   :  { %567 = vmatpush1.bf16.msra.mxu0 %v4056_v29 }
 0x1d5   :  { %568 = vmatprep.subr.bf16.mxu0 %v4057_v30 }
 0x1d8   :  { %569 = vmatpush1.bf16.msra.mxu0 %v4059_v31 }
 0x236   :  { %v5161_v63 = vpop.permute.xlu0 %369 }
 0x237   :  { %v1034_v10 = vmul.f32 %v1003_v46, %v5161_v63  ;;  %v1035_v11 = vmul.f32 %v1007_v47, %v5161_v63  ;;  %v1036_v12 = vmul.f32 %v1011_v48, %v5161_v63  ;;  %v1037_v14 = vmul.f32 %v1015_v49, %v5161_v63 }
 0x238   :  { %v1038_v15 = vmul.f32 %v1019_v50, %v5161_v63  ;;  %v1039_v16 = vmul.f32 %v1023_v51, %v5161_v63  ;;  %v389_v17 = vmul.f32 %v385_v57, %v5161_v63  ;;  %v1032_v18 = vmul.f32 %v995_v58, %v5161_v63 }
 0x239   :  { %v1092_v19 = vadd.f32 %v1061_v52, %v1034_v10  ;;  %v1093_v20 = vadd.f32 %v1065_v53, %v1035_v11  ;;  %v1094_v21 = vadd.f32 %v1069_v55, %v1036_v12  ;;  %v1095_v22 = vadd.f32 %v1073_v56, %v1037_v14 }
 0x23a   :  { %v1096_v23 = vadd.f32 %v1077_v59, %v1038_v15  ;;  %v1097_v25 = vadd.f32 %v1081_v60, %v1039_v16  ;;  %v375_v26 = vpop.permute.xlu0 %374  ;;  %v405_v27 = vadd.f32 %v401_v8, %v389_v17  ;;  %v1033_v28 = vmul.f32 %v999_v61, %v5161_v63 }
 0x23b   :  { %v1108_v29 = vmax.f32 %v1092_v19, 0.0  ;;  %v1109_v30 = vmax.f32 %v1093_v20, 0.0  ;;  %v1110_v31 = vmax.f32 %v1094_v21, 0.0  ;;  %v1111_v33 = vmax.f32 %v1095_v22, 0.0 }
 0x23c   :  { %v1112_v34 = vmax.f32 %v1096_v23, 0.0  ;;  %v1113_v39 = vmax.f32 %v1097_v25, 0.0  ;;  %v1042_v42 = vmul.f32 %v1003_v46, %v375_v26  ;;  %v1043_v45 = vmul.f32 %v1007_v47, %v375_v26 }
 0x23d   :  { %v1044_v54 = vmul.f32 %v1011_v48, %v375_v26  ;;  %v1045_v10 = vmul.f32 %v1015_v49, %v375_v26  ;;  %v1046_v11 = vmul.f32 %v1019_v50, %v375_v26  ;;  %v1047_v12 = vmul.f32 %v1023_v51, %v375_v26 }
 0x23e   :  { %v1100_v14 = vadd.f32 %v1061_v52, %v1042_v42  ;;  %v1101_v15 = vadd.f32 %v1065_v53, %v1043_v45  ;;  %v391_v16 = vmul.f32 %v385_v57, %v375_v26  ;;  %v409_v1 = vmax.f32 %v405_v27, 0.0 }
 0x23f   :  { %v1102_v17 = vadd.f32 %v1069_v55, %v1044_v54  ;;  %v1103_v24 = vadd.f32 %v1073_v56, %v1045_v10  ;;  %v1104_v32 = vadd.f32 %v1077_v59, %v1046_v11  ;;  %v1105_v19 = vadd.f32 %v1081_v60, %v1047_v12  ;;  %v434_v54 = vld [vmem:[#allocation15] sm:$0x3] }
 0x240   :  { %v1116_v20 = vmax.f32 %v1100_v14, 0.0  ;;  %v1117_v21 = vmax.f32 %v1101_v15, 0.0  ;;  %v407_v22 = vadd.f32 %v401_v8, %v391_v16  ;;  %v1040_v2 = vmul.f32 %v995_v58, %v375_v26 }
 0x241   :  { %v1118_v23 = vmax.f32 %v1102_v17, 0.0  ;;  %v1119_v25 = vmax.f32 %v1103_v24, 0.0  ;;  %v1120_v46 = vmax.f32 %v1104_v32, 0.0  ;;  %v1121_v47 = vmax.f32 %v1105_v19, 0.0 }
 0x242   :  { %v5180_v48 = vpack.c.bf16 %v1116_v20, %v1108_v29  ;;  %v5182_v49 = vpack.c.bf16 %v1117_v21, %v1109_v30  ;;  %v411_v50 = vmax.f32 %v407_v22, 0.0  ;;  %v1041_v51 = vmul.f32 %v999_v61, %v375_v26 }
 0x243   :  { %v5184_v52 = vpack.c.bf16 %v1118_v23, %v1110_v31  ;;  %v5186_v53 = vpack.c.bf16 %v1119_v25, %v1111_v33  ;;  %v5188_v55 = vpack.c.bf16 %v1120_v46, %v1112_v34  ;;  %v5190_v56 = vpack.c.bf16 %v1121_v47, %v1113_v39  ;;  %v593_v25 = vld [vmem:[#allocation16] sm:$0x1f] }
 0x244   :  { %v413_v57 = vpack.c.bf16 %v411_v50, %v409_v1  ;;  %v1090_v58 = vadd.f32 %v5159_v62, %v1032_v18  ;;  %v1091_v24 = vadd.f32 %v1057_v9, %v1033_v28  ;;  %v1098_v32 = vadd.f32 %v5159_v62, %v1040_v2  ;;  %3785 = vmatprep.subr.msk.mxu1 %vm771_vm5, %v593_v25 }
 0x245   :  { %6286 = vst [vmem:[#allocation71_spill] sm:$0xff] %v5184_v52  ;;  %6287 = vst [vmem:[#allocation72_spill] sm:$0xff] %v5186_v53  ;;  %v1099_v59 = vadd.f32 %v1057_v9, %v1041_v51  ;;  %v388_v60 = vmul.f32 %v5164_v0, %v5161_v63  ;;  %v390_v61 = vmul.f32 %v5164_v0, %v375_v26  ;;  %v6291_v26 = vmov 2   ;;  %3786 = vmatpush3.msk.msra.mxu1 %vm771_vm5, %v593_v25 }
 0x246   :  { %6288 = vst [vmem:[#allocation73_spill] sm:$0xff] %v5188_v55  ;;  %6289 = vst [vmem:[#allocation74_spill] sm:$0xff] %v5190_v56  ;;  %3704 = vmatprep.mubr.msk.bf16.mxu0 %vm546_vm4, %v413_v57  ;;  %v1106_v8 = vmax.f32 %v1090_v58, 0.0  ;;  %v1114_v27 = vmax.f32 %v1098_v32, 0.0  ;;  %v1107_v29 = vmax.f32 %v1091_v24, 0.0  ;;  %v6224_v33 = vmov 3   ;;  %3788 = vmatmul.mubr.msk.f32.vlgmr.msra.gmra.mrb[2].mxu1 %vm765_vm6, %v5102_v5 }
 0x247   :  { %v1115_v30 = vmax.f32 %v1099_v59, 0.0  ;;  %v404_v31 = vadd.f32 %v5167_v3, %v388_v60  ;;  %v406_v1 = vadd.f32 %v5167_v3, %v390_v61  ;;  %v6292_v3 = vmov 1   ;;  %v5218_v58 = vld [vmem:[#allocation7] sm:$0xff] }
 0x248   :  { %v5200_v18 = vpack.c.bf16 %v1114_v27, %v1106_v8  ;;  %v6222_v34 = vmov 4   ;;  %v6293_v39 = vmov 0   ;;  %v439_v10 = vrot.slane %v434_v54, %v5139_v43  ;;  %6294 = vst [vmem:[#allocation76_spill] sm:$0xff] %v5218_v58  ;;  %3794 = vmatprep.mubr.msk.f32.mxu1 %vm850_vm7, %v5218_v58 }
 0x249   :  { %v5202_v28 = vpack.c.bf16 %v1115_v30, %v1107_v29  ;;  %v408_v2 = vmax.f32 %v404_v31, 0.0  ;;  %v410_v62 = vmax.f32 %v406_v1, 0.0  ;;  %v443_v11 = vrot.slane %v434_v54, %v5141_v44 }
 0x24a   :  { %6290 = vst [vmem:[#allocation75_spill] sm:$0xff] %v5200_v18 }
 0x24b   :  { %v412_v9 = vpack.c.bf16 %v410_v62, %v408_v2 }
 0x24d   :  { %583 = vmatmul.mubr.bf16.vlgmr.msra.gmra.mrb[0].mxu0 %v412_v9 }
 0x291   :  { %v3784_v63 = vpop.f32.mrb[0].mxu1 }
 0x292   :  { %698 = vperm.xlu1 %4021, %v3784_v63   ;;  %v672_v0 = vpop.f32.mrb[1].mxu1 }
 0x293   :  { %714 = vperm.xlu0 %4024, %v672_v0  }
 0x296   :  { %4022 = vset.pattern.permute.xlu1 %v6291_v26 }
 0x297   :  { %718 = vperm.xlu1 %4022, %v3784_v63   ;;  %4026 = vset.pattern.permute.xlu0 %v6224_v33 }
 0x298   :  { %738 = vperm.xlu0 %4026, %v3784_v63  }
 0x29b   :  { %4023 = vset.pattern.permute.xlu1 %v6292_v3 }
 0x29c   :  { %4029 = vset.pattern.permute.xlu0 %v6222_v34  ;;  %694 = vperm.xlu1 %4023, %v672_v0  }
 0x29d   :  { %754 = vperm.xlu0 %4029, %v672_v0  }
 0x2a0   :  { %4025 = vset.pattern.permute.xlu1 %v6224_v33 }
 0x2a1   :  { %734 = vperm.xlu1 %4025, %v672_v0  }
 0x2a5   :  { %4027 = vset.pattern.permute.xlu1 %v6293_v39 }
 0x2a6   :  { %688 = vperm.xlu1 %4027, %v3784_v63  }
 0x2aa   :  { %683 = vperm.xlu1 %4027, %v672_v0  }
 0x2ae   :  { %4028 = vset.pattern.permute.xlu1 %v6222_v34 }
 0x2af   :  { %758 = vperm.xlu1 %4028, %v3784_v63  }
 0x311   :  { %v699_v42 = vpop.permute.xlu1 %698 }
 0x312   :  { %v715_v47 = vpop.permute.xlu0 %714 }
 0x316   :  { %v719_v45 = vpop.permute.xlu1 %718 }
 0x317   :  { %v739_v32 = vpop.permute.xlu0 %738 }
 0x31b   :  { %v695_v14 = vpop.permute.xlu1 %694 }
 0x31c   :  { %v755_v61 = vpop.permute.xlu0 %754 }
 0x320   :  { %v584_v12 = vpop.f32.mrb[0].mxu0  ;;  %v735_v51 = vpop.permute.xlu1 %734 }
 0x321   :  { %v585_v15 = vadd.f32 %v584_v12, %v439_v10  ;;  %v586_v16 = vpop.f32.mrb[1].mxu0 }
 0x322   :  { %v587_v17 = vadd.f32 %v586_v16, %v443_v11  ;;  %v588_v19 = vpop.f32.mrb[2].mxu0 }
 0x323   :  { %v589_v20 = vadd.f32 %v588_v19, %v439_v10  ;;  %v590_v21 = vpop.f32.mrb[3].mxu0  ;;  %v701_v22 = vmul.f32 %v695_v14, %v585_v15  ;;  %v721_v50 = vmul.f32 %v715_v47, %v585_v15  ;;  %v741_v24 = vmul.f32 %v735_v51, %v585_v15  ;;  %v5225_v19 = vld [vmem:[#allocation7 + $0x8] sm:$0xf] }
 0x324   :  { %v591_v23 = vadd.f32 %v590_v21, %v443_v11  ;;  %v761_v0 = vmul.f32 %v755_v61, %v587_v17  ;;  %6295 = vst [vmem:[#allocation77_spill] sm:$0xff] %v5225_v19 }
 0x325   :  { %705 = vrot.lane.b32.xlu1 %v701_v22, %s4635_s7  ;;  %v702_v46 = vmul.f32 %v699_v42, %v589_v20  ;;  %v722_v57 = vmul.f32 %v719_v45, %v589_v20  ;;  %v742_v4 = vmul.f32 %v739_v32, %v589_v20  ;;  %v689_v5 = vpop.permute.xlu1 %688 }
 0x326   :  { %v692_v31 = vmul.f32 %v689_v5, %v589_v20 }
 0x327   :  { %707 = vrot.lane.b32.xlu0 %v702_v46, %s4635_s7 }
 0x329   :  { %725 = vrot.lane.b32.xlu1 %v721_v50, %s4623_s29  ;;  %v684_v59 = vpop.permute.xlu1 %683 }
 0x32a   :  { %v691_v29 = vmul.f32 %v684_v59, %v585_v15  ;;  %v3713_v15 = vld [vmem:[#allocation18] ss:$0 sm:$0xff] }
 0x32b   :  { %727 = vrot.lane.b32.xlu0 %v722_v57, %s4623_s29 }
 0x32d   :  { %745 = vrot.lane.b32.xlu1 %v741_v24, %s4636_s21 }
 0x32e   :  { %v759_v60 = vpop.permute.xlu1 %758 }
 0x32f   :  { %747 = vrot.lane.b32.xlu0 %v742_v4, %s4636_s21  ;;  %v762_v10 = vmul.f32 %v759_v60, %v591_v23 }
 0x397   :  { %v706_v8 = vpop.permute.xlu1 %705 }
 0x398   :  { %v711_v1 = vadd.f32 %v706_v8, %v691_v29 }
 0x399   :  { %v708_v27 = vpop.permute.xlu0 %707 }
 0x39a   :  { %v712_v62 = vadd.f32 %v708_v27, %v692_v31 }
 0x39b   :  { %v726_v30 = vpop.permute.xlu1 %725 }
 0x39c   :  { %v731_v9 = vadd.f32 %v726_v30, %v711_v1 }
 0x39d   :  { %v728_v2 = vpop.permute.xlu0 %727 }
 0x39e   :  { %v732_v42 = vadd.f32 %v728_v2, %v712_v62 }
 0x39f   :  { %v746_v63 = vpop.permute.xlu1 %745 }
 0x3a0   :  { %v751_v45 = vadd.f32 %v746_v63, %v731_v9 }
 0x3a1   :  { %v748_v54 = vpop.permute.xlu0 %747 }
 0x3a2   :  { %v763_v11 = vadd.f32 %v761_v0, %v751_v45  ;;  %v752_v12 = vadd.f32 %v748_v54, %v732_v42  ;;  %v3714_v45 = vld [vmem:[#allocation19] ss:$0 sm:$0xff] }
 0x3a4   :  { %v764_v14 = vadd.f32 %v762_v10, %v752_v12 }
 0x3a6   :  { %v3857_v16 = vpack.c.bf16 %v764_v14, %v763_v11  ;;  %v3715_v11 = vld [vmem:[#allocation21] ss:$0 sm:$0xff] }
 0x3a8   :  { %3858 = vmatprep.subr.bf16.mxu1 %v3857_v16 }
 0x3a9   :  { %3860 = vmatpush3.bf16.msra.mxu1 %v3857_v16 }
 0x3ac   :  { %3795 = vmatmul.mubr.msk.f32.vlgmr.msra.gmra.mrb[2].mxu1 %vm850_vm7, %v5225_v19 }
 0x47f   :  { %v3796_v20 = vpop.f32.mrb[2].mxu1 }
 0x480   :  { %v939_v21 = vadd.f32 %v3796_v20, %v3713_v15  ;;  %v923_v17 = vpop.f32.mrb[3].mxu1 }
 0x481   :  { %v938_v22 = vadd.f32 %v3713_v15, %v923_v17 }
 0x482   :  { %v944_v25 = vsel %vm943_vm8, %v939_v21, 0.0 }
 0x483   :  { %v942_v23 = vsel %vm546_vm4, %v938_v22, 0.0 }
 0x484   :  { %v945_v46 = vadd.f32 %v944_v25, %v942_v23 }
 0x486   :  { %v946_v47 = vrot.slane %v945_v46, 4 }
 0x488   :  { %v947_v50 = vadd.f32 %v946_v47, %v945_v46 }
 0x48a   :  { %v948_v51 = vrot.slane %v947_v50, 2 }
 0x48c   :  { %v949_v57 = vadd.f32 %v948_v51, %v947_v50 }
 0x48e   :  { %v950_v24 = vrot.slane %v949_v57, 1 }
 0x490   :  { %v951_v32 = vadd.f32 %v950_v24, %v949_v57 }
 0x492   :  { %v953_v4 = vmul.f32 0.083333336, %v951_v32 }
 0x494   :  { %v954_v5 = vsub.f32 %v938_v22, %v953_v4  ;;  %v955_v59 = vsub.f32 %v939_v21, %v953_v4 }
 0x496   :  { %v956_v60 = vmul.f32 %v954_v5, %v954_v5  ;;  %v957_v61 = vmul.f32 %v955_v59, %v955_v59 }
 0x498   :  { %v958_v8 = vsel %vm546_vm4, %v956_v60, 0.0  ;;  %v959_v27 = vsel %vm943_vm8, %v957_v61, 0.0 }
 0x499   :  { %v960_v29 = vadd.f32 %v959_v27, %v958_v8 }
 0x49b   :  { %v961_v30 = vrot.slane %v960_v29, 4 }
 0x49d   :  { %v962_v31 = vadd.f32 %v961_v30, %v960_v29 }
 0x49f   :  { %v963_v1 = vrot.slane %v962_v31, 2 }
 0x4a1   :  { %v964_v2 = vadd.f32 %v963_v1, %v962_v31 }
 0x4a3   :  { %v965_v62 = vrot.slane %v964_v2, 1 }
 0x4a5   :  { %v966_v9 = vadd.f32 %v965_v62, %v964_v2 }
 0x4a7   :  { %v967_v63 = vmul.f32 0.083333336, %v966_v9 }
 0x4a9   :  { %v968_v0 = vadd.f32 1e-05, %v967_v63 }
 0x4ab   :  { %4060 = vrsqrt.f32 %v968_v0 }
 0x4b5   :  { %v4061_v42 = vpop.eup %4060 }
 0x4b6   :  { %v970_v54 = vmul.f32 %v4061_v42, %v954_v5  ;;  %v971_v10 = vmul.f32 %v4061_v42, %v955_v59 }
 0x4b8   :  { %v978_v12 = vmul.f32 %v3714_v45, %v970_v54  ;;  %v979_v14 = vmul.f32 %v3714_v45, %v971_v10 }
 0x4ba   :  { %v5233_v16 = vadd.f32 %v3715_v11, %v978_v12  ;;  %v5235_v15 = vadd.f32 %v3715_v11, %v979_v14 }
 0x4bc   :  { %6296 = vst [vmem:[#allocation78_spill] sm:$0xff] %v5233_v16  ;;  %6297 = vst [vmem:[#allocation79_spill] sm:$0xff] %v5235_v15 }
 0x4bd   :  { %4591 = dma.done.wait [#allocation3], 16384 }
 0x4be   :  { %4592 = vsyncadd [#allocation3], 4294950912  ;;  %1152 = sst [smem:[#allocation39]] %s4621_s27  ;;  %s4637_s17 = smov [#allocation2 + $0x400]  }
 0x4bf   :  { %s5240_s22 = sshll.u32 %s4637_s17, 4  ;;  %1154 = sst [smem:[#allocation39 + $0x1]] %s4621_s27  ;;  %s1149_s22 = int_to_ptr.vmem [resolvable:$true] %s5240_s22 }
 0x4c0   :  { %1156 = sst [smem:[#allocation39 + $0x2]] %s6263_s24  ;;  %s1134_s14 = scalar_lea.hbm %s6191_s15, 16384 }
 0x4c1   :  { %1158 = sst [smem:[#allocation39 + $0x3]] %s4623_s29  ;;  %s4638_s20 = smov [#allocation3 + $0x1]  }
 0x4c2   :  { %1160 = sst [smem:[#allocation39 + $0x4]] %s6264_s30  ;;  %s4639_s19 = smov [#allocation38]  }
 0x4c3   :  { %1162 = sst [smem:[#allocation39 + $0x5]] %s4624_s5 }
 0x4c4   :  { %1164 = sst [smem:[#allocation39 + $0x6]] %s4626_s10 }
 0x4c5   :  { %1166 = sst [smem:[#allocation39 + $0x7]] %s4623_s29 }
 0x4c6   :  { %1168 = sst [smem:[#allocation39 + $0x8]] %s4627_s2 }
 0x4c7   :  { %1170 = dma.general %s1134_s14, 16384, %s1149_s22, %s4638_s20, %s4639_s19, [#allocation39], %s5077_s26, 0  }
 0x4c8   :  { %v5258_v17 = vld [vmem:[#allocation2] sm:$0xff]  ;;  %v5260_v22 = vld [vmem:[#allocation2 + $0x8] sm:$0xff]  ;;  %v5262_v25 = vld [vmem:[#allocation2 + $0x10] sm:$0xff] }
 0x4c9   :  { %v5264_v23 = vld [vmem:[#allocation2 + $0x18] sm:$0xff]  ;;  %v5266_v46 = vld [vmem:[#allocation2 + $0x20] sm:$0xff]  ;;  %v5268_v47 = vld [vmem:[#allocation2 + $0x28] sm:$0xff] }
 0x4ca   :  { %6298 = vst [vmem:[#allocation80_spill] sm:$0xff] %v5266_v46  ;;  %6299 = vst [vmem:[#allocation81_spill] sm:$0xff] %v5268_v47  ;;  %v5270_v50 = vld [vmem:[#allocation2 + $0x30] sm:$0xff]  ;;  %v5272_v51 = vld [vmem:[#allocation2 + $0x38] sm:$0xff] }
 0x4cb   :  { %6300 = vst [vmem:[#allocation82_spill] sm:$0xff] %v5270_v50  ;;  %6301 = vst [vmem:[#allocation83_spill] sm:$0xff] %v5272_v51  ;;  %v5274_v57 = vld [vmem:[#allocation2 + $0x40] sm:$0xff]  ;;  %v5276_v24 = vld [vmem:[#allocation2 + $0x48] sm:$0xff] }
 0x4cc   :  { %v5278_v32 = vld [vmem:[#allocation2 + $0x50] sm:$0xff]  ;;  %v5280_v4 = vld [vmem:[#allocation2 + $0x58] sm:$0xff]  ;;  %v5282_v5 = vld [vmem:[#allocation2 + $0x60] sm:$0xff] }
 0x4cd   :  { %6302 = vst [vmem:[#allocation84_spill] sm:$0xff] %v5282_v5  ;;  %v5284_v59 = vld [vmem:[#allocation2 + $0x68] sm:$0xff]  ;;  %v5286_v60 = vld [vmem:[#allocation2 + $0x70] sm:$0xff]  ;;  %v5288_v61 = vld [vmem:[#allocation2 + $0x78] sm:$0xff] }
 0x4ce   :  { %6303 = vst [vmem:[#allocation85_spill] sm:$0xff] %v5284_v59  ;;  %6304 = vst [vmem:[#allocation86_spill] sm:$0xff] %v5286_v60  ;;  %v5290_v8 = vld [vmem:[#allocation2 + $0x80] sm:$0xff]  ;;  %v5292_v27 = vld [vmem:[#allocation2 + $0x88] sm:$0xff] }
 0x4cf   :  { %6305 = vst [vmem:[#allocation87_spill] sm:$0xff] %v5288_v61  ;;  %v5294_v29 = vld [vmem:[#allocation2 + $0x90] sm:$0xff]  ;;  %v5296_v30 = vld [vmem:[#allocation2 + $0x98] sm:$0xff]  ;;  %v5298_v31 = vld [vmem:[#allocation2 + $0xa0] sm:$0xff] }
 0x4d0   :  { %6306 = vst [vmem:[#allocation88_spill] sm:$0xff] %v5298_v31  ;;  %v5300_v1 = vld [vmem:[#allocation2 + $0xa8] sm:$0xff]  ;;  %v5302_v2 = vld [vmem:[#allocation2 + $0xb0] sm:$0xff]  ;;  %v5304_v62 = vld [vmem:[#allocation2 + $0xb8] sm:$0xff] }
 0x4d1   :  { %6307 = vst [vmem:[#allocation89_spill] sm:$0xff] %v5300_v1  ;;  %6308 = vst [vmem:[#allocation90_spill] sm:$0xff] %v5302_v2  ;;  %v5306_v9 = vld [vmem:[#allocation2 + $0xc0] sm:$0xff]  ;;  %v5308_v63 = vld [vmem:[#allocation2 + $0xc8] sm:$0xff] }
 0x4d2   :  { %6309 = vst [vmem:[#allocation91_spill] sm:$0xff] %v5304_v62  ;;  %v5310_v0 = vld [vmem:[#allocation2 + $0xd0] sm:$0xff]  ;;  %v5312_v42 = vld [vmem:[#allocation2 + $0xd8] sm:$0xff]  ;;  %v5314_v45 = vld [vmem:[#allocation2 + $0xe0] sm:$0xff] }
 0x4d3   :  { %6310 = vst [vmem:[#allocation92_spill] sm:$0xff] %v5314_v45  ;;  %v5316_v54 = vld [vmem:[#allocation2 + $0xe8] sm:$0xff]  ;;  %v5318_v10 = vld [vmem:[#allocation2 + $0xf0] sm:$0xff]  ;;  %v5320_v11 = vld [vmem:[#allocation2 + $0xf8] sm:$0xff] }
 0x4d4   :  { %6311 = vst [vmem:[#allocation93_spill] sm:$0xff] %v5316_v54  ;;  %6312 = vst [vmem:[#allocation94_spill] sm:$0xff] %v5318_v10  ;;  %v5322_v12 = vld [vmem:[#allocation2 + $0x100] sm:$0xff]  ;;  %v5324_v14 = vld [vmem:[#allocation2 + $0x108] sm:$0xff] }
 0x4d5   :  { %6313 = vst [vmem:[#allocation95_spill] sm:$0xff] %v5320_v11  ;;  %v5326_v34 = vld [vmem:[#allocation2 + $0x110] sm:$0xff]  ;;  %v5328_v33 = vld [vmem:[#allocation2 + $0x118] sm:$0xff]  ;;  %v5330_v21 = vld [vmem:[#allocation2 + $0x120] sm:$0xff] }
 0x4d6   :  { %6314 = vst [vmem:[#allocation96_spill] sm:$0xff] %v5330_v21  ;;  %v5332_v20 = vld [vmem:[#allocation2 + $0x128] sm:$0xff]  ;;  %v5334_v19 = vld [vmem:[#allocation2 + $0x130] sm:$0xff]  ;;  %v5336_v58 = vld [vmem:[#allocation2 + $0x138] sm:$0xff] }
 0x4d7   :  { %6315 = vst [vmem:[#allocation97_spill] sm:$0xff] %v5332_v20  ;;  %6316 = vst [vmem:[#allocation98_spill] sm:$0xff] %v5334_v19  ;;  %v5338_v41 = vld [vmem:[#allocation2 + $0x140] sm:$0xff]  ;;  %v5340_v40 = vld [vmem:[#allocation2 + $0x148] sm:$0xff] }
 0x4d8   :  { %6317 = vst [vmem:[#allocation99_spill] sm:$0xff] %v5336_v58  ;;  %v5342_v37 = vld [vmem:[#allocation2 + $0x150] sm:$0xff]  ;;  %v5344_v35 = vld [vmem:[#allocation2 + $0x158] sm:$0xff]  ;;  %v5346_v43 = vld [vmem:[#allocation2 + $0x160] sm:$0xff] }
 0x4d9   :  { %6318 = vst [vmem:[#allocation100_spill] sm:$0xff] %v5346_v43  ;;  %v5348_v38 = vld [vmem:[#allocation2 + $0x168] sm:$0xff]  ;;  %v5350_v39 = vld [vmem:[#allocation2 + $0x170] sm:$0xff]  ;;  %v5352_v36 = vld [vmem:[#allocation2 + $0x178] sm:$0xff] }
 0x4da   :  { %6319 = vst [vmem:[#allocation101_spill] sm:$0xff] %v5348_v38  ;;  %6320 = vst [vmem:[#allocation102_spill] sm:$0xff] %v5350_v39  ;;  %v5354_v44 = vld [vmem:[#allocation2 + $0x180] sm:$0xff]  ;;  %v5356_v13 = vld [vmem:[#allocation2 + $0x188] sm:$0xff] }
 0x4db   :  { %6321 = vst [vmem:[#allocation103_spill] sm:$0xff] %v5352_v36  ;;  %v5358_v7 = vld [vmem:[#allocation2 + $0x190] sm:$0xff]  ;;  %v5360_v6 = vld [vmem:[#allocation2 + $0x198] sm:$0xff]  ;;  %v5362_v15 = vld [vmem:[#allocation2 + $0x1a0] sm:$0xff] }
 0x4dc   :  { %6322 = vst [vmem:[#allocation104_spill] sm:$0xff] %v5362_v15  ;;  %v5364_v16 = vld [vmem:[#allocation2 + $0x1a8] sm:$0xff]  ;;  %v5366_v55 = vld [vmem:[#allocation2 + $0x1b0] sm:$0xff]  ;;  %v5368_v3 = vld [vmem:[#allocation2 + $0x1b8] sm:$0xff] }
 0x4dd   :  { %6323 = vst [vmem:[#allocation105_spill] sm:$0xff] %v5364_v16  ;;  %6324 = vst [vmem:[#allocation106_spill] sm:$0xff] %v5366_v55  ;;  %v5370_v26 = vld [vmem:[#allocation2 + $0x1c0] sm:$0xff]  ;;  %v5372_v56 = vld [vmem:[#allocation2 + $0x1c8] sm:$0xff] }
 0x4de   :  { %6325 = vst [vmem:[#allocation107_spill] sm:$0xff] %v5368_v3  ;;  %v5374_v52 = vld [vmem:[#allocation2 + $0x1d0] sm:$0xff]  ;;  %v5376_v53 = vld [vmem:[#allocation2 + $0x1d8] sm:$0xff]  ;;  %v5378_v39 = vld [vmem:[#allocation2 + $0x1e0] sm:$0xff] }
 0x4df   :  { %6326 = vst [vmem:[#allocation108_spill] sm:$0xff] %v5378_v39  ;;  %v5380_v43 = vld [vmem:[#allocation2 + $0x1e8] sm:$0xff]  ;;  %v5382_v36 = vld [vmem:[#allocation2 + $0x1f0] sm:$0xff]  ;;  %v5384_v15 = vld [vmem:[#allocation2 + $0x1f8] sm:$0xff] }
 0x4e0   :  { %6327 = vst [vmem:[#allocation109_spill] sm:$0xff] %v5380_v43  ;;  %6328 = vst [vmem:[#allocation110_spill] sm:$0xff] %v5382_v36  ;;  %v5386_v16 = vld [vmem:[#allocation2 + $0x200] sm:$0xff]  ;;  %v5388_v55 = vld [vmem:[#allocation2 + $0x208] sm:$0xff] }
 0x4e1   :  { %6329 = vst [vmem:[#allocation111_spill] sm:$0xff] %v5384_v15  ;;  %v5390_v3 = vld [vmem:[#allocation2 + $0x210] sm:$0xff]  ;;  %v5392_v38 = vld [vmem:[#allocation2 + $0x218] sm:$0xff]  ;;  %v5394_v19 = vld [vmem:[#allocation2 + $0x220] sm:$0xff] }
 0x4e2   :  { %6330 = vst [vmem:[#allocation112_spill] sm:$0xff] %v5394_v19  ;;  %v5396_v21 = vld [vmem:[#allocation2 + $0x228] sm:$0xff]  ;;  %v5398_v58 = vld [vmem:[#allocation2 + $0x230] sm:$0xff]  ;;  %v5400_v39 = vld [vmem:[#allocation2 + $0x238] sm:$0xff] }
 0x4e3   :  { %6331 = vst [vmem:[#allocation113_spill] sm:$0xff] %v5396_v21  ;;  %6332 = vst [vmem:[#allocation114_spill] sm:$0xff] %v5398_v58  ;;  %v5402_v43 = vld [vmem:[#allocation2 + $0x240] sm:$0xff]  ;;  %v5404_v36 = vld [vmem:[#allocation2 + $0x248] sm:$0xff] }
 0x4e4   :  { %6333 = vst [vmem:[#allocation115_spill] sm:$0xff] %v5400_v39  ;;  %v5406_v15 = vld [vmem:[#allocation2 + $0x250] sm:$0xff]  ;;  %v5408_v20 = vld [vmem:[#allocation2 + $0x258] sm:$0xff]  ;;  %v5410_v10 = vld [vmem:[#allocation2 + $0x260] sm:$0xff] }
 0x4e5   :  { %6334 = vst [vmem:[#allocation116_spill] sm:$0xff] %v5410_v10  ;;  %v5412_v45 = vld [vmem:[#allocation2 + $0x268] sm:$0xff]  ;;  %v5414_v11 = vld [vmem:[#allocation2 + $0x270] sm:$0xff]  ;;  %v5416_v19 = vld [vmem:[#allocation2 + $0x278] sm:$0xff] }
 0x4e6   :  { %6335 = vst [vmem:[#allocation117_spill] sm:$0xff] %v5412_v45  ;;  %6336 = vst [vmem:[#allocation118_spill] sm:$0xff] %v5414_v11  ;;  %v5418_v21 = vld [vmem:[#allocation2 + $0x280] sm:$0xff]  ;;  %v5420_v58 = vld [vmem:[#allocation2 + $0x288] sm:$0xff] }
 0x4e7   :  { %6337 = vst [vmem:[#allocation119_spill] sm:$0xff] %v5416_v19  ;;  %v5422_v39 = vld [vmem:[#allocation2 + $0x290] sm:$0xff]  ;;  %v5424_v54 = vld [vmem:[#allocation2 + $0x298] sm:$0xff]  ;;  %v5426_v2 = vld [vmem:[#allocation2 + $0x2a0] sm:$0xff] }
 0x4e8   :  { %6338 = vst [vmem:[#allocation120_spill] sm:$0xff] %v5426_v2  ;;  %v5428_v31 = vld [vmem:[#allocation2 + $0x2a8] sm:$0xff]  ;;  %v5430_v62 = vld [vmem:[#allocation2 + $0x2b0] sm:$0xff]  ;;  %v5432_v10 = vld [vmem:[#allocation2 + $0x2b8] sm:$0xff] }
 0x4e9   :  { %6339 = vst [vmem:[#allocation121_spill] sm:$0xff] %v5428_v31  ;;  %6340 = vst [vmem:[#allocation122_spill] sm:$0xff] %v5430_v62  ;;  %v5434_v45 = vld [vmem:[#allocation2 + $0x2c0] sm:$0xff]  ;;  %v5436_v11 = vld [vmem:[#allocation2 + $0x2c8] sm:$0xff] }
 0x4ea   :  { %6341 = vst [vmem:[#allocation123_spill] sm:$0xff] %v5432_v10  ;;  %v5438_v19 = vld [vmem:[#allocation2 + $0x2d0] sm:$0xff]  ;;  %v5440_v1 = vld [vmem:[#allocation2 + $0x2d8] sm:$0xff]  ;;  %v5442_v60 = vld [vmem:[#allocation2 + $0x2e0] sm:$0xff] }
 0x4eb   :  { %6342 = vst [vmem:[#allocation124_spill] sm:$0xff] %v5442_v60  ;;  %v5444_v5 = vld [vmem:[#allocation2 + $0x2e8] sm:$0xff]  ;;  %v5446_v61 = vld [vmem:[#allocation2 + $0x2f0] sm:$0xff]  ;;  %v5448_v2 = vld [vmem:[#allocation2 + $0x2f8] sm:$0xff] }
 0x4ec   :  { %6343 = vst [vmem:[#allocation125_spill] sm:$0xff] %v5444_v5  ;;  %6344 = vst [vmem:[#allocation126_spill] sm:$0xff] %v5446_v61  ;;  %v5450_v31 = vld [vmem:[#allocation2 + $0x300] sm:$0xff]  ;;  %v5452_v62 = vld [vmem:[#allocation2 + $0x308] sm:$0xff] }
 0x4ed   :  { %6345 = vst [vmem:[#allocation127_spill] sm:$0xff] %v5448_v2  ;;  %6346 = vst [vmem:[#allocation128_spill] sm:$0xff] %v5450_v31  ;;  %v5454_v10 = vld [vmem:[#allocation2 + $0x310] sm:$0xff]  ;;  %v5456_v59 = vld [vmem:[#allocation2 + $0x318] sm:$0xff] }
 0x4ee   :  { %6347 = vst [vmem:[#allocation129_spill] sm:$0xff] %v5452_v62  ;;  %6348 = vst [vmem:[#allocation130_spill] sm:$0xff] %v5454_v10  ;;  %v5458_v50 = vld [vmem:[#allocation2 + $0x320] sm:$0xff]  ;;  %v5460_v46 = vld [vmem:[#allocation2 + $0x328] sm:$0xff] }
 0x4ef   :  { %6349 = vst [vmem:[#allocation131_spill] sm:$0xff] %v5456_v59  ;;  %6350 = vst [vmem:[#allocation132_spill] sm:$0xff] %v5458_v50  ;;  %v5462_v18 = vld [vmem:[#allocation2 + $0x330] sm:$0xff]  ;;  %v5464_v60 = vld [vmem:[#allocation2 + $0x338] sm:$0xff] }
 0x4f0   :  { %6351 = vst [vmem:[#allocation133_spill] sm:$0xff] %v5460_v46  ;;  %6352 = vst [vmem:[#allocation134_spill] sm:$0xff] %v5462_v18  ;;  %v5466_v5 = vld [vmem:[#allocation2 + $0x340] sm:$0xff]  ;;  %v5468_v61 = vld [vmem:[#allocation2 + $0x348] sm:$0xff] }
 0x4f1   :  { %6353 = vst [vmem:[#allocation135_spill] sm:$0xff] %v5464_v60  ;;  %6354 = vst [vmem:[#allocation136_spill] sm:$0xff] %v5466_v5  ;;  %v5470_v2 = vld [vmem:[#allocation2 + $0x350] sm:$0xff]  ;;  %v5472_v51 = vld [vmem:[#allocation2 + $0x358] sm:$0xff] }
 0x4f2   :  { %6355 = vst [vmem:[#allocation137_spill] sm:$0xff] %v5468_v61  ;;  %6356 = vst [vmem:[#allocation138_spill] sm:$0xff] %v5470_v2  ;;  %v5474_v47 = vld [vmem:[#allocation2 + $0x360] sm:$0xff]  ;;  %v5476_v10 = vld [vmem:[#allocation2 + $0x368] sm:$0xff] }
 0x4f3   :  { %6357 = vst [vmem:[#allocation139_spill] sm:$0xff] %v5472_v51  ;;  %6358 = vst [vmem:[#allocation140_spill] sm:$0xff] %v5474_v47  ;;  %v5478_v31 = vld [vmem:[#allocation2 + $0x370] sm:$0xff]  ;;  %v5480_v50 = vld [vmem:[#allocation2 + $0x378] sm:$0xff] }
 0x4f4   :  { %6359 = vst [vmem:[#allocation141_spill] sm:$0xff] %v5476_v10  ;;  %6360 = vst [vmem:[#allocation142_spill] sm:$0xff] %v5478_v31  ;;  %v5482_v46 = vld [vmem:[#allocation2 + $0x380] sm:$0xff]  ;;  %v5484_v18 = vld [vmem:[#allocation2 + $0x388] sm:$0xff] }
 0x4f5   :  { %6361 = vst [vmem:[#allocation143_spill] sm:$0xff] %v5480_v50  ;;  %6362 = vst [vmem:[#allocation144_spill] sm:$0xff] %v5482_v46  ;;  %v5486_v60 = vld [vmem:[#allocation2 + $0x390] sm:$0xff]  ;;  %v5488_v5 = vld [vmem:[#allocation2 + $0x398] sm:$0xff] }
 0x4f6   :  { %6363 = vst [vmem:[#allocation145_spill] sm:$0xff] %v5484_v18  ;;  %6364 = vst [vmem:[#allocation146_spill] sm:$0xff] %v5486_v60  ;;  %v5490_v61 = vld [vmem:[#allocation2 + $0x3a0] sm:$0xff]  ;;  %v5492_v2 = vld [vmem:[#allocation2 + $0x3a8] sm:$0xff] }
 0x4f7   :  { %6365 = vst [vmem:[#allocation147_spill] sm:$0xff] %v5488_v5  ;;  %6366 = vst [vmem:[#allocation148_spill] sm:$0xff] %v5490_v61  ;;  %v5494_v51 = vld [vmem:[#allocation2 + $0x3b0] sm:$0xff]  ;;  %v5496_v47 = vld [vmem:[#allocation2 + $0x3b8] sm:$0xff] }
 0x4f8   :  { %6367 = vst [vmem:[#allocation149_spill] sm:$0xff] %v5492_v2  ;;  %6368 = vst [vmem:[#allocation150_spill] sm:$0xff] %v5494_v51  ;;  %v5498_v10 = vld [vmem:[#allocation2 + $0x3c0] sm:$0xff]  ;;  %v5500_v31 = vld [vmem:[#allocation2 + $0x3c8] sm:$0xff] }
 0x4f9   :  { %6369 = vst [vmem:[#allocation151_spill] sm:$0xff] %v5496_v47  ;;  %6370 = vst [vmem:[#allocation152_spill] sm:$0xff] %v5498_v10  ;;  %v5502_v50 = vld [vmem:[#allocation2 + $0x3d0] sm:$0xff]  ;;  %v5504_v46 = vld [vmem:[#allocation2 + $0x3d8] sm:$0xff] }
 0x4fa   :  { %6371 = vst [vmem:[#allocation153_spill] sm:$0xff] %v5500_v31  ;;  %6372 = vst [vmem:[#allocation154_spill] sm:$0xff] %v5502_v50  ;;  %v5506_v18 = vld [vmem:[#allocation2 + $0x3e0] sm:$0xff]  ;;  %v5508_v60 = vld [vmem:[#allocation2 + $0x3e8] sm:$0xff] }
 0x4fb   :  { %6373 = vst [vmem:[#allocation155_spill] sm:$0xff] %v5504_v46  ;;  %6374 = vst [vmem:[#allocation156_spill] sm:$0xff] %v5506_v18  ;;  %v5510_v5 = vld [vmem:[#allocation2 + $0x3f0] sm:$0xff]  ;;  %v5512_v61 = vld [vmem:[#allocation2 + $0x3f8] sm:$0xff] }
 0x4fc   :  { %6375 = vst [vmem:[#allocation157_spill] sm:$0xff] %v5508_v60  ;;  %6376 = vst [vmem:[#allocation158_spill] sm:$0xff] %v5510_v5 }
 0x4fd   :  { %6377 = vst [vmem:[#allocation159_spill] sm:$0xff] %v5512_v61 }
 0x4fe   :  { %4593 = dma.done.wait [#allocation3 + $0x1], 16384 }
 0x4ff   :  { %4594 = vsyncadd [#allocation3 + $0x1], 4294950912  ;;  %1496 = vmatprep.mubr.bf16.mxu1 %v5182_v49  ;;  %1539 = vmatprep.mubr.bf16.mxu0 %v5182_v49  ;;  %1317 = sst [smem:[#allocation41]] %s4621_s27  ;;  %s1301_s8 = scalar_lea.hbm %s6191_s15, 32768 }
 0x500   :  { %1319 = sst [smem:[#allocation41 + $0x1]] %s4621_s27  ;;  %s4640_s25 = smov [#allocation40]  }
 0x501   :  { %1321 = sst [smem:[#allocation41 + $0x2]] %s6263_s24 }
 0x502   :  { %1323 = sst [smem:[#allocation41 + $0x3]] %s4623_s29 }
 0x503   :  { %1325 = sst [smem:[#allocation41 + $0x4]] %s6264_s30 }
 0x504   :  { %1327 = sst [smem:[#allocation41 + $0x5]] %s4624_s5 }
 0x505   :  { %1329 = sst [smem:[#allocation41 + $0x6]] %s4626_s10 }
 0x506   :  { %1331 = sst [smem:[#allocation41 + $0x7]] %s4623_s29 }
 0x507   :  { %1333 = sst [smem:[#allocation41 + $0x8]] %s4627_s2 }
 0x508   :  { %1335 = dma.general %s1301_s8, 16384, %s335_s18, %s4628_s4, %s4640_s25, [#allocation41], %s5077_s26, 0  }
 0x509   :  { %v1337_v5 = vld [vmem:[#allocation2 + $0x408] sm:$0xff]  ;;  %v1339_v18 = vld [vmem:[#allocation2 + $0x418] sm:$0xff]  ;;  %v1336_v61 = vld [vmem:[#allocation2 + $0x400] sm:$0xff] }
 0x50a   :  { %1464 = vmatprep.subr.bf16.mxu1 %v1337_v5  ;;  %1507 = vmatprep.subr.bf16.mxu0 %v1339_v18  ;;  %v1338_v60 = vld [vmem:[#allocation2 + $0x410] sm:$0xff]  ;;  %v1345_v51 = vld [vmem:[#allocation2 + $0x448] sm:$0xff]  ;;  %v1347_v47 = vld [vmem:[#allocation2 + $0x458] sm:$0xff] }
 0x50b   :  { %1465 = vmatpush1.bf16.msra.mxu1 %v1336_v61  ;;  %1508 = vmatpush1.bf16.msra.mxu0 %v1338_v60  ;;  %v1344_v2 = vld [vmem:[#allocation2 + $0x440] sm:$0xff]  ;;  %v1346_v50 = vld [vmem:[#allocation2 + $0x450] sm:$0xff]  ;;  %v1353_v10 = vld [vmem:[#allocation2 + $0x488] sm:$0xff] }
 0x50c   :  { %1466 = vmatprep.subr.bf16.mxu1 %v1345_v51  ;;  %1509 = vmatprep.subr.bf16.mxu0 %v1347_v47  ;;  %v1355_v46 = vld [vmem:[#allocation2 + $0x498] sm:$0xff]  ;;  %v1352_v31 = vld [vmem:[#allocation2 + $0x480] sm:$0xff]  ;;  %v1354_v59 = vld [vmem:[#allocation2 + $0x490] sm:$0xff] }
 0x50d   :  { %v1361_v62 = vld [vmem:[#allocation2 + $0x4c8] sm:$0xff]  ;;  %v1363_v5 = vld [vmem:[#allocation2 + $0x4d8] sm:$0xff]  ;;  %v1360_v18 = vld [vmem:[#allocation2 + $0x4c0] sm:$0xff] }
 0x50e   :  { %v1362_v60 = vld [vmem:[#allocation2 + $0x4d0] sm:$0xff]  ;;  %v1369_v51 = vld [vmem:[#allocation2 + $0x508] sm:$0xff]  ;;  %v1371_v47 = vld [vmem:[#allocation2 + $0x518] sm:$0xff] }
 0x50f   :  { %1467 = vmatpush1.bf16.msra.mxu1 %v1344_v2  ;;  %1510 = vmatpush1.bf16.msra.mxu0 %v1346_v50  ;;  %v1368_v61 = vld [vmem:[#allocation2 + $0x500] sm:$0xff]  ;;  %v1370_v50 = vld [vmem:[#allocation2 + $0x510] sm:$0xff]  ;;  %v1377_v2 = vld [vmem:[#allocation2 + $0x548] sm:$0xff] }
 0x510   :  { %1468 = vmatprep.subr.bf16.mxu1 %v1353_v10  ;;  %1511 = vmatprep.subr.bf16.mxu0 %v1355_v46  ;;  %v1379_v46 = vld [vmem:[#allocation2 + $0x558] sm:$0xff] }
 0x511   :  { %v1387_v10 = vld [vmem:[#allocation2 + $0x598] sm:$0xff] }
 0x513   :  { %1469 = vmatpush1.bf16.msra.mxu1 %v1352_v31  ;;  %1512 = vmatpush1.bf16.msra.mxu0 %v1354_v59  ;;  %v1376_v31 = vld [vmem:[#allocation2 + $0x540] sm:$0xff]  ;;  %v1378_v59 = vld [vmem:[#allocation2 + $0x550] sm:$0xff] }
 0x514   :  { %1470 = vmatprep.subr.bf16.mxu1 %v1361_v62  ;;  %1513 = vmatprep.subr.bf16.mxu0 %v1363_v5  ;;  %v1385_v62 = vld [vmem:[#allocation2 + $0x588] sm:$0xff]  ;;  %v1384_v5 = vld [vmem:[#allocation2 + $0x580] sm:$0xff] }
 0x517   :  { %1471 = vmatpush1.bf16.msra.mxu1 %v1360_v18  ;;  %1514 = vmatpush1.bf16.msra.mxu0 %v1362_v60  ;;  %v1386_v18 = vld [vmem:[#allocation2 + $0x590] sm:$0xff]  ;;  %v1393_v60 = vld [vmem:[#allocation2 + $0x5c8] sm:$0xff] }
 0x518   :  { %1472 = vmatprep.subr.bf16.mxu1 %v1369_v51  ;;  %1515 = vmatprep.subr.bf16.mxu0 %v1371_v47  ;;  %v1395_v51 = vld [vmem:[#allocation2 + $0x5d8] sm:$0xff]  ;;  %v1392_v47 = vld [vmem:[#allocation2 + $0x5c0] sm:$0xff] }
 0x51b   :  { %1473 = vmatpush1.bf16.msra.mxu1 %v1368_v61  ;;  %1516 = vmatpush1.bf16.msra.mxu0 %v1370_v50  ;;  %v1394_v61 = vld [vmem:[#allocation2 + $0x5d0] sm:$0xff]  ;;  %v1401_v50 = vld [vmem:[#allocation2 + $0x608] sm:$0xff] }
 0x51c   :  { %1474 = vmatprep.subr.bf16.mxu1 %v1377_v2  ;;  %1517 = vmatprep.subr.bf16.mxu0 %v1379_v46  ;;  %v1403_v2 = vld [vmem:[#allocation2 + $0x618] sm:$0xff]  ;;  %v1400_v46 = vld [vmem:[#allocation2 + $0x600] sm:$0xff] }
 0x51f   :  { %1475 = vmatpush1.bf16.msra.mxu1 %v1376_v31  ;;  %1518 = vmatpush1.bf16.msra.mxu0 %v1378_v59  ;;  %v1402_v31 = vld [vmem:[#allocation2 + $0x610] sm:$0xff]  ;;  %v1409_v59 = vld [vmem:[#allocation2 + $0x648] sm:$0xff] }
 0x520   :  { %1476 = vmatprep.subr.bf16.mxu1 %v1385_v62  ;;  %1519 = vmatprep.subr.bf16.mxu0 %v1387_v10  ;;  %v1411_v62 = vld [vmem:[#allocation2 + $0x658] sm:$0xff]  ;;  %v1408_v10 = vld [vmem:[#allocation2 + $0x640] sm:$0xff] }
 0x523   :  { %1477 = vmatpush1.bf16.msra.mxu1 %v1384_v5  ;;  %1520 = vmatpush1.bf16.msra.mxu0 %v1386_v18  ;;  %v1410_v5 = vld [vmem:[#allocation2 + $0x650] sm:$0xff]  ;;  %v1417_v18 = vld [vmem:[#allocation2 + $0x688] sm:$0xff] }
 0x524   :  { %1478 = vmatprep.subr.bf16.mxu1 %v1393_v60  ;;  %1521 = vmatprep.subr.bf16.mxu0 %v1395_v51  ;;  %v1419_v60 = vld [vmem:[#allocation2 + $0x698] sm:$0xff]  ;;  %v1416_v51 = vld [vmem:[#allocation2 + $0x680] sm:$0xff] }
 0x527   :  { %1479 = vmatpush1.bf16.msra.mxu1 %v1392_v47  ;;  %1522 = vmatpush1.bf16.msra.mxu0 %v1394_v61  ;;  %v1418_v47 = vld [vmem:[#allocation2 + $0x690] sm:$0xff]  ;;  %v1425_v61 = vld [vmem:[#allocation2 + $0x6c8] sm:$0xff] }
 0x528   :  { %1480 = vmatprep.subr.bf16.mxu1 %v1401_v50  ;;  %1523 = vmatprep.subr.bf16.mxu0 %v1403_v2  ;;  %v1427_v50 = vld [vmem:[#allocation2 + $0x6d8] sm:$0xff]  ;;  %v1424_v2 = vld [vmem:[#allocation2 + $0x6c0] sm:$0xff] }
 0x52b   :  { %1481 = vmatpush1.bf16.msra.mxu1 %v1400_v46  ;;  %1524 = vmatpush1.bf16.msra.mxu0 %v1402_v31  ;;  %v1426_v46 = vld [vmem:[#allocation2 + $0x6d0] sm:$0xff]  ;;  %v1433_v31 = vld [vmem:[#allocation2 + $0x708] sm:$0xff] }
 0x52c   :  { %1482 = vmatprep.subr.bf16.mxu1 %v1409_v59  ;;  %1525 = vmatprep.subr.bf16.mxu0 %v1411_v62  ;;  %v1435_v59 = vld [vmem:[#allocation2 + $0x718] sm:$0xff]  ;;  %v1432_v62 = vld [vmem:[#allocation2 + $0x700] sm:$0xff] }
 0x52f   :  { %1483 = vmatpush1.bf16.msra.mxu1 %v1408_v10  ;;  %1526 = vmatpush1.bf16.msra.mxu0 %v1410_v5  ;;  %v1434_v10 = vld [vmem:[#allocation2 + $0x710] sm:$0xff]  ;;  %v1441_v5 = vld [vmem:[#allocation2 + $0x748] sm:$0xff] }
 0x530   :  { %1484 = vmatprep.subr.bf16.mxu1 %v1417_v18  ;;  %1527 = vmatprep.subr.bf16.mxu0 %v1419_v60  ;;  %v1443_v18 = vld [vmem:[#allocation2 + $0x758] sm:$0xff]  ;;  %v1440_v60 = vld [vmem:[#allocation2 + $0x740] sm:$0xff] }
 0x533   :  { %1485 = vmatpush1.bf16.msra.mxu1 %v1416_v51  ;;  %1528 = vmatpush1.bf16.msra.mxu0 %v1418_v47  ;;  %v1442_v51 = vld [vmem:[#allocation2 + $0x750] sm:$0xff]  ;;  %v1449_v47 = vld [vmem:[#allocation2 + $0x788] sm:$0xff] }
 0x534   :  { %1486 = vmatprep.subr.bf16.mxu1 %v1425_v61  ;;  %1529 = vmatprep.subr.bf16.mxu0 %v1427_v50  ;;  %v1451_v61 = vld [vmem:[#allocation2 + $0x798] sm:$0xff]  ;;  %v1448_v50 = vld [vmem:[#allocation2 + $0x780] sm:$0xff] }
 0x537   :  { %1487 = vmatpush1.bf16.msra.mxu1 %v1424_v2  ;;  %1530 = vmatpush1.bf16.msra.mxu0 %v1426_v46  ;;  %v1450_v2 = vld [vmem:[#allocation2 + $0x790] sm:$0xff]  ;;  %v1457_v46 = vld [vmem:[#allocation2 + $0x7c8] sm:$0xff] }
 0x538   :  { %1488 = vmatprep.subr.bf16.mxu1 %v1433_v31  ;;  %1531 = vmatprep.subr.bf16.mxu0 %v1435_v59  ;;  %v1459_v31 = vld [vmem:[#allocation2 + $0x7d8] sm:$0xff]  ;;  %v1456_v59 = vld [vmem:[#allocation2 + $0x7c0] sm:$0xff] }
 0x53b   :  { %1489 = vmatpush1.bf16.msra.mxu1 %v1432_v62  ;;  %1532 = vmatpush1.bf16.msra.mxu0 %v1434_v10  ;;  %v1458_v62 = vld [vmem:[#allocation2 + $0x7d0] sm:$0xff]  ;;  %v1341_v10 = vld [vmem:[#allocation2 + $0x428] sm:$0xff] }
 0x53c   :  { %1490 = vmatprep.subr.bf16.mxu1 %v1441_v5  ;;  %1533 = vmatprep.subr.bf16.mxu0 %v1443_v18  ;;  %v1343_v5 = vld [vmem:[#allocation2 + $0x438] sm:$0xff]  ;;  %v1340_v18 = vld [vmem:[#allocation2 + $0x420] sm:$0xff] }
 0x53f   :  { %1491 = vmatpush1.bf16.msra.mxu1 %v1440_v60  ;;  %1534 = vmatpush1.bf16.msra.mxu0 %v1442_v51  ;;  %v1342_v60 = vld [vmem:[#allocation2 + $0x430] sm:$0xff]  ;;  %v1349_v51 = vld [vmem:[#allocation2 + $0x468] sm:$0xff] }
 0x540   :  { %1492 = vmatprep.subr.bf16.mxu1 %v1449_v47  ;;  %1535 = vmatprep.subr.bf16.mxu0 %v1451_v61  ;;  %v1351_v47 = vld [vmem:[#allocation2 + $0x478] sm:$0xff]  ;;  %v1348_v61 = vld [vmem:[#allocation2 + $0x460] sm:$0xff] }
 0x543   :  { %1493 = vmatpush1.bf16.msra.mxu1 %v1448_v50  ;;  %1536 = vmatpush1.bf16.msra.mxu0 %v1450_v2  ;;  %v1350_v50 = vld [vmem:[#allocation2 + $0x470] sm:$0xff]  ;;  %v1357_v2 = vld [vmem:[#allocation2 + $0x4a8] sm:$0xff] }
 0x544   :  { %1494 = vmatprep.subr.bf16.mxu1 %v1457_v46  ;;  %1537 = vmatprep.subr.bf16.mxu0 %v1459_v31  ;;  %v1359_v46 = vld [vmem:[#allocation2 + $0x4b8] sm:$0xff]  ;;  %v1356_v31 = vld [vmem:[#allocation2 + $0x4a0] sm:$0xff] }
 0x547   :  { %1495 = vmatpush1.bf16.msra.mxu1 %v1456_v59  ;;  %1538 = vmatpush1.bf16.msra.mxu0 %v1458_v62  ;;  %v1358_v59 = vld [vmem:[#allocation2 + $0x4b0] sm:$0xff]  ;;  %v1365_v62 = vld [vmem:[#allocation2 + $0x4e8] sm:$0xff] }
 0x548   :  { %1550 = vmatprep.subr.bf16.mxu1 %v1341_v10  ;;  %1593 = vmatprep.subr.bf16.mxu0 %v1343_v5  ;;  %v1367_v10 = vld [vmem:[#allocation2 + $0x4f8] sm:$0xff]  ;;  %v1364_v5 = vld [vmem:[#allocation2 + $0x4e0] sm:$0xff] }
 0x54a   :  { %1497 = vmatmul.mubr.bf16.vlgmr.msra.gmra.mrb[4].mxu1 %v5180_v48  ;;  %1540 = vmatmul.mubr.bf16.vlgmr.msra.gmra.mrb[4].mxu0 %v5180_v48 }
 0x54b   :  { %1551 = vmatpush1.bf16.msra.mxu1 %v1340_v18  ;;  %1594 = vmatpush1.bf16.msra.mxu0 %v1342_v60  ;;  %v1366_v18 = vld [vmem:[#allocation2 + $0x4f0] sm:$0xff]  ;;  %v1373_v60 = vld [vmem:[#allocation2 + $0x528] sm:$0xff] }
 0x54c   :  { %1552 = vmatprep.subr.bf16.mxu1 %v1349_v51  ;;  %1595 = vmatprep.subr.bf16.mxu0 %v1351_v47  ;;  %v1375_v51 = vld [vmem:[#allocation2 + $0x538] sm:$0xff]  ;;  %v1374_v47 = vld [vmem:[#allocation2 + $0x530] sm:$0xff] }
 0x54d   :  { %1582 = vmatprep.mubr.bf16.mxu1 %v5182_v49  ;;  %1625 = vmatprep.mubr.bf16.mxu0 %v5182_v49  ;;  %v1372_v49 = vld [vmem:[#allocation2 + $0x520] sm:$0xff] }
 0x54f   :  { %1553 = vmatpush1.bf16.msra.mxu1 %v1348_v61  ;;  %1596 = vmatpush1.bf16.msra.mxu0 %v1350_v50  ;;  %v1381_v61 = vld [vmem:[#allocation2 + $0x568] sm:$0xff]  ;;  %v1383_v50 = vld [vmem:[#allocation2 + $0x578] sm:$0xff] }
 0x550   :  { %1554 = vmatprep.subr.bf16.mxu1 %v1357_v2  ;;  %1597 = vmatprep.subr.bf16.mxu0 %v1359_v46  ;;  %v1380_v2 = vld [vmem:[#allocation2 + $0x560] sm:$0xff]  ;;  %v1382_v46 = vld [vmem:[#allocation2 + $0x570] sm:$0xff] }
 0x553   :  { %1555 = vmatpush1.bf16.msra.mxu1 %v1356_v31  ;;  %1598 = vmatpush1.bf16.msra.mxu0 %v1358_v59  ;;  %v1389_v31 = vld [vmem:[#allocation2 + $0x5a8] sm:$0xff]  ;;  %v1391_v59 = vld [vmem:[#allocation2 + $0x5b8] sm:$0xff] }
 0x554   :  { %1556 = vmatprep.subr.bf16.mxu1 %v1365_v62  ;;  %1599 = vmatprep.subr.bf16.mxu0 %v1367_v10  ;;  %v1388_v62 = vld [vmem:[#allocation2 + $0x5a0] sm:$0xff]  ;;  %v1390_v10 = vld [vmem:[#allocation2 + $0x5b0] sm:$0xff] }
 0x557   :  { %1557 = vmatpush1.bf16.msra.mxu1 %v1364_v5  ;;  %1600 = vmatpush1.bf16.msra.mxu0 %v1366_v18  ;;  %v1397_v5 = vld [vmem:[#allocation2 + $0x5e8] sm:$0xff]  ;;  %v1399_v18 = vld [vmem:[#allocation2 + $0x5f8] sm:$0xff] }
 0x558   :  { %1558 = vmatprep.subr.bf16.mxu1 %v1373_v60  ;;  %1601 = vmatprep.subr.bf16.mxu0 %v1375_v51  ;;  %v1396_v60 = vld [vmem:[#allocation2 + $0x5e0] sm:$0xff]  ;;  %v1398_v51 = vld [vmem:[#allocation2 + $0x5f0] sm:$0xff] }
 0x55b   :  { %1559 = vmatpush1.bf16.msra.mxu1 %v1372_v49  ;;  %1602 = vmatpush1.bf16.msra.mxu0 %v1374_v47  ;;  %v1405_v49 = vld [vmem:[#allocation2 + $0x628] sm:$0xff]  ;;  %v1407_v47 = vld [vmem:[#allocation2 + $0x638] sm:$0xff] }
 0x55c   :  { %1560 = vmatprep.subr.bf16.mxu1 %v1381_v61  ;;  %1603 = vmatprep.subr.bf16.mxu0 %v1383_v50  ;;  %v1404_v61 = vld [vmem:[#allocation2 + $0x620] sm:$0xff]  ;;  %v1406_v50 = vld [vmem:[#allocation2 + $0x630] sm:$0xff] }
 0x55f   :  { %1561 = vmatpush1.bf16.msra.mxu1 %v1380_v2  ;;  %1604 = vmatpush1.bf16.msra.mxu0 %v1382_v46  ;;  %v1413_v2 = vld [vmem:[#allocation2 + $0x668] sm:$0xff]  ;;  %v1415_v46 = vld [vmem:[#allocation2 + $0x678] sm:$0xff] }
 0x560   :  { %1562 = vmatprep.subr.bf16.mxu1 %v1389_v31  ;;  %1605 = vmatprep.subr.bf16.mxu0 %v1391_v59  ;;  %v1412_v31 = vld [vmem:[#allocation2 + $0x660] sm:$0xff]  ;;  %v1414_v59 = vld [vmem:[#allocation2 + $0x670] sm:$0xff] }
 0x563   :  { %1563 = vmatpush1.bf16.msra.mxu1 %v1388_v62  ;;  %1606 = vmatpush1.bf16.msra.mxu0 %v1390_v10  ;;  %v1421_v62 = vld [vmem:[#allocation2 + $0x6a8] sm:$0xff]  ;;  %v1423_v10 = vld [vmem:[#allocation2 + $0x6b8] sm:$0xff] }
 0x564   :  { %1564 = vmatprep.subr.bf16.mxu1 %v1397_v5  ;;  %1607 = vmatprep.subr.bf16.mxu0 %v1399_v18  ;;  %v1420_v5 = vld [vmem:[#allocation2 + $0x6a0] sm:$0xff]  ;;  %v1422_v18 = vld [vmem:[#allocation2 + $0x6b0] sm:$0xff] }
 0x567   :  { %1565 = vmatpush1.bf16.msra.mxu1 %v1396_v60  ;;  %1608 = vmatpush1.bf16.msra.mxu0 %v1398_v51  ;;  %v1429_v60 = vld [vmem:[#allocation2 + $0x6e8] sm:$0xff]  ;;  %v1431_v51 = vld [vmem:[#allocation2 + $0x6f8] sm:$0xff] }
 0x568   :  { %1566 = vmatprep.subr.bf16.mxu1 %v1405_v49  ;;  %1609 = vmatprep.subr.bf16.mxu0 %v1407_v47  ;;  %v1428_v49 = vld [vmem:[#allocation2 + $0x6e0] sm:$0xff]  ;;  %v1430_v47 = vld [vmem:[#allocation2 + $0x6f0] sm:$0xff] }
 0x56b   :  { %1567 = vmatpush1.bf16.msra.mxu1 %v1404_v61  ;;  %1610 = vmatpush1.bf16.msra.mxu0 %v1406_v50  ;;  %v1437_v61 = vld [vmem:[#allocation2 + $0x728] sm:$0xff]  ;;  %v1439_v50 = vld [vmem:[#allocation2 + $0x738] sm:$0xff] }
 0x56c   :  { %1568 = vmatprep.subr.bf16.mxu1 %v1413_v2  ;;  %1611 = vmatprep.subr.bf16.mxu0 %v1415_v46  ;;  %v1436_v2 = vld [vmem:[#allocation2 + $0x720] sm:$0xff]  ;;  %v1438_v46 = vld [vmem:[#allocation2 + $0x730] sm:$0xff] }
 0x56f   :  { %1569 = vmatpush1.bf16.msra.mxu1 %v1412_v31  ;;  %1612 = vmatpush1.bf16.msra.mxu0 %v1414_v59  ;;  %v1445_v31 = vld [vmem:[#allocation2 + $0x768] sm:$0xff]  ;;  %v1447_v59 = vld [vmem:[#allocation2 + $0x778] sm:$0xff] }
 0x570   :  { %1570 = vmatprep.subr.bf16.mxu1 %v1421_v62  ;;  %1613 = vmatprep.subr.bf16.mxu0 %v1423_v10  ;;  %v1444_v62 = vld [vmem:[#allocation2 + $0x760] sm:$0xff]  ;;  %v1446_v10 = vld [vmem:[#allocation2 + $0x770] sm:$0xff] }
 0x573   :  { %1571 = vmatpush1.bf16.msra.mxu1 %v1420_v5  ;;  %1614 = vmatpush1.bf16.msra.mxu0 %v1422_v18  ;;  %v1453_v5 = vld [vmem:[#allocation2 + $0x7a8] sm:$0xff]  ;;  %v1455_v18 = vld [vmem:[#allocation2 + $0x7b8] sm:$0xff] }
 0x574   :  { %1572 = vmatprep.subr.bf16.mxu1 %v1429_v60  ;;  %1615 = vmatprep.subr.bf16.mxu0 %v1431_v51  ;;  %v1452_v60 = vld [vmem:[#allocation2 + $0x7a0] sm:$0xff]  ;;  %v1454_v51 = vld [vmem:[#allocation2 + $0x7b0] sm:$0xff] }
 0x577   :  { %1573 = vmatpush1.bf16.msra.mxu1 %v1428_v49  ;;  %1616 = vmatpush1.bf16.msra.mxu0 %v1430_v47  ;;  %v1461_v49 = vld [vmem:[#allocation2 + $0x7e8] sm:$0xff]  ;;  %v1463_v47 = vld [vmem:[#allocation2 + $0x7f8] sm:$0xff] }
 0x578   :  { %1574 = vmatprep.subr.bf16.mxu1 %v1437_v61  ;;  %1617 = vmatprep.subr.bf16.mxu0 %v1439_v50  ;;  %v1460_v61 = vld [vmem:[#allocation2 + $0x7e0] sm:$0xff]  ;;  %v1462_v50 = vld [vmem:[#allocation2 + $0x7f0] sm:$0xff] }
 0x57b   :  { %1575 = vmatpush1.bf16.msra.mxu1 %v1436_v2  ;;  %1618 = vmatpush1.bf16.msra.mxu0 %v1438_v46  ;;  %v6428_v2 = vld [vmem:[#allocation115_spill] sm:$0xff]  ;;  %v6429_v46 = vld [vmem:[#allocation112_spill] sm:$0xff] }
 0x57c   :  { %1576 = vmatprep.subr.bf16.mxu1 %v1445_v31  ;;  %1619 = vmatprep.subr.bf16.mxu0 %v1447_v59  ;;  %v6430_v31 = vld [vmem:[#allocation114_spill] sm:$0xff]  ;;  %v6431_v59 = vld [vmem:[#allocation117_spill] sm:$0xff] }
 0x57f   :  { %1577 = vmatpush1.bf16.msra.mxu1 %v1444_v62  ;;  %1620 = vmatpush1.bf16.msra.mxu0 %v1446_v10  ;;  %v6432_v62 = vld [vmem:[#allocation119_spill] sm:$0xff]  ;;  %v6433_v10 = vld [vmem:[#allocation116_spill] sm:$0xff] }
 0x580   :  { %1578 = vmatprep.subr.bf16.mxu1 %v1453_v5  ;;  %1621 = vmatprep.subr.bf16.mxu0 %v1455_v18  ;;  %v6434_v5 = vld [vmem:[#allocation118_spill] sm:$0xff]  ;;  %v6435_v18 = vld [vmem:[#allocation121_spill] sm:$0xff] }
 0x583   :  { %1579 = vmatpush1.bf16.msra.mxu1 %v1452_v60  ;;  %1622 = vmatpush1.bf16.msra.mxu0 %v1454_v51  ;;  %v6436_v60 = vld [vmem:[#allocation123_spill] sm:$0xff]  ;;  %v6437_v51 = vld [vmem:[#allocation120_spill] sm:$0xff] }
 0x584   :  { %1580 = vmatprep.subr.bf16.mxu1 %v1461_v49  ;;  %1623 = vmatprep.subr.bf16.mxu0 %v1463_v47  ;;  %v6438_v49 = vld [vmem:[#allocation122_spill] sm:$0xff]  ;;  %v6439_v47 = vld [vmem:[#allocation125_spill] sm:$0xff] }
 0x587   :  { %1581 = vmatpush1.bf16.msra.mxu1 %v1460_v61  ;;  %1624 = vmatpush1.bf16.msra.mxu0 %v1462_v50  ;;  %v6440_v61 = vld [vmem:[#allocation127_spill] sm:$0xff]  ;;  %v6441_v50 = vld [vmem:[#allocation124_spill] sm:$0xff] }
 0x588   :  { %1636 = vmatprep.subr.bf16.mxu1 %v5260_v22  ;;  %1679 = vmatprep.subr.bf16.mxu0 %v5264_v23  ;;  %v6406_v22 = vld [vmem:[#allocation90_spill] sm:$0xff]  ;;  %v6408_v23 = vld [vmem:[#allocation95_spill] sm:$0xff] }
 0x58a   :  { %1583 = vmatmul.mubr.bf16.vlgmr.msra.gmra.mrb[8].mxu1 %v5180_v48  ;;  %1626 = vmatmul.mubr.bf16.vlgmr.msra.gmra.mrb[8].mxu0 %v5180_v48  ;;  %v6389_v48 = vld [vmem:[#allocation146_spill] sm:$0xff] }
 0x58b   :  { %1637 = vmatpush1.bf16.msra.mxu1 %v5258_v17  ;;  %1680 = vmatpush1.bf16.msra.mxu0 %v5262_v25  ;;  %v6405_v17 = vld [vmem:[#allocation88_spill] sm:$0xff]  ;;  %v6407_v25 = vld [vmem:[#allocation93_spill] sm:$0xff] }
 0x58c   :  { %1638 = vmatprep.subr.bf16.mxu1 %v5276_v24  ;;  %1681 = vmatprep.subr.bf16.mxu0 %v5280_v4  ;;  %v6410_v24 = vld [vmem:[#allocation94_spill] sm:$0xff]  ;;  %v6413_v4 = vld [vmem:[#allocation96_spill] sm:$0xff] }
 0x58d   :  { %1668 = vmatprep.mubr.bf16.mxu1 %v5202_v28  ;;  %1711 = vmatprep.mubr.bf16.mxu0 %v5202_v28 }
 0x58f   :  { %1639 = vmatpush1.bf16.msra.mxu1 %v5274_v57  ;;  %1682 = vmatpush1.bf16.msra.mxu0 %v5278_v32  ;;  %v6409_v57 = vld [vmem:[#allocation92_spill] sm:$0xff]  ;;  %v6412_v32 = vld [vmem:[#allocation99_spill] sm:$0xff] }
 0x590   :  { %1640 = vmatprep.subr.bf16.mxu1 %v5292_v27  ;;  %1683 = vmatprep.subr.bf16.mxu0 %v5296_v30  ;;  %v6415_v27 = vld [vmem:[#allocation101_spill] sm:$0xff]  ;;  %v6417_v30 = vld [vmem:[#allocation100_spill] sm:$0xff] }
 0x593   :  { %1641 = vmatpush1.bf16.msra.mxu1 %v5290_v8  ;;  %1684 = vmatpush1.bf16.msra.mxu0 %v5294_v29  ;;  %v6414_v8 = vld [vmem:[#allocation98_spill] sm:$0xff]  ;;  %v6416_v29 = vld [vmem:[#allocation103_spill] sm:$0xff] }
 0x594   :  { %1642 = vmatprep.subr.bf16.mxu1 %v5308_v63  ;;  %1685 = vmatprep.subr.bf16.mxu0 %v5312_v42  ;;  %v6420_v63 = vld [vmem:[#allocation107_spill] sm:$0xff]  ;;  %v6422_v42 = vld [vmem:[#allocation106_spill] sm:$0xff] }
 0x597   :  { %1643 = vmatpush1.bf16.msra.mxu1 %v5306_v9  ;;  %1686 = vmatpush1.bf16.msra.mxu0 %v5310_v0  ;;  %v6419_v9 = vld [vmem:[#allocation105_spill] sm:$0xff]  ;;  %v6421_v0 = vld [vmem:[#allocation104_spill] sm:$0xff] }
 0x598   :  { %1644 = vmatprep.subr.bf16.mxu1 %v5324_v14  ;;  %1687 = vmatprep.subr.bf16.mxu0 %v5328_v33  ;;  %v6395_v33 = vld [vmem:[#allocation83_spill] sm:$0xff]  ;;  %v6427_v14 = vld [vmem:[#allocation113_spill] sm:$0xff] }
 0x59b   :  { %1645 = vmatpush1.bf16.msra.mxu1 %v5322_v12  ;;  %1688 = vmatpush1.bf16.msra.mxu0 %v5326_v34  ;;  %v6397_v34 = vld [vmem:[#allocation80_spill] sm:$0xff]  ;;  %v6426_v12 = vld [vmem:[#allocation110_spill] sm:$0xff] }
 0x59c   :  { %1646 = vmatprep.subr.bf16.mxu1 %v5340_v40  ;;  %1689 = vmatprep.subr.bf16.mxu0 %v5344_v35  ;;  %v6381_v35 = vld [vmem:[#allocation130_spill] sm:$0xff] }
 0x59d   :  { %v6385_v40 = vld [vmem:[#allocation138_spill] sm:$0xff] }
 0x59f   :  { %1647 = vmatpush1.bf16.msra.mxu1 %v5338_v41  ;;  %1690 = vmatpush1.bf16.msra.mxu0 %v5342_v37  ;;  %v6383_v37 = vld [vmem:[#allocation139_spill] sm:$0xff]  ;;  %v6386_v41 = vld [vmem:[#allocation145_spill] sm:$0xff] }
 0x5a0   :  { %1648 = vmatprep.subr.bf16.mxu1 %v5356_v13  ;;  %1691 = vmatprep.subr.bf16.mxu0 %v5360_v6  ;;  %v6378_v6 = vld [vmem:[#allocation129_spill] sm:$0xff]  ;;  %v6380_v13 = vld [vmem:[#allocation128_spill] sm:$0xff] }
 0x5a3   :  { %1649 = vmatpush1.bf16.msra.mxu1 %v5354_v44  ;;  %1692 = vmatpush1.bf16.msra.mxu0 %v5358_v7  ;;  %v6379_v7 = vld [vmem:[#allocation131_spill] sm:$0xff]  ;;  %v6388_v44 = vld [vmem:[#allocation144_spill] sm:$0xff] }
 0x5a4   :  { %1650 = vmatprep.subr.bf16.mxu1 %v5372_v56  ;;  %1693 = vmatprep.subr.bf16.mxu0 %v5376_v53  ;;  %v6391_v53 = vld [vmem:[#allocation155_spill] sm:$0xff]  ;;  %v6393_v56 = vld [vmem:[#allocation154_spill] sm:$0xff] }
 0x5a7   :  { %1651 = vmatpush1.bf16.msra.mxu1 %v5370_v26  ;;  %1694 = vmatpush1.bf16.msra.mxu0 %v5374_v52  ;;  %v6390_v52 = vld [vmem:[#allocation153_spill] sm:$0xff] }
 0x5a8   :  { %1652 = vmatprep.subr.bf16.mxu1 %v5388_v55  ;;  %1695 = vmatprep.subr.bf16.mxu0 %v5392_v38  ;;  %v6384_v38 = vld [vmem:[#allocation136_spill] sm:$0xff]  ;;  %v6394_v26 = vld [vmem:[#allocation81_spill] sm:$0xff] }
 0x5a9   :  { %v6392_v55 = vld [vmem:[#allocation152_spill] sm:$0xff] }
 0x5ab   :  { %1653 = vmatpush1.bf16.msra.mxu1 %v5386_v16  ;;  %1696 = vmatpush1.bf16.msra.mxu0 %v5390_v3  ;;  %v6396_v3 = vld [vmem:[#allocation75_spill] sm:$0xff]  ;;  %v6401_v16 = vld [vmem:[#allocation84_spill] sm:$0xff] }
 0x5ac   :  { %1654 = vmatprep.subr.bf16.mxu1 %v5404_v36  ;;  %1697 = vmatprep.subr.bf16.mxu0 %v5408_v20  ;;  %v6382_v36 = vld [vmem:[#allocation137_spill] sm:$0xff] }
 0x5ad   :  { %v6403_v20 = vld [vmem:[#allocation89_spill] sm:$0xff] }
 0x5af   :  { %1655 = vmatpush1.bf16.msra.mxu1 %v5402_v43  ;;  %1698 = vmatpush1.bf16.msra.mxu0 %v5406_v15  ;;  %v6387_v43 = vld [vmem:[#allocation147_spill] sm:$0xff]  ;;  %v6402_v15 = vld [vmem:[#allocation86_spill] sm:$0xff] }
 0x5b0   :  { %1656 = vmatprep.subr.bf16.mxu1 %v5420_v58  ;;  %1699 = vmatprep.subr.bf16.mxu0 %v5424_v54  ;;  %v6399_v58 = vld [vmem:[#allocation85_spill] sm:$0xff]  ;;  %v6424_v54 = vld [vmem:[#allocation111_spill] sm:$0xff] }
 0x5b3   :  { %1657 = vmatpush1.bf16.msra.mxu1 %v5418_v21  ;;  %1700 = vmatpush1.bf16.msra.mxu0 %v5422_v39  ;;  %v6398_v39 = vld [vmem:[#allocation82_spill] sm:$0xff]  ;;  %v6404_v21 = vld [vmem:[#allocation91_spill] sm:$0xff] }
 0x5b4   :  { %1658 = vmatprep.subr.bf16.mxu1 %v5436_v11  ;;  %1701 = vmatprep.subr.bf16.mxu0 %v5440_v1  ;;  %v6418_v1 = vld [vmem:[#allocation102_spill] sm:$0xff]  ;;  %v6425_v11 = vld [vmem:[#allocation108_spill] sm:$0xff] }
 0x5b7   :  { %1659 = vmatpush1.bf16.msra.mxu1 %v5434_v45  ;;  %1702 = vmatpush1.bf16.msra.mxu0 %v5438_v19  ;;  %v6400_v19 = vld [vmem:[#allocation87_spill] sm:$0xff]  ;;  %v6423_v45 = vld [vmem:[#allocation109_spill] sm:$0xff] }
 0x5b8   :  { %1660 = vmatprep.subr.bf16.mxu1 %v6378_v6  ;;  %1703 = vmatprep.subr.bf16.mxu0 %v6379_v7  ;;  %v6442_v6 = vld [vmem:[#allocation126_spill] sm:$0xff]  ;;  %v6443_v7 = vld [vmem:[#allocation133_spill] sm:$0xff] }
 0x5bb   :  { %1661 = vmatpush1.bf16.msra.mxu1 %v6380_v13  ;;  %1704 = vmatpush1.bf16.msra.mxu0 %v6381_v35  ;;  %v6444_v13 = vld [vmem:[#allocation135_spill] sm:$0xff]  ;;  %v6445_v35 = vld [vmem:[#allocation132_spill] sm:$0xff] }
 0x5bc   :  { %1662 = vmatprep.subr.bf16.mxu1 %v6382_v36  ;;  %1705 = vmatprep.subr.bf16.mxu0 %v6383_v37  ;;  %v6446_v36 = vld [vmem:[#allocation134_spill] sm:$0xff]  ;;  %v6447_v37 = vld [vmem:[#allocation141_spill] sm:$0xff] }
 0x5bf   :  { %1663 = vmatpush1.bf16.msra.mxu1 %v6384_v38  ;;  %1706 = vmatpush1.bf16.msra.mxu0 %v6385_v40  ;;  %v6448_v38 = vld [vmem:[#allocation143_spill] sm:$0xff]  ;;  %v6449_v40 = vld [vmem:[#allocation140_spill] sm:$0xff] }
 0x5c0   :  { %1664 = vmatprep.subr.bf16.mxu1 %v6386_v41  ;;  %1707 = vmatprep.subr.bf16.mxu0 %v6387_v43  ;;  %v6450_v41 = vld [vmem:[#allocation142_spill] sm:$0xff]  ;;  %v6451_v43 = vld [vmem:[#allocation149_spill] sm:$0xff] }
 0x5c3   :  { %1665 = vmatpush1.bf16.msra.mxu1 %v6388_v44  ;;  %1708 = vmatpush1.bf16.msra.mxu0 %v6389_v48  ;;  %v6452_v44 = vld [vmem:[#allocation151_spill] sm:$0xff]  ;;  %v6453_v48 = vld [vmem:[#allocation148_spill] sm:$0xff] }
 0x5c4   :  { %1666 = vmatprep.subr.bf16.mxu1 %v6390_v52  ;;  %1709 = vmatprep.subr.bf16.mxu0 %v6391_v53  ;;  %v6454_v52 = vld [vmem:[#allocation150_spill] sm:$0xff]  ;;  %v6455_v53 = vld [vmem:[#allocation157_spill] sm:$0xff] }
 0x5c7   :  { %1667 = vmatpush1.bf16.msra.mxu1 %v6392_v55  ;;  %1710 = vmatpush1.bf16.msra.mxu0 %v6393_v56  ;;  %v6456_v55 = vld [vmem:[#allocation159_spill] sm:$0xff]  ;;  %v6457_v56 = vld [vmem:[#allocation156_spill] sm:$0xff] }
 0x5c8   :  { %1722 = vmatprep.subr.bf16.mxu1 %v6394_v26  ;;  %1765 = vmatprep.subr.bf16.mxu0 %v6395_v33  ;;  %v6458_v26 = vld [vmem:[#allocation158_spill] sm:$0xff] }
 0x5ca   :  { %1669 = vmatmul.mubr.bf16.vlgmr.msra.gmra.mrb[4].mxu1 %v6396_v3  ;;  %1712 = vmatmul.mubr.bf16.vlgmr.msra.gmra.mrb[4].mxu0 %v6396_v3 }
 0x5cb   :  { %1723 = vmatpush1.bf16.msra.mxu1 %v6397_v34  ;;  %1766 = vmatpush1.bf16.msra.mxu0 %v6398_v39 }
 0x5cc   :  { %1724 = vmatprep.subr.bf16.mxu1 %v6399_v58  ;;  %1767 = vmatprep.subr.bf16.mxu0 %v6400_v19 }
 0x5cd   :  { %1754 = vmatprep.mubr.bf16.mxu1 %v5202_v28  ;;  %1797 = vmatprep.mubr.bf16.mxu0 %v5202_v28  ;;  %v6411_v28 = vld [vmem:[#allocation97_spill] sm:$0xff] }
 0x5cf   :  { %1725 = vmatpush1.bf16.msra.mxu1 %v6401_v16  ;;  %1768 = vmatpush1.bf16.msra.mxu0 %v6402_v15 }
 0x5d0   :  { %1726 = vmatprep.subr.bf16.mxu1 %v6403_v20  ;;  %1769 = vmatprep.subr.bf16.mxu0 %v6404_v21 }
 0x5d3   :  { %1727 = vmatpush1.bf16.msra.mxu1 %v6405_v17  ;;  %1770 = vmatpush1.bf16.msra.mxu0 %v6406_v22 }
 0x5d4   :  { %1728 = vmatprep.subr.bf16.mxu1 %v6407_v25  ;;  %1771 = vmatprep.subr.bf16.mxu0 %v6408_v23 }
 0x5d7   :  { %1729 = vmatpush1.bf16.msra.mxu1 %v6409_v57  ;;  %1772 = vmatpush1.bf16.msra.mxu0 %v6410_v24 }
 0x5d8   :  { %1730 = vmatprep.subr.bf16.mxu1 %v6411_v28  ;;  %1773 = vmatprep.subr.bf16.mxu0 %v6412_v32 }
 0x5db   :  { %1731 = vmatpush1.bf16.msra.mxu1 %v6413_v4  ;;  %1774 = vmatpush1.bf16.msra.mxu0 %v6414_v8 }
 0x5dc   :  { %1732 = vmatprep.subr.bf16.mxu1 %v6415_v27  ;;  %1775 = vmatprep.subr.bf16.mxu0 %v6416_v29 }
 0x5df   :  { %1733 = vmatpush1.bf16.msra.mxu1 %v6417_v30  ;;  %1776 = vmatpush1.bf16.msra.mxu0 %v6418_v1 }
 0x5e0   :  { %1734 = vmatprep.subr.bf16.mxu1 %v6419_v9  ;;  %1777 = vmatprep.subr.bf16.mxu0 %v6420_v63 }
 0x5e3   :  { %1735 = vmatpush1.bf16.msra.mxu1 %v6421_v0  ;;  %1778 = vmatpush1.bf16.msra.mxu0 %v6422_v42 }
 0x5e4   :  { %1736 = vmatprep.subr.bf16.mxu1 %v6423_v45  ;;  %1779 = vmatprep.subr.bf16.mxu0 %v6424_v54 }
 0x5e7   :  { %1737 = vmatpush1.bf16.msra.mxu1 %v6425_v11  ;;  %1780 = vmatpush1.bf16.msra.mxu0 %v6426_v12 }
 0x5e8   :  { %1738 = vmatprep.subr.bf16.mxu1 %v6427_v14  ;;  %1781 = vmatprep.subr.bf16.mxu0 %v6428_v2 }
 0x5eb   :  { %1739 = vmatpush1.bf16.msra.mxu1 %v6429_v46  ;;  %1782 = vmatpush1.bf16.msra.mxu0 %v6430_v31 }
 0x5ec   :  { %1740 = vmatprep.subr.bf16.mxu1 %v6431_v59  ;;  %1783 = vmatprep.subr.bf16.mxu0 %v6432_v62 }
 0x5ef   :  { %1741 = vmatpush1.bf16.msra.mxu1 %v6433_v10  ;;  %1784 = vmatpush1.bf16.msra.mxu0 %v6434_v5 }
 0x5f0   :  { %1742 = vmatprep.subr.bf16.mxu1 %v6435_v18  ;;  %1785 = vmatprep.subr.bf16.mxu0 %v6436_v60 }
 0x5f3   :  { %1743 = vmatpush1.bf16.msra.mxu1 %v6437_v51  ;;  %1786 = vmatpush1.bf16.msra.mxu0 %v6438_v49 }
 0x5f4   :  { %1744 = vmatprep.subr.bf16.mxu1 %v6439_v47  ;;  %1787 = vmatprep.subr.bf16.mxu0 %v6440_v61 }
 0x5f7   :  { %1745 = vmatpush1.bf16.msra.mxu1 %v6441_v50  ;;  %1788 = vmatpush1.bf16.msra.mxu0 %v6442_v6 }
 0x5f8   :  { %1746 = vmatprep.subr.bf16.mxu1 %v6443_v7  ;;  %1789 = vmatprep.subr.bf16.mxu0 %v6444_v13 }
 0x5fb   :  { %1747 = vmatpush1.bf16.msra.mxu1 %v6445_v35  ;;  %1790 = vmatpush1.bf16.msra.mxu0 %v6446_v36 }
 0x5fc   :  { %1748 = vmatprep.subr.bf16.mxu1 %v6447_v37  ;;  %1791 = vmatprep.subr.bf16.mxu0 %v6448_v38 }
 0x5ff   :  { %1749 = vmatpush1.bf16.msra.mxu1 %v6449_v40  ;;  %1792 = vmatpush1.bf16.msra.mxu0 %v6450_v41 }
 0x600   :  { %1750 = vmatprep.subr.bf16.mxu1 %v6451_v43  ;;  %1793 = vmatprep.subr.bf16.mxu0 %v6452_v44 }
 0x603   :  { %1751 = vmatpush1.bf16.msra.mxu1 %v6453_v48  ;;  %1794 = vmatpush1.bf16.msra.mxu0 %v6454_v52 }
 0x604   :  { %1752 = vmatprep.subr.bf16.mxu1 %v6455_v53  ;;  %1795 = vmatprep.subr.bf16.mxu0 %v6456_v55 }
 0x607   :  { %1753 = vmatpush1.bf16.msra.mxu1 %v6457_v56  ;;  %1796 = vmatpush1.bf16.msra.mxu0 %v6458_v26 }
 0x60a   :  { %1755 = vmatmul.mubr.bf16.vlgmr.msra.gmra.mrb[8].mxu1 %v6396_v3  ;;  %1798 = vmatmul.mubr.bf16.vlgmr.msra.gmra.mrb[8].mxu0 %v6396_v3 }
 0x60b   :  { %4595 = dma.done.wait [#allocation3], 16384 }
 0x60c   :  { %4596 = vsyncadd [#allocation3], 4294950912  ;;  %v6459_v33 = vld [vmem:[#allocation72_spill] sm:$0xff]  ;;  %1826 = sst [smem:[#allocation43]] %s4621_s27  ;;  %s1810_s13 = scalar_lea.hbm %s6191_s15, 49152 }
 0x60d   :  { %2005 = vmatprep.mubr.bf16.mxu1 %v6459_v33  ;;  %2048 = vmatprep.mubr.bf16.mxu0 %v6459_v33  ;;  %1828 = sst [smem:[#allocation43 + $0x1]] %s4621_s27  ;;  %s4641_s0 = smov [#allocation42]  }
 0x60e   :  { %1830 = sst [smem:[#allocation43 + $0x2]] %s6263_s24 }
 0x60f   :  { %1832 = sst [smem:[#allocation43 + $0x3]] %s4623_s29 }
 0x610   :  { %1834 = sst [smem:[#allocation43 + $0x4]] %s6264_s30 }
 0x611   :  { %1836 = sst [smem:[#allocation43 + $0x5]] %s4624_s5 }
 0x612   :  { %1838 = sst [smem:[#allocation43 + $0x6]] %s4626_s10 }
 0x613   :  { %1840 = sst [smem:[#allocation43 + $0x7]] %s4623_s29 }
 0x614   :  { %1842 = sst [smem:[#allocation43 + $0x8]] %s4627_s2 }
 0x615   :  { %1844 = dma.general %s1810_s13, 16384, %s1149_s22, %s4638_s20, %s4641_s0, [#allocation43], %s5077_s26, 0  }
 0x616   :  { %v1846_v3 = vld [vmem:[#allocation2 + $0x8] sm:$0xff]  ;;  %v1848_v34 = vld [vmem:[#allocation2 + $0x18] sm:$0xff]  ;;  %v1845_v39 = vld [vmem:[#allocation2] sm:$0xff] }
 0x617   :  { %1973 = vmatprep.subr.bf16.mxu1 %v1846_v3  ;;  %2016 = vmatprep.subr.bf16.mxu0 %v1848_v34  ;;  %v1847_v58 = vld [vmem:[#allocation2 + $0x10] sm:$0xff]  ;;  %v1854_v19 = vld [vmem:[#allocation2 + $0x48] sm:$0xff]  ;;  %v1856_v16 = vld [vmem:[#allocation2 + $0x58] sm:$0xff] }
 0x618   :  { %1974 = vmatpush1.bf16.msra.mxu1 %v1845_v39  ;;  %2017 = vmatpush1.bf16.msra.mxu0 %v1847_v58  ;;  %v1853_v15 = vld [vmem:[#allocation2 + $0x40] sm:$0xff]  ;;  %v1855_v20 = vld [vmem:[#allocation2 + $0x50] sm:$0xff]  ;;  %v1862_v21 = vld [vmem:[#allocation2 + $0x88] sm:$0xff] }
 0x619   :  { %1975 = vmatprep.subr.bf16.mxu1 %v1854_v19  ;;  %2018 = vmatprep.subr.bf16.mxu0 %v1856_v16  ;;  %v1864_v17 = vld [vmem:[#allocation2 + $0x98] sm:$0xff]  ;;  %v1861_v22 = vld [vmem:[#allocation2 + $0x80] sm:$0xff]  ;;  %v1863_v25 = vld [vmem:[#allocation2 + $0x90] sm:$0xff] }
 0x61a   :  { %v1870_v23 = vld [vmem:[#allocation2 + $0xc8] sm:$0xff]  ;;  %v1872_v57 = vld [vmem:[#allocation2 + $0xd8] sm:$0xff]  ;;  %v1869_v24 = vld [vmem:[#allocation2 + $0xc0] sm:$0xff] }
 0x61b   :  { %v1871_v28 = vld [vmem:[#allocation2 + $0xd0] sm:$0xff]  ;;  %v1878_v32 = vld [vmem:[#allocation2 + $0x108] sm:$0xff]  ;;  %v1880_v4 = vld [vmem:[#allocation2 + $0x118] sm:$0xff] }
 0x61c   :  { %1976 = vmatpush1.bf16.msra.mxu1 %v1853_v15  ;;  %2019 = vmatpush1.bf16.msra.mxu0 %v1855_v20  ;;  %v1877_v8 = vld [vmem:[#allocation2 + $0x100] sm:$0xff]  ;;  %v1879_v27 = vld [vmem:[#allocation2 + $0x110] sm:$0xff]  ;;  %v1886_v29 = vld [vmem:[#allocation2 + $0x148] sm:$0xff] }
 0x61d   :  { %1977 = vmatprep.subr.bf16.mxu1 %v1862_v21  ;;  %2020 = vmatprep.subr.bf16.mxu0 %v1864_v17  ;;  %v1888_v30 = vld [vmem:[#allocation2 + $0x158] sm:$0xff]  ;;  %v1885_v1 = vld [vmem:[#allocation2 + $0x140] sm:$0xff]  ;;  %v1887_v9 = vld [vmem:[#allocation2 + $0x150] sm:$0xff] }
 0x61e   :  { %v1894_v63 = vld [vmem:[#allocation2 + $0x188] sm:$0xff]  ;;  %v1896_v0 = vld [vmem:[#allocation2 + $0x198] sm:$0xff]  ;;  %v1893_v42 = vld [vmem:[#allocation2 + $0x180] sm:$0xff] }
 0x61f   :  { %v1895_v45 = vld [vmem:[#allocation2 + $0x190] sm:$0xff]  ;;  %v1902_v54 = vld [vmem:[#allocation2 + $0x1c8] sm:$0xff]  ;;  %v1904_v11 = vld [vmem:[#allocation2 + $0x1d8] sm:$0xff] }
 0x620   :  { %1978 = vmatpush1.bf16.msra.mxu1 %v1861_v22  ;;  %2021 = vmatpush1.bf16.msra.mxu0 %v1863_v25  ;;  %v1901_v12 = vld [vmem:[#allocation2 + $0x1c0] sm:$0xff]  ;;  %v1903_v14 = vld [vmem:[#allocation2 + $0x1d0] sm:$0xff]  ;;  %v1910_v2 = vld [vmem:[#allocation2 + $0x208] sm:$0xff] }
 0x621   :  { %1979 = vmatprep.subr.bf16.mxu1 %v1870_v23  ;;  %2022 = vmatprep.subr.bf16.mxu0 %v1872_v57  ;;  %v1912_v46 = vld [vmem:[#allocation2 + $0x218] sm:$0xff]  ;;  %v1909_v31 = vld [vmem:[#allocation2 + $0x200] sm:$0xff]  ;;  %v1911_v59 = vld [vmem:[#allocation2 + $0x210] sm:$0xff] }
 0x622   :  { %v1918_v62 = vld [vmem:[#allocation2 + $0x248] sm:$0xff]  ;;  %v1920_v10 = vld [vmem:[#allocation2 + $0x258] sm:$0xff]  ;;  %v1917_v5 = vld [vmem:[#allocation2 + $0x240] sm:$0xff] }
 0x623   :  { %v1919_v18 = vld [vmem:[#allocation2 + $0x250] sm:$0xff]  ;;  %v1926_v60 = vld [vmem:[#allocation2 + $0x288] sm:$0xff]  ;;  %v1928_v51 = vld [vmem:[#allocation2 + $0x298] sm:$0xff] }
 0x624   :  { %1980 = vmatpush1.bf16.msra.mxu1 %v1869_v24  ;;  %2023 = vmatpush1.bf16.msra.mxu0 %v1871_v28  ;;  %v1925_v49 = vld [vmem:[#allocation2 + $0x280] sm:$0xff]  ;;  %v1927_v47 = vld [vmem:[#allocation2 + $0x290] sm:$0xff]  ;;  %v1934_v61 = vld [vmem:[#allocation2 + $0x2c8] sm:$0xff] }
 0x625   :  { %1981 = vmatprep.subr.bf16.mxu1 %v1878_v32  ;;  %2024 = vmatprep.subr.bf16.mxu0 %v1880_v4  ;;  %v1936_v50 = vld [vmem:[#allocation2 + $0x2d8] sm:$0xff]  ;;  %v1933_v6 = vld [vmem:[#allocation2 + $0x2c0] sm:$0xff]  ;;  %v1935_v7 = vld [vmem:[#allocation2 + $0x2d0] sm:$0xff] }
 0x626   :  { %v1942_v13 = vld [vmem:[#allocation2 + $0x308] sm:$0xff]  ;;  %v1944_v35 = vld [vmem:[#allocation2 + $0x318] sm:$0xff]  ;;  %v1941_v36 = vld [vmem:[#allocation2 + $0x300] sm:$0xff] }
 0x627   :  { %v1943_v37 = vld [vmem:[#allocation2 + $0x310] sm:$0xff]  ;;  %v1950_v38 = vld [vmem:[#allocation2 + $0x348] sm:$0xff]  ;;  %v1952_v40 = vld [vmem:[#allocation2 + $0x358] sm:$0xff] }
 0x628   :  { %1982 = vmatpush1.bf16.msra.mxu1 %v1877_v8  ;;  %2025 = vmatpush1.bf16.msra.mxu0 %v1879_v27  ;;  %v1949_v41 = vld [vmem:[#allocation2 + $0x340] sm:$0xff]  ;;  %v1951_v43 = vld [vmem:[#allocation2 + $0x350] sm:$0xff]  ;;  %v1958_v44 = vld [vmem:[#allocation2 + $0x388] sm:$0xff] }
 0x629   :  { %1983 = vmatprep.subr.bf16.mxu1 %v1886_v29  ;;  %2026 = vmatprep.subr.bf16.mxu0 %v1888_v30  ;;  %v1960_v48 = vld [vmem:[#allocation2 + $0x398] sm:$0xff]  ;;  %v1957_v52 = vld [vmem:[#allocation2 + $0x380] sm:$0xff]  ;;  %v1959_v53 = vld [vmem:[#allocation2 + $0x390] sm:$0xff] }
 0x62a   :  { %v1966_v55 = vld [vmem:[#allocation2 + $0x3c8] sm:$0xff]  ;;  %v1968_v56 = vld [vmem:[#allocation2 + $0x3d8] sm:$0xff]  ;;  %v1965_v26 = vld [vmem:[#allocation2 + $0x3c0] sm:$0xff] }
 0x62b   :  { %v1967_v3 = vld [vmem:[#allocation2 + $0x3d0] sm:$0xff]  ;;  %v1850_v34 = vld [vmem:[#allocation2 + $0x28] sm:$0xff]  ;;  %v1852_v39 = vld [vmem:[#allocation2 + $0x38] sm:$0xff] }
 0x62c   :  { %1984 = vmatpush1.bf16.msra.mxu1 %v1885_v1  ;;  %2027 = vmatpush1.bf16.msra.mxu0 %v1887_v9  ;;  %v1849_v58 = vld [vmem:[#allocation2 + $0x20] sm:$0xff]  ;;  %v1851_v19 = vld [vmem:[#allocation2 + $0x30] sm:$0xff]  ;;  %v1858_v16 = vld [vmem:[#allocation2 + $0x68] sm:$0xff] }
 0x62d   :  { %1985 = vmatprep.subr.bf16.mxu1 %v1894_v63  ;;  %2028 = vmatprep.subr.bf16.mxu0 %v1896_v0  ;;  %v1860_v15 = vld [vmem:[#allocation2 + $0x78] sm:$0xff]  ;;  %v1857_v21 = vld [vmem:[#allocation2 + $0x60] sm:$0xff]  ;;  %v1859_v17 = vld [vmem:[#allocation2 + $0x70] sm:$0xff] }
 0x62e   :  { %v6460_v20 = vld [vmem:[#allocation71_spill] sm:$0xff]  ;;  %v1866_v22 = vld [vmem:[#allocation2 + $0xa8] sm:$0xff]  ;;  %v1865_v23 = vld [vmem:[#allocation2 + $0xa0] sm:$0xff] }
 0x62f   :  { %v1868_v25 = vld [vmem:[#allocation2 + $0xb8] sm:$0xff]  ;;  %v1867_v57 = vld [vmem:[#allocation2 + $0xb0] sm:$0xff]  ;;  %v1874_v24 = vld [vmem:[#allocation2 + $0xe8] sm:$0xff] }
 0x630   :  { %1986 = vmatpush1.bf16.msra.mxu1 %v1893_v42  ;;  %2029 = vmatpush1.bf16.msra.mxu0 %v1895_v45  ;;  %v1876_v28 = vld [vmem:[#allocation2 + $0xf8] sm:$0xff]  ;;  %v1873_v32 = vld [vmem:[#allocation2 + $0xe0] sm:$0xff]  ;;  %v1875_v4 = vld [vmem:[#allocation2 + $0xf0] sm:$0xff] }
 0x631   :  { %1987 = vmatprep.subr.bf16.mxu1 %v1902_v54  ;;  %2030 = vmatprep.subr.bf16.mxu0 %v1904_v11  ;;  %v1882_v8 = vld [vmem:[#allocation2 + $0x128] sm:$0xff]  ;;  %v1884_v27 = vld [vmem:[#allocation2 + $0x138] sm:$0xff]  ;;  %v1883_v29 = vld [vmem:[#allocation2 + $0x130] sm:$0xff] }
 0x632   :  { %v1890_v30 = vld [vmem:[#allocation2 + $0x168] sm:$0xff]  ;;  %v1892_v1 = vld [vmem:[#allocation2 + $0x178] sm:$0xff]  ;;  %v1889_v9 = vld [vmem:[#allocation2 + $0x160] sm:$0xff] }
 0x633   :  { %v1891_v63 = vld [vmem:[#allocation2 + $0x170] sm:$0xff]  ;;  %v1898_v0 = vld [vmem:[#allocation2 + $0x1a8] sm:$0xff]  ;;  %v1900_v42 = vld [vmem:[#allocation2 + $0x1b8] sm:$0xff] }
 0x634   :  { %1988 = vmatpush1.bf16.msra.mxu1 %v1901_v12  ;;  %2031 = vmatpush1.bf16.msra.mxu0 %v1903_v14  ;;  %v1897_v45 = vld [vmem:[#allocation2 + $0x1a0] sm:$0xff]  ;;  %v1899_v54 = vld [vmem:[#allocation2 + $0x1b0] sm:$0xff]  ;;  %v1906_v11 = vld [vmem:[#allocation2 + $0x1e8] sm:$0xff] }
 0x635   :  { %1989 = vmatprep.subr.bf16.mxu1 %v1910_v2  ;;  %2032 = vmatprep.subr.bf16.mxu0 %v1912_v46  ;;  %v1908_v12 = vld [vmem:[#allocation2 + $0x1f8] sm:$0xff]  ;;  %v1905_v14 = vld [vmem:[#allocation2 + $0x1e0] sm:$0xff]  ;;  %v1907_v2 = vld [vmem:[#allocation2 + $0x1f0] sm:$0xff] }
 0x636   :  { %v1914_v46 = vld [vmem:[#allocation2 + $0x228] sm:$0xff] }
 0x638   :  { %1990 = vmatpush1.bf16.msra.mxu1 %v1909_v31  ;;  %2033 = vmatpush1.bf16.msra.mxu0 %v1911_v59  ;;  %v1916_v31 = vld [vmem:[#allocation2 + $0x238] sm:$0xff]  ;;  %v1913_v59 = vld [vmem:[#allocation2 + $0x220] sm:$0xff] }
 0x639   :  { %1991 = vmatprep.subr.bf16.mxu1 %v1918_v62  ;;  %2034 = vmatprep.subr.bf16.mxu0 %v1920_v10  ;;  %v1915_v62 = vld [vmem:[#allocation2 + $0x230] sm:$0xff]  ;;  %v1922_v10 = vld [vmem:[#allocation2 + $0x268] sm:$0xff] }
 0x63c   :  { %1992 = vmatpush1.bf16.msra.mxu1 %v1917_v5  ;;  %2035 = vmatpush1.bf16.msra.mxu0 %v1919_v18  ;;  %v1924_v5 = vld [vmem:[#allocation2 + $0x278] sm:$0xff]  ;;  %v1921_v18 = vld [vmem:[#allocation2 + $0x260] sm:$0xff] }
 0x63d   :  { %1993 = vmatprep.subr.bf16.mxu1 %v1926_v60  ;;  %2036 = vmatprep.subr.bf16.mxu0 %v1928_v51  ;;  %v1923_v60 = vld [vmem:[#allocation2 + $0x270] sm:$0xff]  ;;  %v1930_v51 = vld [vmem:[#allocation2 + $0x2a8] sm:$0xff] }
 0x640   :  { %1994 = vmatpush1.bf16.msra.mxu1 %v1925_v49  ;;  %2037 = vmatpush1.bf16.msra.mxu0 %v1927_v47  ;;  %v1932_v49 = vld [vmem:[#allocation2 + $0x2b8] sm:$0xff]  ;;  %v1929_v47 = vld [vmem:[#allocation2 + $0x2a0] sm:$0xff] }
 0x641   :  { %1995 = vmatprep.subr.bf16.mxu1 %v1934_v61  ;;  %2038 = vmatprep.subr.bf16.mxu0 %v1936_v50  ;;  %v1931_v61 = vld [vmem:[#allocation2 + $0x2b0] sm:$0xff]  ;;  %v1938_v50 = vld [vmem:[#allocation2 + $0x2e8] sm:$0xff] }
 0x644   :  { %1996 = vmatpush1.bf16.msra.mxu1 %v1933_v6  ;;  %2039 = vmatpush1.bf16.msra.mxu0 %v1935_v7  ;;  %v1940_v6 = vld [vmem:[#allocation2 + $0x2f8] sm:$0xff]  ;;  %v1937_v7 = vld [vmem:[#allocation2 + $0x2e0] sm:$0xff] }
 0x645   :  { %1997 = vmatprep.subr.bf16.mxu1 %v1942_v13  ;;  %2040 = vmatprep.subr.bf16.mxu0 %v1944_v35  ;;  %v1939_v13 = vld [vmem:[#allocation2 + $0x2f0] sm:$0xff]  ;;  %v1946_v35 = vld [vmem:[#allocation2 + $0x328] sm:$0xff] }
 0x648   :  { %1998 = vmatpush1.bf16.msra.mxu1 %v1941_v36  ;;  %2041 = vmatpush1.bf16.msra.mxu0 %v1943_v37  ;;  %v1948_v36 = vld [vmem:[#allocation2 + $0x338] sm:$0xff]  ;;  %v1945_v37 = vld [vmem:[#allocation2 + $0x320] sm:$0xff] }
 0x649   :  { %1999 = vmatprep.subr.bf16.mxu1 %v1950_v38  ;;  %2042 = vmatprep.subr.bf16.mxu0 %v1952_v40  ;;  %v1947_v38 = vld [vmem:[#allocation2 + $0x330] sm:$0xff]  ;;  %v1954_v40 = vld [vmem:[#allocation2 + $0x368] sm:$0xff] }
 0x64c   :  { %2000 = vmatpush1.bf16.msra.mxu1 %v1949_v41  ;;  %2043 = vmatpush1.bf16.msra.mxu0 %v1951_v43  ;;  %v1956_v41 = vld [vmem:[#allocation2 + $0x378] sm:$0xff]  ;;  %v1953_v43 = vld [vmem:[#allocation2 + $0x360] sm:$0xff] }
 0x64d   :  { %2001 = vmatprep.subr.bf16.mxu1 %v1958_v44  ;;  %2044 = vmatprep.subr.bf16.mxu0 %v1960_v48  ;;  %v1955_v44 = vld [vmem:[#allocation2 + $0x370] sm:$0xff]  ;;  %v1962_v48 = vld [vmem:[#allocation2 + $0x3a8] sm:$0xff] }
 0x650   :  { %2002 = vmatpush1.bf16.msra.mxu1 %v1957_v52  ;;  %2045 = vmatpush1.bf16.msra.mxu0 %v1959_v53  ;;  %v1964_v52 = vld [vmem:[#allocation2 + $0x3b8] sm:$0xff]  ;;  %v1961_v53 = vld [vmem:[#allocation2 + $0x3a0] sm:$0xff] }
 0x651   :  { %2003 = vmatprep.subr.bf16.mxu1 %v1966_v55  ;;  %2046 = vmatprep.subr.bf16.mxu0 %v1968_v56  ;;  %v1963_v55 = vld [vmem:[#allocation2 + $0x3b0] sm:$0xff]  ;;  %v1970_v56 = vld [vmem:[#allocation2 + $0x3e8] sm:$0xff] }
 0x654   :  { %2004 = vmatpush1.bf16.msra.mxu1 %v1965_v26  ;;  %2047 = vmatpush1.bf16.msra.mxu0 %v1967_v3  ;;  %v1972_v26 = vld [vmem:[#allocation2 + $0x3f8] sm:$0xff]  ;;  %v1969_v3 = vld [vmem:[#allocation2 + $0x3e0] sm:$0xff] }
 0x655   :  { %2059 = vmatprep.subr.bf16.mxu1 %v1850_v34  ;;  %2102 = vmatprep.subr.bf16.mxu0 %v1852_v39  ;;  %v1971_v34 = vld [vmem:[#allocation2 + $0x3f0] sm:$0xff] }
 0x657   :  { %2006 = vmatmul.mubr.bf16.vlgmr.msra.gmra.mrb[4].mxu1 %v6460_v20  ;;  %2049 = vmatmul.mubr.bf16.vlgmr.msra.gmra.mrb[4].mxu0 %v6460_v20 }
 0x658   :  { %2060 = vmatpush1.bf16.msra.mxu1 %v1849_v58  ;;  %2103 = vmatpush1.bf16.msra.mxu0 %v1851_v19 }
 0x659   :  { %2061 = vmatprep.subr.bf16.mxu1 %v1858_v16  ;;  %2104 = vmatprep.subr.bf16.mxu0 %v1860_v15 }
 0x65a   :  { %2091 = vmatprep.mubr.bf16.mxu1 %v6459_v33  ;;  %2134 = vmatprep.mubr.bf16.mxu0 %v6459_v33  ;;  %v1881_v33 = vld [vmem:[#allocation2 + $0x120] sm:$0xff] }
 0x65c   :  { %2062 = vmatpush1.bf16.msra.mxu1 %v1857_v21  ;;  %2105 = vmatpush1.bf16.msra.mxu0 %v1859_v17 }
 0x65d   :  { %2063 = vmatprep.subr.bf16.mxu1 %v1866_v22  ;;  %2106 = vmatprep.subr.bf16.mxu0 %v1868_v25 }
 0x660   :  { %2064 = vmatpush1.bf16.msra.mxu1 %v1865_v23  ;;  %2107 = vmatpush1.bf16.msra.mxu0 %v1867_v57 }
 0x661   :  { %2065 = vmatprep.subr.bf16.mxu1 %v1874_v24  ;;  %2108 = vmatprep.subr.bf16.mxu0 %v1876_v28 }
 0x664   :  { %2066 = vmatpush1.bf16.msra.mxu1 %v1873_v32  ;;  %2109 = vmatpush1.bf16.msra.mxu0 %v1875_v4 }
 0x665   :  { %2067 = vmatprep.subr.bf16.mxu1 %v1882_v8  ;;  %2110 = vmatprep.subr.bf16.mxu0 %v1884_v27 }
 0x668   :  { %2068 = vmatpush1.bf16.msra.mxu1 %v1881_v33  ;;  %2111 = vmatpush1.bf16.msra.mxu0 %v1883_v29 }
 0x669   :  { %2069 = vmatprep.subr.bf16.mxu1 %v1890_v30  ;;  %2112 = vmatprep.subr.bf16.mxu0 %v1892_v1 }
 0x66c   :  { %2070 = vmatpush1.bf16.msra.mxu1 %v1889_v9  ;;  %2113 = vmatpush1.bf16.msra.mxu0 %v1891_v63 }
 0x66d   :  { %2071 = vmatprep.subr.bf16.mxu1 %v1898_v0  ;;  %2114 = vmatprep.subr.bf16.mxu0 %v1900_v42 }
 0x670   :  { %2072 = vmatpush1.bf16.msra.mxu1 %v1897_v45  ;;  %2115 = vmatpush1.bf16.msra.mxu0 %v1899_v54 }
 0x671   :  { %2073 = vmatprep.subr.bf16.mxu1 %v1906_v11  ;;  %2116 = vmatprep.subr.bf16.mxu0 %v1908_v12 }
 0x674   :  { %2074 = vmatpush1.bf16.msra.mxu1 %v1905_v14  ;;  %2117 = vmatpush1.bf16.msra.mxu0 %v1907_v2 }
 0x675   :  { %2075 = vmatprep.subr.bf16.mxu1 %v1914_v46  ;;  %2118 = vmatprep.subr.bf16.mxu0 %v1916_v31 }
 0x678   :  { %2076 = vmatpush1.bf16.msra.mxu1 %v1913_v59  ;;  %2119 = vmatpush1.bf16.msra.mxu0 %v1915_v62 }
 0x679   :  { %2077 = vmatprep.subr.bf16.mxu1 %v1922_v10  ;;  %2120 = vmatprep.subr.bf16.mxu0 %v1924_v5 }
 0x67c   :  { %2078 = vmatpush1.bf16.msra.mxu1 %v1921_v18  ;;  %2121 = vmatpush1.bf16.msra.mxu0 %v1923_v60 }
 0x67d   :  { %2079 = vmatprep.subr.bf16.mxu1 %v1930_v51  ;;  %2122 = vmatprep.subr.bf16.mxu0 %v1932_v49 }
 0x680   :  { %2080 = vmatpush1.bf16.msra.mxu1 %v1929_v47  ;;  %2123 = vmatpush1.bf16.msra.mxu0 %v1931_v61 }
 0x681   :  { %2081 = vmatprep.subr.bf16.mxu1 %v1938_v50  ;;  %2124 = vmatprep.subr.bf16.mxu0 %v1940_v6 }
 0x684   :  { %2082 = vmatpush1.bf16.msra.mxu1 %v1937_v7  ;;  %2125 = vmatpush1.bf16.msra.mxu0 %v1939_v13 }
 0x685   :  { %2083 = vmatprep.subr.bf16.mxu1 %v1946_v35  ;;  %2126 = vmatprep.subr.bf16.mxu0 %v1948_v36 }
 0x688   :  { %2084 = vmatpush1.bf16.msra.mxu1 %v1945_v37  ;;  %2127 = vmatpush1.bf16.msra.mxu0 %v1947_v38 }
 0x689   :  { %2085 = vmatprep.subr.bf16.mxu1 %v1954_v40  ;;  %2128 = vmatprep.subr.bf16.mxu0 %v1956_v41 }
 0x68c   :  { %2086 = vmatpush1.bf16.msra.mxu1 %v1953_v43  ;;  %2129 = vmatpush1.bf16.msra.mxu0 %v1955_v44 }
 0x68d   :  { %2087 = vmatprep.subr.bf16.mxu1 %v1962_v48  ;;  %2130 = vmatprep.subr.bf16.mxu0 %v1964_v52 }
 0x690   :  { %2088 = vmatpush1.bf16.msra.mxu1 %v1961_v53  ;;  %2131 = vmatpush1.bf16.msra.mxu0 %v1963_v55 }
 0x691   :  { %2089 = vmatprep.subr.bf16.mxu1 %v1970_v56  ;;  %2132 = vmatprep.subr.bf16.mxu0 %v1972_v26 }
 0x694   :  { %2090 = vmatpush1.bf16.msra.mxu1 %v1969_v3  ;;  %2133 = vmatpush1.bf16.msra.mxu0 %v1971_v34 }
 0x697   :  { %2092 = vmatmul.mubr.bf16.vlgmr.msra.gmra.mrb[8].mxu1 %v6460_v20  ;;  %2135 = vmatmul.mubr.bf16.vlgmr.msra.gmra.mrb[8].mxu0 %v6460_v20 }
 0x698   :  { %4597 = dma.done.wait [#allocation3 + $0x1], 16384 }
 0x699   :  { %4598 = vsyncadd [#allocation3 + $0x1], 4294950912  ;;  %v6461_v39 = vld [vmem:[#allocation74_spill] sm:$0xff]  ;;  %v6462_v58 = vmov 2   ;;  %v6463_v19 = vmov 1   ;;  %v2163_v15 = vld [vmem:[#allocation2 + $0x400] sm:$0xff] }
 0x69a   :  { %2323 = vmatprep.mubr.bf16.mxu1 %v6461_v39  ;;  %2366 = vmatprep.mubr.bf16.mxu0 %v6461_v39  ;;  %v2164_v16 = vld [vmem:[#allocation2 + $0x408] sm:$0xff]  ;;  %v2171_v17 = vld [vmem:[#allocation2 + $0x440] sm:$0xff]  ;;  %v2166_v8 = vld [vmem:[#allocation2 + $0x418] sm:$0xff]  ;;  %vm4670_vm9 = vmmov 0   ;;  %vm3652_vm10 = vcmask 1024   ;;  %s6488_s28 = sld [smem:[#allocation170_spill]] }
 0x69b   :  { %4063 = vset.pattern.permute.xlu1 %v6462_v58  ;;  %4062 = vset.pattern.permute.xlu0 %v6463_v19  ;;  %v2172_v21 = vld [vmem:[#allocation2 + $0x448] sm:$0xff]  ;;  %v2179_v20 = vld [vmem:[#allocation2 + $0x480] sm:$0xff]  ;;  %v2165_v27 = vld [vmem:[#allocation2 + $0x410] sm:$0xff] }
 0x69c   :  { %2291 = vmatprep.subr.bf16.mxu1 %v2164_v16  ;;  %v2180_v22 = vld [vmem:[#allocation2 + $0x488] sm:$0xff]  ;;  %v2187_v23 = vld [vmem:[#allocation2 + $0x4c0] sm:$0xff]  ;;  %2334 = vmatprep.subr.bf16.mxu0 %v2166_v8  ;;  %v2174_v33 = vld [vmem:[#allocation2 + $0x458] sm:$0xff] }
 0x69d   :  { %2292 = vmatpush1.bf16.msra.mxu1 %v2163_v15  ;;  %v2188_v25 = vld [vmem:[#allocation2 + $0x4c8] sm:$0xff]  ;;  %v2195_v24 = vld [vmem:[#allocation2 + $0x500] sm:$0xff]  ;;  %2335 = vmatpush1.bf16.msra.mxu0 %v2165_v27  ;;  %v2173_v1 = vld [vmem:[#allocation2 + $0x450] sm:$0xff] }
 0x69e   :  { %2293 = vmatprep.subr.bf16.mxu1 %v2172_v21  ;;  %v2196_v57 = vld [vmem:[#allocation2 + $0x508] sm:$0xff]  ;;  %v2203_v32 = vld [vmem:[#allocation2 + $0x540] sm:$0xff]  ;;  %2336 = vmatprep.subr.bf16.mxu0 %v2174_v33  ;;  %v2182_v9 = vld [vmem:[#allocation2 + $0x498] sm:$0xff] }
 0x69f   :  { %v2204_v28 = vld [vmem:[#allocation2 + $0x548] sm:$0xff]  ;;  %v2211_v29 = vld [vmem:[#allocation2 + $0x580] sm:$0xff]  ;;  %v2181_v42 = vld [vmem:[#allocation2 + $0x490] sm:$0xff] }
 0x6a0   :  { %v2212_v4 = vld [vmem:[#allocation2 + $0x588] sm:$0xff]  ;;  %v2219_v63 = vld [vmem:[#allocation2 + $0x5c0] sm:$0xff]  ;;  %v2190_v45 = vld [vmem:[#allocation2 + $0x4d8] sm:$0xff] }
 0x6a1   :  { %2294 = vmatpush1.bf16.msra.mxu1 %v2171_v17  ;;  %v2220_v30 = vld [vmem:[#allocation2 + $0x5c8] sm:$0xff]  ;;  %2337 = vmatpush1.bf16.msra.mxu0 %v2173_v1  ;;  %v2227_v54 = vld [vmem:[#allocation2 + $0x600] sm:$0xff]  ;;  %v2189_v12 = vld [vmem:[#allocation2 + $0x4d0] sm:$0xff] }
 0x6a2   :  { %2295 = vmatprep.subr.bf16.mxu1 %v2180_v22  ;;  %v2228_v0 = vld [vmem:[#allocation2 + $0x608] sm:$0xff]  ;;  %2338 = vmatprep.subr.bf16.mxu0 %v2182_v9  ;;  %v2198_v14 = vld [vmem:[#allocation2 + $0x518] sm:$0xff]  ;;  %v2235_v2 = vld [vmem:[#allocation2 + $0x640] sm:$0xff] }
 0x6a3   :  { %v2236_v11 = vld [vmem:[#allocation2 + $0x648] sm:$0xff]  ;;  %v2197_v31 = vld [vmem:[#allocation2 + $0x510] sm:$0xff]  ;;  %v2206_v59 = vld [vmem:[#allocation2 + $0x558] sm:$0xff] }
 0x6a4   :  { %v2244_v46 = vld [vmem:[#allocation2 + $0x688] sm:$0xff]  ;;  %v2243_v62 = vld [vmem:[#allocation2 + $0x680] sm:$0xff]  ;;  %v2205_v5 = vld [vmem:[#allocation2 + $0x550] sm:$0xff] }
 0x6a5   :  { %2296 = vmatpush1.bf16.msra.mxu1 %v2179_v20  ;;  %2339 = vmatpush1.bf16.msra.mxu0 %v2181_v42  ;;  %v2252_v10 = vld [vmem:[#allocation2 + $0x6c8] sm:$0xff]  ;;  %v2214_v18 = vld [vmem:[#allocation2 + $0x598] sm:$0xff]  ;;  %v2251_v60 = vld [vmem:[#allocation2 + $0x6c0] sm:$0xff] }
 0x6a6   :  { %2297 = vmatprep.subr.bf16.mxu1 %v2188_v25  ;;  %2340 = vmatprep.subr.bf16.mxu0 %v2190_v45  ;;  %v2260_v51 = vld [vmem:[#allocation2 + $0x708] sm:$0xff]  ;;  %v2213_v49 = vld [vmem:[#allocation2 + $0x590] sm:$0xff]  ;;  %v2222_v47 = vld [vmem:[#allocation2 + $0x5d8] sm:$0xff] }
 0x6a7   :  { %v2259_v61 = vld [vmem:[#allocation2 + $0x700] sm:$0xff]  ;;  %v2268_v50 = vld [vmem:[#allocation2 + $0x748] sm:$0xff]  ;;  %v2221_v6 = vld [vmem:[#allocation2 + $0x5d0] sm:$0xff] }
 0x6a8   :  { %v2230_v7 = vld [vmem:[#allocation2 + $0x618] sm:$0xff]  ;;  %v2267_v13 = vld [vmem:[#allocation2 + $0x740] sm:$0xff]  ;;  %v2276_v35 = vld [vmem:[#allocation2 + $0x788] sm:$0xff] }
 0x6a9   :  { %2298 = vmatpush1.bf16.msra.mxu1 %v2187_v23  ;;  %2341 = vmatpush1.bf16.msra.mxu0 %v2189_v12  ;;  %v2229_v36 = vld [vmem:[#allocation2 + $0x610] sm:$0xff]  ;;  %v2238_v37 = vld [vmem:[#allocation2 + $0x658] sm:$0xff]  ;;  %v2275_v38 = vld [vmem:[#allocation2 + $0x780] sm:$0xff] }
 0x6aa   :  { %2299 = vmatprep.subr.bf16.mxu1 %v2196_v57  ;;  %2342 = vmatprep.subr.bf16.mxu0 %v2198_v14  ;;  %v2284_v40 = vld [vmem:[#allocation2 + $0x7c8] sm:$0xff]  ;;  %v2237_v41 = vld [vmem:[#allocation2 + $0x650] sm:$0xff]  ;;  %v2246_v43 = vld [vmem:[#allocation2 + $0x698] sm:$0xff] }
 0x6ab   :  { %v2283_v44 = vld [vmem:[#allocation2 + $0x7c0] sm:$0xff]  ;;  %v2168_v48 = vld [vmem:[#allocation2 + $0x428] sm:$0xff]  ;;  %v2245_v52 = vld [vmem:[#allocation2 + $0x690] sm:$0xff] }
 0x6ac   :  { %v2254_v53 = vld [vmem:[#allocation2 + $0x6d8] sm:$0xff]  ;;  %v2167_v55 = vld [vmem:[#allocation2 + $0x420] sm:$0xff]  ;;  %v2176_v56 = vld [vmem:[#allocation2 + $0x468] sm:$0xff] }
 0x6ad   :  { %2300 = vmatpush1.bf16.msra.mxu1 %v2195_v24  ;;  %2343 = vmatpush1.bf16.msra.mxu0 %v2197_v31  ;;  %v2253_v26 = vld [vmem:[#allocation2 + $0x6d0] sm:$0xff]  ;;  %v6464_v3 = vld [vmem:[#allocation73_spill] sm:$0xff]  ;;  %v2262_v34 = vld [vmem:[#allocation2 + $0x718] sm:$0xff] }
 0x6ae   :  { %2301 = vmatprep.subr.bf16.mxu1 %v2204_v28  ;;  %2344 = vmatprep.subr.bf16.mxu0 %v2206_v59  ;;  %v2175_v16 = vld [vmem:[#allocation2 + $0x460] sm:$0xff]  ;;  %v2184_v15 = vld [vmem:[#allocation2 + $0x4a8] sm:$0xff]  ;;  %v2261_v21 = vld [vmem:[#allocation2 + $0x710] sm:$0xff] }
 0x6af   :  { %v2270_v17 = vld [vmem:[#allocation2 + $0x758] sm:$0xff]  ;;  %v2183_v22 = vld [vmem:[#allocation2 + $0x4a0] sm:$0xff]  ;;  %v2192_v20 = vld [vmem:[#allocation2 + $0x4e8] sm:$0xff] }
 0x6b0   :  { %v2269_v25 = vld [vmem:[#allocation2 + $0x750] sm:$0xff]  ;;  %v2278_v23 = vld [vmem:[#allocation2 + $0x798] sm:$0xff]  ;;  %v2191_v57 = vld [vmem:[#allocation2 + $0x4e0] sm:$0xff] }
 0x6b1   :  { %2302 = vmatpush1.bf16.msra.mxu1 %v2203_v32  ;;  %2345 = vmatpush1.bf16.msra.mxu0 %v2205_v5  ;;  %v2200_v24 = vld [vmem:[#allocation2 + $0x528] sm:$0xff]  ;;  %v2277_v28 = vld [vmem:[#allocation2 + $0x790] sm:$0xff]  ;;  %v2286_v32 = vld [vmem:[#allocation2 + $0x7d8] sm:$0xff] }
 0x6b2   :  { %2303 = vmatprep.subr.bf16.mxu1 %v2212_v4  ;;  %2346 = vmatprep.subr.bf16.mxu0 %v2214_v18  ;;  %v2199_v4 = vld [vmem:[#allocation2 + $0x520] sm:$0xff]  ;;  %v2208_v8 = vld [vmem:[#allocation2 + $0x568] sm:$0xff]  ;;  %v2285_v27 = vld [vmem:[#allocation2 + $0x7d0] sm:$0xff] }
 0x6b3   :  { %v2170_v33 = vld [vmem:[#allocation2 + $0x438] sm:$0xff]  ;;  %v2169_v1 = vld [vmem:[#allocation2 + $0x430] sm:$0xff]  ;;  %v2247_v18 = vld [vmem:[#allocation2 + $0x6a0] sm:$0xff] }
 0x6b4   :  { %v2178_v9 = vld [vmem:[#allocation2 + $0x478] sm:$0xff]  ;;  %v2177_v42 = vld [vmem:[#allocation2 + $0x470] sm:$0xff] }
 0x6b5   :  { %2304 = vmatpush1.bf16.msra.mxu1 %v2211_v29  ;;  %2347 = vmatpush1.bf16.msra.mxu0 %v2213_v49  ;;  %v2207_v29 = vld [vmem:[#allocation2 + $0x560] sm:$0xff]  ;;  %v2186_v45 = vld [vmem:[#allocation2 + $0x4b8] sm:$0xff]  ;;  %v2185_v12 = vld [vmem:[#allocation2 + $0x4b0] sm:$0xff] }
 0x6b6   :  { %2305 = vmatprep.subr.bf16.mxu1 %v2220_v30  ;;  %2348 = vmatprep.subr.bf16.mxu0 %v2222_v47  ;;  %v2216_v30 = vld [vmem:[#allocation2 + $0x5a8] sm:$0xff]  ;;  %v2194_v14 = vld [vmem:[#allocation2 + $0x4f8] sm:$0xff]  ;;  %v2193_v31 = vld [vmem:[#allocation2 + $0x4f0] sm:$0xff] }
 0x6b7   :  { %v2202_v59 = vld [vmem:[#allocation2 + $0x538] sm:$0xff]  ;;  %v2255_v47 = vld [vmem:[#allocation2 + $0x6e0] sm:$0xff] }
 0x6b8   :  { %v2210_v5 = vld [vmem:[#allocation2 + $0x578] sm:$0xff] }
 0x6b9   :  { %2306 = vmatpush1.bf16.msra.mxu1 %v2219_v63  ;;  %2349 = vmatpush1.bf16.msra.mxu0 %v2221_v6  ;;  %v2215_v63 = vld [vmem:[#allocation2 + $0x5a0] sm:$0xff]  ;;  %v2218_v49 = vld [vmem:[#allocation2 + $0x5b8] sm:$0xff] }
 0x6ba   :  { %2307 = vmatprep.subr.bf16.mxu1 %v2228_v0  ;;  %2350 = vmatprep.subr.bf16.mxu0 %v2230_v7  ;;  %v2224_v0 = vld [vmem:[#allocation2 + $0x5e8] sm:$0xff]  ;;  %v2226_v6 = vld [vmem:[#allocation2 + $0x5f8] sm:$0xff]  ;;  %v2263_v7 = vld [vmem:[#allocation2 + $0x720] sm:$0xff] }
 0x6bd   :  { %2308 = vmatpush1.bf16.msra.mxu1 %v2227_v54  ;;  %2351 = vmatpush1.bf16.msra.mxu0 %v2229_v36  ;;  %v2223_v54 = vld [vmem:[#allocation2 + $0x5e0] sm:$0xff]  ;;  %v2234_v36 = vld [vmem:[#allocation2 + $0x638] sm:$0xff] }
 0x6be   :  { %2309 = vmatprep.subr.bf16.mxu1 %v2236_v11  ;;  %2352 = vmatprep.subr.bf16.mxu0 %v2238_v37  ;;  %v2232_v11 = vld [vmem:[#allocation2 + $0x628] sm:$0xff]  ;;  %v2271_v37 = vld [vmem:[#allocation2 + $0x760] sm:$0xff] }
 0x6c1   :  { %2310 = vmatpush1.bf16.msra.mxu1 %v2235_v2  ;;  %2353 = vmatpush1.bf16.msra.mxu0 %v2237_v41  ;;  %v2231_v2 = vld [vmem:[#allocation2 + $0x620] sm:$0xff]  ;;  %v2242_v41 = vld [vmem:[#allocation2 + $0x678] sm:$0xff] }
 0x6c2   :  { %2311 = vmatprep.subr.bf16.mxu1 %v2244_v46  ;;  %2354 = vmatprep.subr.bf16.mxu0 %v2246_v43  ;;  %v2240_v46 = vld [vmem:[#allocation2 + $0x668] sm:$0xff]  ;;  %v2279_v43 = vld [vmem:[#allocation2 + $0x7a0] sm:$0xff] }
 0x6c5   :  { %2312 = vmatpush1.bf16.msra.mxu1 %v2243_v62  ;;  %2355 = vmatpush1.bf16.msra.mxu0 %v2245_v52  ;;  %v2248_v62 = vld [vmem:[#allocation2 + $0x6a8] sm:$0xff]  ;;  %v2250_v52 = vld [vmem:[#allocation2 + $0x6b8] sm:$0xff] }
 0x6c6   :  { %2313 = vmatprep.subr.bf16.mxu1 %v2252_v10  ;;  %2356 = vmatprep.subr.bf16.mxu0 %v2254_v53  ;;  %v2201_v10 = vld [vmem:[#allocation2 + $0x530] sm:$0xff]  ;;  %v2287_v53 = vld [vmem:[#allocation2 + $0x7e0] sm:$0xff] }
 0x6c9   :  { %2314 = vmatpush1.bf16.msra.mxu1 %v2251_v60  ;;  %2357 = vmatpush1.bf16.msra.mxu0 %v2253_v26  ;;  %v2256_v60 = vld [vmem:[#allocation2 + $0x6e8] sm:$0xff]  ;;  %v6467_v26 = vld [vmem:[#allocation79_spill] sm:$0xff] }
 0x6ca   :  { %2315 = vmatprep.subr.bf16.mxu1 %v2260_v51  ;;  %2358 = vmatprep.subr.bf16.mxu0 %v2262_v34  ;;  %v2209_v51 = vld [vmem:[#allocation2 + $0x570] sm:$0xff]  ;;  %v6468_v34 = vmax.f32 %v6467_v26, 0.0 }
 0x6cd   :  { %2316 = vmatpush1.bf16.msra.mxu1 %v2259_v61  ;;  %2359 = vmatpush1.bf16.msra.mxu0 %v2261_v21  ;;  %v2264_v61 = vld [vmem:[#allocation2 + $0x728] sm:$0xff]  ;;  %v2258_v21 = vld [vmem:[#allocation2 + $0x6f8] sm:$0xff] }
 0x6ce   :  { %2317 = vmatprep.subr.bf16.mxu1 %v2268_v50  ;;  %2360 = vmatprep.subr.bf16.mxu0 %v2270_v17  ;;  %v2217_v50 = vld [vmem:[#allocation2 + $0x5b0] sm:$0xff]  ;;  %v3568_v17 = vld [vmem:[%s6199_s23] sm:$0xff] }
 0x6d1   :  { %2318 = vmatpush1.bf16.msra.mxu1 %v2267_v13  ;;  %2361 = vmatpush1.bf16.msra.mxu0 %v2269_v25  ;;  %v2272_v13 = vld [vmem:[#allocation2 + $0x768] sm:$0xff] }
 0x6d2   :  { %2319 = vmatprep.subr.bf16.mxu1 %v2276_v35  ;;  %2362 = vmatprep.subr.bf16.mxu0 %v2278_v23  ;;  %v2225_v35 = vld [vmem:[#allocation2 + $0x5f0] sm:$0xff]  ;;  %v6470_v25 = vld [vmem:[#allocation61_spill] sm:$0xff] }
 0x6d3   :  { %v6471_v23 = vld [vmem:[#allocation62_spill] sm:$0xff] }
 0x6d5   :  { %2320 = vmatpush1.bf16.msra.mxu1 %v2275_v38  ;;  %2363 = vmatpush1.bf16.msra.mxu0 %v2277_v28  ;;  %v2280_v38 = vld [vmem:[#allocation2 + $0x7a8] sm:$0xff]  ;;  %v2274_v28 = vld [vmem:[#allocation2 + $0x778] sm:$0xff] }
 0x6d6   :  { %2321 = vmatprep.subr.bf16.mxu1 %v2284_v40  ;;  %2364 = vmatprep.subr.bf16.mxu0 %v2286_v32  ;;  %v2233_v40 = vld [vmem:[#allocation2 + $0x630] sm:$0xff] }
 0x6d7   :  { %v2273_v32 = vld [vmem:[#allocation2 + $0x770] sm:$0xff] }
 0x6d9   :  { %2322 = vmatpush1.bf16.msra.mxu1 %v2283_v44  ;;  %2365 = vmatpush1.bf16.msra.mxu0 %v2285_v27  ;;  %v2288_v44 = vld [vmem:[#allocation2 + $0x7e8] sm:$0xff]  ;;  %v2290_v27 = vld [vmem:[#allocation2 + $0x7f8] sm:$0xff] }
 0x6da   :  { %2377 = vmatprep.subr.bf16.mxu1 %v2168_v48  ;;  %2420 = vmatprep.subr.bf16.mxu0 %v2170_v33  ;;  %v2241_v48 = vld [vmem:[#allocation2 + $0x670] sm:$0xff] }
 0x6db   :  { %v2289_v33 = vld [vmem:[#allocation2 + $0x7f0] sm:$0xff] }
 0x6dc   :  { %2324 = vmatmul.mubr.bf16.vlgmr.msra.gmra.mrb[4].mxu1 %v6464_v3  ;;  %2367 = vmatmul.mubr.bf16.vlgmr.msra.gmra.mrb[4].mxu0 %v6464_v3 }
 0x6dd   :  { %2378 = vmatpush1.bf16.msra.mxu1 %v2167_v55  ;;  %2409 = vmatprep.mubr.bf16.mxu1 %v6461_v39  ;;  %v6465_v55 = vld [vmem:[#allocation78_spill] sm:$0xff] }
 0x6de   :  { %2379 = vmatprep.subr.bf16.mxu1 %v2176_v56  ;;  %2421 = vmatpush1.bf16.msra.mxu0 %v2169_v1  ;;  %v6466_v56 = vmax.f32 %v6465_v55, 0.0  ;;  %v4658_v55 = vmov 12  }
 0x6df   :  { %2422 = vmatprep.subr.bf16.mxu0 %v2178_v9  ;;  %2452 = vmatprep.mubr.bf16.mxu0 %v6461_v39  ;;  %v2239_v39 = vld [vmem:[#allocation2 + $0x660] sm:$0xff] }
 0x6e1   :  { %2380 = vmatpush1.bf16.msra.mxu1 %v2175_v16  ;;  %v3861_v16 = vpack.c.bf16 %v6468_v34, %v6466_v56  ;;  %v4660_v34 = vmov 20  }
 0x6e2   :  { %2381 = vmatprep.subr.bf16.mxu1 %v2184_v15  ;;  %2423 = vmatpush1.bf16.msra.mxu0 %v2177_v42  ;;  %v2249_v15 = vld [vmem:[#allocation2 + $0x6b0] sm:$0xff] }
 0x6e3   :  { %2424 = vmatprep.subr.bf16.mxu0 %v2186_v45 }
 0x6e5   :  { %2382 = vmatpush1.bf16.msra.mxu1 %v2183_v22  ;;  %v2257_v22 = vld [vmem:[#allocation2 + $0x6f0] sm:$0xff] }
 0x6e6   :  { %2383 = vmatprep.subr.bf16.mxu1 %v2192_v20  ;;  %2425 = vmatpush1.bf16.msra.mxu0 %v2185_v12  ;;  %v2266_v20 = vld [vmem:[#allocation2 + $0x738] sm:$0xff] }
 0x6e7   :  { %2426 = vmatprep.subr.bf16.mxu0 %v2194_v14 }
 0x6e9   :  { %2384 = vmatpush1.bf16.msra.mxu1 %v2191_v57  ;;  %v6472_v57 = vmov %v6466_v56  ;;  %v4659_v56 = vmov 22  }
 0x6ea   :  { %2385 = vmatprep.subr.bf16.mxu1 %v2200_v24  ;;  %2427 = vmatpush1.bf16.msra.mxu0 %v2193_v31  ;;  %v2265_v24 = vld [vmem:[#allocation2 + $0x730] sm:$0xff]  ;;  %v4642_v31 = vmov 5  }
 0x6eb   :  { %2428 = vmatprep.subr.bf16.mxu0 %v2202_v59 }
 0x6ed   :  { %2386 = vmatpush1.bf16.msra.mxu1 %v2199_v4  ;;  %v2282_v4 = vld [vmem:[#allocation2 + $0x7b8] sm:$0xff] }
 0x6ee   :  { %2387 = vmatprep.subr.bf16.mxu1 %v2208_v8  ;;  %2429 = vmatpush1.bf16.msra.mxu0 %v2201_v10  ;;  %v2281_v8 = vld [vmem:[#allocation2 + $0x7b0] sm:$0xff] }
 0x6ef   :  { %2430 = vmatprep.subr.bf16.mxu0 %v2210_v5 }
 0x6f1   :  { %2388 = vmatpush1.bf16.msra.mxu1 %v2207_v29  ;;  %v5723_v29 = vld [vmem:[#allocation25] sm:$0xff] }
 0x6f2   :  { %2389 = vmatprep.subr.bf16.mxu1 %v2216_v30  ;;  %2431 = vmatpush1.bf16.msra.mxu0 %v2209_v51  ;;  %v6473_v30 = vld [vmem:[#allocation70_spill] sm:$0xff]  ;;  %v4644_v51 = vmov 9  }
 0x6f3   :  { %2432 = vmatprep.subr.bf16.mxu0 %v2218_v49  ;;  %v5727_v1 = vrot.slane %v5723_v29, %v6473_v30 }
 0x6f5   :  { %2390 = vmatpush1.bf16.msra.mxu1 %v2215_v63 }
 0x6f6   :  { %2391 = vmatprep.subr.bf16.mxu1 %v2224_v0  ;;  %2433 = vmatpush1.bf16.msra.mxu0 %v2217_v50  ;;  %v4647_v50 = vmov 10  }
 0x6f7   :  { %2434 = vmatprep.subr.bf16.mxu0 %v2226_v6  ;;  %v4648_v6 = vmov 17  }
 0x6f9   :  { %2392 = vmatpush1.bf16.msra.mxu1 %v2223_v54 }
 0x6fa   :  { %2393 = vmatprep.subr.bf16.mxu1 %v2232_v11  ;;  %2435 = vmatpush1.bf16.msra.mxu0 %v2225_v35 }
 0x6fb   :  { %2436 = vmatprep.subr.bf16.mxu0 %v2234_v36 }
 0x6fd   :  { %2394 = vmatpush1.bf16.msra.mxu1 %v2231_v2 }
 0x6fe   :  { %2395 = vmatprep.subr.bf16.mxu1 %v2240_v46  ;;  %2437 = vmatpush1.bf16.msra.mxu0 %v2233_v40  ;;  %v6474_v46 = vmov 3   ;;  %v4652_v40 = vmov 25  }
 0x6ff   :  { %2438 = vmatprep.subr.bf16.mxu0 %v2242_v41 }
 0x701   :  { %2396 = vmatpush1.bf16.msra.mxu1 %v2239_v39  ;;  %v6475_v39 = vld [vmem:[#allocation64_spill] sm:$0xff] }
 0x702   :  { %2397 = vmatprep.subr.bf16.mxu1 %v2248_v62  ;;  %2439 = vmatpush1.bf16.msra.mxu0 %v2241_v48  ;;  %v5760_v62 = vrot.slane %v5723_v29, %v6475_v39  ;;  %v4655_v48 = vmov 18  }
 0x703   :  { %2440 = vmatprep.subr.bf16.mxu0 %v2250_v52  ;;  %v4656_v52 = vmov 31  }
 0x705   :  { %2398 = vmatpush1.bf16.msra.mxu1 %v2247_v18 }
 0x706   :  { %2399 = vmatprep.subr.bf16.mxu1 %v2256_v60  ;;  %2441 = vmatpush1.bf16.msra.mxu0 %v2249_v15  ;;  %v4643_v60 = vmov 6   ;;  %v4662_v15 = vmov 26  }
 0x707   :  { %2442 = vmatprep.subr.bf16.mxu0 %v2258_v21  ;;  %v4663_v21 = vmov 27  }
 0x709   :  { %2400 = vmatpush1.bf16.msra.mxu1 %v2255_v47  ;;  %v4645_v47 = vmov 7  }
 0x70a   :  { %2401 = vmatprep.subr.bf16.mxu1 %v2264_v61  ;;  %2443 = vmatpush1.bf16.msra.mxu0 %v2257_v22  ;;  %v4646_v61 = vmov 13   ;;  %v4664_v22 = vmov 30  }
 0x70b   :  { %2444 = vmatprep.subr.bf16.mxu0 %v2266_v20  ;;  %v6477_v20 = vmov 4  }
 0x70d   :  { %2402 = vmatpush1.bf16.msra.mxu1 %v2263_v7  ;;  %v4649_v7 = vmov 11  }
 0x70e   :  { %2403 = vmatprep.subr.bf16.mxu1 %v2272_v13  ;;  %2445 = vmatpush1.bf16.msra.mxu0 %v2265_v24  ;;  %v4650_v13 = vmov 21  }
 0x70f   :  { %2446 = vmatprep.subr.bf16.mxu0 %v2274_v28 }
 0x711   :  { %2404 = vmatpush1.bf16.msra.mxu1 %v2271_v37 }
 0x712   :  { %2405 = vmatprep.subr.bf16.mxu1 %v2280_v38  ;;  %2447 = vmatpush1.bf16.msra.mxu0 %v2273_v32  ;;  %v4651_v38 = vmov 14  }
 0x713   :  { %2448 = vmatprep.subr.bf16.mxu0 %v2282_v4 }
 0x715   :  { %2406 = vmatpush1.bf16.msra.mxu1 %v2279_v43  ;;  %v4653_v43 = vmov 15  }
 0x716   :  { %2407 = vmatprep.subr.bf16.mxu1 %v2288_v44  ;;  %2449 = vmatpush1.bf16.msra.mxu0 %v2281_v8  ;;  %v4654_v44 = vmov 29  }
 0x717   :  { %2450 = vmatprep.subr.bf16.mxu0 %v2290_v27 }
 0x719   :  { %2408 = vmatpush1.bf16.msra.mxu1 %v2287_v53  ;;  %v4657_v53 = vmov 19  }
 0x71a   :  { %3863 = vmatprep.subr.msk.bf16.mxu1 %vm5104_vm3, %v3861_v16  ;;  %2451 = vmatpush1.bf16.msra.mxu0 %v2289_v33 }
 0x71c   :  { %2410 = vmatmul.mubr.bf16.vlgmr.msra.gmra.mrb[8].mxu1 %v6464_v3 }
 0x71d   :  { %3866 = vmatpush3.bf16.msk.msra.mxu1 %vm5104_vm3, %v3861_v16  ;;  %3801 = vmatprep.mubr.msk.f32.mxu1 %vm595_vm1, %v6470_v25  ;;  %v4661_v16 = vmov 23   ;;  %v4665_v25 = vmov 8  }
 0x71e   :  { %2453 = vmatmul.mubr.bf16.vlgmr.msra.gmra.mrb[8].mxu0 %v6464_v3 }
 0x724   :  { %3802 = vmatmul.mubr.msk.f32.vlgmr.msra.gmra.mrb[12].mxu1 %vm595_vm1, %v6471_v23  ;;  %v4666_v23 = vmov 16  }
 0x725   :  { %3812 = vmatprep.mubr.msk.f32.mxu1 %vm546_vm4, %v6472_v57  ;;  %v4667_v57 = vmov 24  }
 0x7af   :  { %v5729_v9 = vpop.f32.mrb[4].mxu1  ;;  %v5756_v59 = vpop.f32.mrb[4].mxu0 }
 0x7b0   :  { %v2327_v63 = vpop.f32.mrb[5].mxu1  ;;  %v2370_v10 = vpop.f32.mrb[5].mxu0 }
 0x7b1   :  { %v5732_v0 = vadd.f32 %v5727_v1, %v2327_v63  ;;  %v5734_v42 = vpop.f32.mrb[6].mxu1  ;;  %v5763_v5 = vadd.f32 %v5760_v62, %v2370_v10  ;;  %v5765_v18 = vpop.f32.mrb[6].mxu0 }
 0x7b2   :  { %v5736_v45 = vpop.f32.mrb[7].mxu1  ;;  %v5771_v49 = vpop.f32.mrb[7].mxu0 }
 0x7b3   :  { %v5858_v32 = vadd.f32 %v5727_v1, %v5736_v45 }
 0x7ef   :  { %v5738_v54 = vpop.f32.mrb[8].mxu1 }
 0x7f0   :  { %v5740_v11 = vpop.f32.mrb[9].mxu1 }
 0x7f1   :  { %v5742_v3 = vpop.f32.mrb[10].mxu1  ;;  %v5784_v35 = vpop.f32.mrb[8].mxu0 }
 0x7f2   :  { %v5744_v12 = vpop.f32.mrb[11].mxu1  ;;  %v5786_v36 = vpop.f32.mrb[9].mxu0 }
 0x7f3   :  { %v5788_v37 = vpop.f32.mrb[10].mxu0 }
 0x7f4   :  { %v5794_v41 = vpop.f32.mrb[11].mxu0 }
 0x7f7   :  { %v5746_v14 = vpop.f32.mrb[12].mxu1 }
 0x7f8   :  { %2657 = vperm.xlu1 %4063, %v5746_v14   ;;  %2637 = vperm.xlu0 %4062, %v5746_v14   ;;  %v5750_v2 = vpop.f32.mrb[13].mxu1 }
 0x7fc   :  { %4064 = vset.pattern.permute.xlu1 %v6474_v46  ;;  %4065 = vset.pattern.permute.xlu0 %v4642_v31 }
 0x7fd   :  { %2677 = vperm.xlu1 %4064, %v5746_v14   ;;  %2709 = vperm.xlu0 %4065, %v5746_v14  }
 0x801   :  { %4066 = vset.pattern.permute.xlu1 %v4643_v60  ;;  %4068 = vset.pattern.permute.xlu0 %v4644_v51 }
 0x802   :  { %2729 = vperm.xlu1 %4066, %v5746_v14   ;;  %2781 = vperm.xlu0 %4068, %v5746_v14  }
 0x806   :  { %4067 = vset.pattern.permute.xlu1 %v4645_v47  ;;  %4071 = vset.pattern.permute.xlu0 %v4646_v61 }
 0x807   :  { %2749 = vperm.xlu1 %4067, %v5746_v14   ;;  %2853 = vperm.xlu0 %4071, %v5746_v14  }
 0x80b   :  { %4069 = vset.pattern.permute.xlu1 %v4647_v50  ;;  %4074 = vset.pattern.permute.xlu0 %v4648_v6 }
 0x80c   :  { %2801 = vperm.xlu1 %4069, %v5746_v14   ;;  %2925 = vperm.xlu0 %4074, %v5746_v14  }
 0x810   :  { %4070 = vset.pattern.permute.xlu1 %v4649_v7  ;;  %4077 = vset.pattern.permute.xlu0 %v4650_v13 }
 0x811   :  { %2821 = vperm.xlu1 %4070, %v5746_v14   ;;  %2997 = vperm.xlu0 %4077, %v5746_v14  }
 0x815   :  { %4072 = vset.pattern.permute.xlu1 %v4651_v38  ;;  %4080 = vset.pattern.permute.xlu0 %v4652_v40 }
 0x816   :  { %2873 = vperm.xlu1 %4072, %v5746_v14   ;;  %3069 = vperm.xlu0 %4080, %v5746_v14  }
 0x81a   :  { %4073 = vset.pattern.permute.xlu1 %v4653_v43  ;;  %4083 = vset.pattern.permute.xlu0 %v4654_v44 }
 0x81b   :  { %2893 = vperm.xlu1 %4073, %v5746_v14   ;;  %3141 = vperm.xlu0 %4083, %v5746_v14  }
 0x81f   :  { %4075 = vset.pattern.permute.xlu1 %v4655_v48  ;;  %4086 = vset.pattern.permute.xlu0 %v4656_v52 }
 0x820   :  { %2945 = vperm.xlu1 %4075, %v5746_v14   ;;  %3181 = vperm.xlu0 %4086, %v5746_v14  }
 0x824   :  { %4076 = vset.pattern.permute.xlu1 %v4657_v53  ;;  %4089 = vset.pattern.permute.xlu0 %v4658_v55 }
 0x825   :  { %2965 = vperm.xlu1 %4076, %v5746_v14   ;;  %2841 = vperm.xlu0 %4089, %v5746_v14  }
 0x829   :  { %4078 = vset.pattern.permute.xlu1 %v4659_v56  ;;  %4091 = vset.pattern.permute.xlu0 %v4660_v34 }
 0x82a   :  { %3017 = vperm.xlu1 %4078, %v5746_v14   ;;  %2985 = vperm.xlu0 %4091, %v5746_v14  }
 0x82e   :  { %4079 = vset.pattern.permute.xlu1 %v4661_v16  ;;  %4093 = vset.pattern.permute.xlu0 %v6463_v19  ;;  %v6476_v19 = vmov 0  }
 0x82f   :  { %3037 = vperm.xlu1 %4079, %v5746_v14   ;;  %2633 = vperm.xlu0 %4093, %v5750_v2  }
 0x833   :  { %4081 = vset.pattern.permute.xlu1 %v4662_v15  ;;  %4095 = vset.pattern.permute.xlu0 %v6474_v46  ;;  %v2532_v46 = vadd.f32 %v5760_v62, %v5771_v49 }
 0x834   :  { %3089 = vperm.xlu1 %4081, %v5746_v14   ;;  %2673 = vperm.xlu0 %4095, %v5750_v2  }
 0x838   :  { %4082 = vset.pattern.permute.xlu1 %v4663_v21  ;;  %4098 = vset.pattern.permute.xlu0 %v4645_v47 }
 0x839   :  { %3109 = vperm.xlu1 %4082, %v5746_v14   ;;  %2745 = vperm.xlu0 %4098, %v5750_v2  }
 0x83d   :  { %4084 = vset.pattern.permute.xlu1 %v6476_v19  ;;  %4101 = vset.pattern.permute.xlu0 %v4649_v7 }
 0x83e   :  { %2627 = vperm.xlu1 %4084, %v5746_v14   ;;  %2817 = vperm.xlu0 %4101, %v5750_v2  }
 0x842   :  { %4085 = vset.pattern.permute.xlu1 %v4664_v22  ;;  %4104 = vset.pattern.permute.xlu0 %v4653_v43 }
 0x843   :  { %3161 = vperm.xlu1 %4085, %v5746_v14   ;;  %2889 = vperm.xlu0 %4104, %v5750_v2  }
 0x847   :  { %4087 = vset.pattern.permute.xlu1 %v6477_v20  ;;  %4107 = vset.pattern.permute.xlu0 %v4657_v53 }
 0x848   :  { %2697 = vperm.xlu1 %4087, %v5746_v14   ;;  %2961 = vperm.xlu0 %4107, %v5750_v2  }
 0x84c   :  { %4088 = vset.pattern.permute.xlu1 %v4665_v25  ;;  %4110 = vset.pattern.permute.xlu0 %v4661_v16 }
 0x84d   :  { %2769 = vperm.xlu1 %4088, %v5746_v14   ;;  %3033 = vperm.xlu0 %4110, %v5750_v2  }
 0x851   :  { %4090 = vset.pattern.permute.xlu1 %v4666_v23  ;;  %4113 = vset.pattern.permute.xlu0 %v4663_v21 }
 0x852   :  { %2913 = vperm.xlu1 %4090, %v5746_v14   ;;  %3105 = vperm.xlu0 %4113, %v5750_v2  }
 0x856   :  { %4092 = vset.pattern.permute.xlu1 %v4667_v57  ;;  %4116 = vset.pattern.permute.xlu0 %v4664_v22 }
 0x857   :  { %3057 = vperm.xlu1 %4092, %v5746_v14   ;;  %3157 = vperm.xlu0 %4116, %v5750_v2  }
 0x85b   :  { %4094 = vset.pattern.permute.xlu1 %v6462_v58  ;;  %4119 = vset.pattern.permute.xlu0 %v4665_v25  ;;  %v4668_v58 = vmov 28  }
 0x85c   :  { %2653 = vperm.xlu1 %4094, %v5750_v2   ;;  %2765 = vperm.xlu0 %4119, %v5750_v2  }
 0x860   :  { %4096 = vset.pattern.permute.xlu1 %v4642_v31  ;;  %4121 = vset.pattern.permute.xlu0 %v4666_v23 }
 0x861   :  { %2705 = vperm.xlu1 %4096, %v5750_v2   ;;  %2909 = vperm.xlu0 %4121, %v5750_v2  }
 0x865   :  { %4097 = vset.pattern.permute.xlu1 %v4643_v60  ;;  %4123 = vset.pattern.permute.xlu0 %v4667_v57 }
 0x866   :  { %2725 = vperm.xlu1 %4097, %v5750_v2   ;;  %3053 = vperm.xlu0 %4123, %v5750_v2  }
 0x86a   :  { %4099 = vset.pattern.permute.xlu1 %v4644_v51  ;;  %4125 = vset.pattern.permute.xlu0 %v4668_v58  ;;  %v6478_v51 = vld [vmem:[#allocation66_spill] sm:$0xff] }
 0x86b   :  { %2777 = vperm.xlu1 %4099, %v5750_v2   ;;  %v5884_v47 = vrot.slane %v5723_v29, %v6478_v51 }
 0x86d   :  { %v5891_v62 = vadd.f32 %v5884_v47, %v5744_v12 }
 0x86f   :  { %4100 = vset.pattern.permute.xlu1 %v4647_v50 }
 0x870   :  { %2797 = vperm.xlu1 %4100, %v5750_v2  }
 0x874   :  { %4102 = vset.pattern.permute.xlu1 %v4646_v61 }
 0x875   :  { %2849 = vperm.xlu1 %4102, %v5750_v2  }
 0x877   :  { %v5850_v24 = vpop.permute.xlu1 %2657  ;;  %v5852_v28 = vpop.permute.xlu0 %2637 }
 0x879   :  { %4103 = vset.pattern.permute.xlu1 %v4651_v38 }
 0x87a   :  { %2869 = vperm.xlu1 %4103, %v5750_v2  }
 0x87c   :  { %v5860_v4 = vpop.permute.xlu1 %2677  ;;  %v2710_v8 = vpop.permute.xlu0 %2709 }
 0x87d   :  { %v2713_v27 = vmul.f32 %v2710_v8, %v5858_v32 }
 0x87e   :  { %4105 = vset.pattern.permute.xlu1 %v4648_v6 }
 0x87f   :  { %2921 = vperm.xlu1 %4105, %v5750_v2   ;;  %2718 = vrot.lane.b32.xlu0 %v2713_v27, %s4635_s7 }
 0x881   :  { %v2730_v33 = vpop.permute.xlu1 %2729  ;;  %v5866_v30 = vpop.permute.xlu0 %2781 }
 0x882   :  { %v2733_v63 = vmul.f32 %v2730_v33, %v5858_v32 }
 0x883   :  { %4106 = vset.pattern.permute.xlu1 %v4655_v48 }
 0x884   :  { %2941 = vperm.xlu1 %4106, %v5750_v2   ;;  %2738 = vrot.lane.b32.xlu0 %v2733_v63, %s4623_s29 }
 0x886   :  { %v2750_v1 = vpop.permute.xlu1 %2749  ;;  %v2854_v45 = vpop.permute.xlu0 %2853 }
 0x887   :  { %v2753_v31 = vmul.f32 %v2750_v1, %v5858_v32  ;;  %v2857_v39 = vmul.f32 %v2854_v45, %v2532_v46  ;;  %v6480_v1 = vld [vmem:[#allocation63_spill] sm:$0xff] }
 0x888   :  { %4108 = vset.pattern.permute.xlu1 %v4650_v13  ;;  %v2492_v45 = vrot.slane %v5723_v29, %v6480_v1 }
 0x889   :  { %2993 = vperm.xlu1 %4108, %v5750_v2   ;;  %2758 = vrot.lane.b32.xlu0 %v2753_v31, %s4636_s21 }
 0x88b   :  { %v5878_v10 = vpop.permute.xlu1 %2801  ;;  %v5880_v60 = vpop.permute.xlu0 %2925 }
 0x88d   :  { %4109 = vset.pattern.permute.xlu1 %v4659_v56  ;;  %2862 = vrot.lane.b32.xlu0 %v2857_v39, %s4635_s7 }
 0x88e   :  { %3013 = vperm.xlu1 %4109, %v5750_v2  }
 0x890   :  { %v5893_v49 = vpop.permute.xlu1 %2821  ;;  %v2998_v61 = vpop.permute.xlu0 %2997 }
 0x891   :  { %v5896_v50 = vmul.f32 %v2998_v61, %v5891_v62 }
 0x892   :  { %4111 = vset.pattern.permute.xlu1 %v4652_v40 }
 0x893   :  { %3065 = vperm.xlu1 %4111, %v5750_v2  }
 0x895   :  { %v2874_v6 = vpop.permute.xlu1 %2873  ;;  %v5900_v7 = vpop.permute.xlu0 %3069 }
 0x896   :  { %v2877_v13 = vmul.f32 %v2874_v6, %v2532_v46 }
 0x897   :  { %4112 = vset.pattern.permute.xlu1 %v4662_v15 }
 0x898   :  { %3085 = vperm.xlu1 %4112, %v5750_v2   ;;  %2882 = vrot.lane.b32.xlu0 %v2877_v13, %s4623_s29 }
 0x89a   :  { %v2894_v12 = vpop.permute.xlu1 %2893  ;;  %v5905_v38 = vpop.permute.xlu0 %3141 }
 0x89b   :  { %v2897_v43 = vmul.f32 %v2894_v12, %v2532_v46 }
 0x89c   :  { %4114 = vset.pattern.permute.xlu1 %v4654_v44  ;;  %v6479_v44 = vld [vmem:[#allocation69_spill] sm:$0xff] }
 0x89d   :  { %3137 = vperm.xlu1 %4114, %v5750_v2   ;;  %2902 = vrot.lane.b32.xlu0 %v2897_v43, %s4636_s21  ;;  %v2484_v15 = vrot.slane %v5723_v29, %v6479_v44 }
 0x89f   :  { %v2946_v40 = vpop.permute.xlu1 %2945  ;;  %v5910_v48 = vpop.permute.xlu0 %3181 }
 0x8a1   :  { %4115 = vset.pattern.permute.xlu1 %v6476_v19  ;;  %v5928_v19 = vadd.f32 %v2484_v15, %v5729_v9 }
 0x8a2   :  { %2622 = vperm.xlu1 %4115, %v5750_v2  }
 0x8a4   :  { %v2966_v53 = vpop.permute.xlu1 %2965  ;;  %v2842_v56 = vpop.permute.xlu0 %2841 }
 0x8a5   :  { %v5914_v16 = vmul.f32 %v2842_v56, %v2532_v46 }
 0x8a6   :  { %4117 = vset.pattern.permute.xlu1 %v4656_v52 }
 0x8a7   :  { %3177 = vperm.xlu1 %4117, %v5750_v2  }
 0x8a9   :  { %v5920_v21 = vpop.permute.xlu1 %3017  ;;  %v2986_v22 = vpop.permute.xlu0 %2985 }
 0x8aa   :  { %v5923_v25 = vmul.f32 %v2986_v22, %v5891_v62 }
 0x8ab   :  { %4118 = vset.pattern.permute.xlu1 %v6477_v20  ;;  %v5940_v20 = vadd.f32 %v2484_v15, %v5734_v42 }
 0x8ac   :  { %2693 = vperm.xlu1 %4118, %v5750_v2  }
 0x8ad   :  { %v2641_v9 = vmul.f32 %v5852_v28, %v5940_v20  ;;  %v5957_v28 = vadd.f32 %v2492_v45, %v5765_v18  ;;  %v2681_v31 = vmul.f32 %v5860_v4, %v5940_v20  ;;  %v6481_v4 = vld [vmem:[#allocation65_spill] sm:$0xff] }
 0x8ae   :  { %v5930_v23 = vpop.permute.xlu1 %3037  ;;  %v2634_v57 = vpop.permute.xlu0 %2633  ;;  %v2500_v6 = vrot.slane %v5723_v29, %v6481_v4 }
 0x8af   :  { %v2640_v8 = vmul.f32 %v2634_v57, %v5928_v19  ;;  %v2785_v51 = vmul.f32 %v5866_v30, %v5957_v28  ;;  %v2805_v18 = vmul.f32 %v5878_v10, %v5957_v28  ;;  %v2825_v30 = vmul.f32 %v5893_v49, %v5957_v28 }
 0x8b0   :  { %4120 = vset.pattern.permute.xlu1 %v4658_v55  ;;  %v5983_v43 = vadd.f32 %v2500_v6, %v5742_v3 }
 0x8b1   :  { %2837 = vperm.xlu1 %4120, %v5750_v2   ;;  %2644 = vrot.lane.b32.xlu0 %v2640_v8, %s4635_s7 }
 0x8b2   :  { %v2929_v10 = vmul.f32 %v5880_v60, %v5983_v43  ;;  %v2949_v15 = vmul.f32 %v2946_v40, %v5983_v43  ;;  %v2969_v3 = vmul.f32 %v2966_v53, %v5983_v43 }
 0x8b3   :  { %v5936_v27 = vpop.permute.xlu1 %3089  ;;  %v2674_v33 = vpop.permute.xlu0 %2673 }
 0x8b4   :  { %v2680_v40 = vmul.f32 %v2674_v33, %v5928_v19 }
 0x8b5   :  { %4122 = vset.pattern.permute.xlu1 %v4660_v34  ;;  %v2661_v34 = vmul.f32 %v5850_v24, %v5940_v20 }
 0x8b6   :  { %2981 = vperm.xlu1 %4122, %v5750_v2  }
 0x8b8   :  { %v5945_v63 = vpop.permute.xlu1 %3109  ;;  %v2746_v55 = vpop.permute.xlu0 %2745 }
 0x8b9   :  { %v2752_v33 = vmul.f32 %v2746_v55, %v5732_v0 }
 0x8ba   :  { %2646 = vrot.lane.b32.xlu1 %v2641_v9, %s4635_s7  ;;  %v2525_v9 = vadd.f32 %v2500_v6, %v5738_v54  ;;  %v3021_v54 = vmul.f32 %v5920_v21, %v5891_v62  ;;  %v6021_v6 = vadd.f32 %v2492_v45, %v5756_v59  ;;  %v3041_v59 = vmul.f32 %v5930_v23, %v5891_v62 }
 0x8bb   :  { %4124 = vset.pattern.permute.xlu1 %v4668_v58 }
 0x8bd   :  { %v5953_v42 = vpop.permute.xlu1 %2627  ;;  %v2818_v46 = vpop.permute.xlu0 %2817 }
 0x8be   :  { %2666 = vrot.lane.b32.xlu1 %v2661_v34, %s4623_s29  ;;  %v2824_v21 = vmul.f32 %v2818_v46, %v6021_v6  ;;  %v6482_v46 = vld [vmem:[#allocation67_spill] sm:$0xff] }
 0x8c2   :  { %v5961_v39 = vpop.permute.xlu1 %3161  ;;  %2686 = vrot.lane.b32.xlu1 %v2681_v31, %s4636_s21  ;;  %v2890_v58 = vpop.permute.xlu0 %2889 }
 0x8c6   :  { %2790 = vrot.lane.b32.xlu1 %v2785_v51, %s4635_s7 }
 0x8c7   :  { %v5967_v24 = vpop.permute.xlu1 %2697  ;;  %v5969_v61 = vpop.permute.xlu0 %2961 }
 0x8ca   :  { %2810 = vrot.lane.b32.xlu1 %v2805_v18, %s4623_s29 }
 0x8cc   :  { %v5976_v13 = vpop.permute.xlu1 %2769  ;;  %v5978_v12 = vpop.permute.xlu0 %3033 }
 0x8ce   :  { %2830 = vrot.lane.b32.xlu1 %v2825_v30, %s4636_s21 }
 0x8d1   :  { %v5988_v56 = vpop.permute.xlu1 %2913  ;;  %v5990_v44 = vpop.permute.xlu0 %3105 }
 0x8d2   :  { %2934 = vrot.lane.b32.xlu1 %v2929_v10, %s4635_s7 }
 0x8d6   :  { %v5994_v22 = vpop.permute.xlu1 %3057  ;;  %2954 = vrot.lane.b32.xlu1 %v2949_v15, %s4623_s29  ;;  %v5997_v49 = vpop.permute.xlu0 %3157 }
 0x8da   :  { %2974 = vrot.lane.b32.xlu1 %v2969_v3, %s4636_s21 }
 0x8db   :  { %v2654_v57 = vpop.permute.xlu1 %2653  ;;  %v6001_v60 = vpop.permute.xlu0 %2765 }
 0x8dc   :  { %v2660_v8 = vmul.f32 %v2654_v57, %v5928_v19  ;;  %v2508_v57 = vrot.slane %v5723_v29, %v6482_v46 }
 0x8de   :  { %2664 = vrot.lane.b32.xlu0 %v2660_v8, %s4623_s29 }
 0x8e0   :  { %v2706_v1 = vpop.permute.xlu1 %2705  ;;  %v2910_v34 = vpop.permute.xlu0 %2909 }
 0x8e1   :  { %v2712_v31 = vmul.f32 %v2706_v1, %v5732_v0  ;;  %v6008_v51 = vmul.f32 %v2910_v34, %v2525_v9 }
 0x8e2   :  { %2684 = vrot.lane.b32.xlu0 %v2680_v40, %s4636_s21  ;;  %v6043_v40 = vadd.f32 %v2508_v57, %v5788_v37 }
 0x8e3   :  { %2716 = vrot.lane.b32.xlu1 %v2712_v31, %s4635_s7  ;;  %v2968_v31 = vmul.f32 %v5969_v61, %v2525_v9 }
 0x8e4   :  { %v3073_v34 = vmul.f32 %v5900_v7, %v6043_v40  ;;  %v6060_v7 = vadd.f32 %v5884_v47, %v5740_v11  ;;  %v6483_v11 = vld [vmem:[#allocation68_spill] sm:$0xff] }
 0x8e5   :  { %v2726_v53 = vpop.permute.xlu1 %2725  ;;  %v2512_v47 = vrot.slane %v5723_v29, %v6483_v11  ;;  %v6100_v46 = vpop.permute.xlu0 %3053 }
 0x8e6   :  { %v2732_v18 = vmul.f32 %v2726_v53, %v5732_v0  ;;  %3006 = vrot.lane.b32.xlu0 %v5896_v50, %s4635_s7 }
 0x8e8   :  { %2736 = vrot.lane.b32.xlu1 %v2732_v18, %s4623_s29  ;;  %v3113_v18 = vmul.f32 %v5945_v63, %v6043_v40 }
 0x8ea   :  { %v2778_v4 = vpop.permute.xlu1 %2777  ;;  %3026 = vrot.lane.b32.xlu0 %v3021_v54, %s4623_s29 }
 0x8eb   :  { %v2784_v30 = vmul.f32 %v2778_v4, %v6021_v6  ;;  %v6081_v4 = vadd.f32 %v2512_v47, %v5786_v36 }
 0x8ec   :  { %2756 = vrot.lane.b32.xlu1 %v2752_v33, %s4636_s21  ;;  %v3040_v33 = vmul.f32 %v5978_v12, %v6060_v7 }
 0x8ef   :  { %v2798_v10 = vpop.permute.xlu1 %2797 }
 0x8f0   :  { %v2804_v50 = vmul.f32 %v2798_v10, %v6021_v6  ;;  %2788 = vrot.lane.b32.xlu1 %v2784_v30, %s4635_s7  ;;  %v6084_v30 = vadd.f32 %v2512_v47, %v5794_v41  ;;  %v3164_v41 = vmul.f32 %v5997_v49, %v6081_v4 }
 0x8f2   :  { %2808 = vrot.lane.b32.xlu0 %v2804_v50, %s4623_s29  ;;  %v2537_v50 = vld [vmem:[#allocation27] sm:$0xff]  ;;  %v3185_v49 = vmul.f32 %v5910_v48, %v6084_v30 }
 0x8f4   :  { %v2850_v55 = vpop.permute.xlu1 %2849  ;;  %3125 = vperm.xlu1 %4124, %v5750_v2   ;;  %v2896_v2 = vmul.f32 %v2890_v58, %v5763_v5  ;;  %v3093_v58 = vmul.f32 %v5936_v27, %v6043_v40  ;;  %v6067_v27 = vadd.f32 %v2508_v57, %v5784_v35 }
 0x8f5   :  { %v2856_v15 = vmul.f32 %v2850_v55, %v5763_v5  ;;  %v2539_v55 = vld [vmem:[#allocation27 + $0x10] sm:$0xff] }
 0x8f6   :  { %2828 = vrot.lane.b32.xlu0 %v2824_v21, %s4636_s21  ;;  %v3145_v21 = vmul.f32 %v5905_v38, %v6084_v30 }
 0x8f8   :  { %2860 = vrot.lane.b32.xlu1 %v2856_v15, %s4635_s7  ;;  %v2540_v15 = vld [vmem:[#allocation27 + $0x18] sm:$0xff] }
 0x8f9   :  { %v2870_v45 = vpop.permute.xlu1 %2869 }
 0x8fa   :  { %v2876_v3 = vmul.f32 %v2870_v45, %v5763_v5  ;;  %3046 = vrot.lane.b32.xlu0 %v3041_v59, %s4636_s21  ;;  %v3165_v59 = vmul.f32 %v5961_v39, %v6084_v30  ;;  %v6484_v39 = vmax.f32 %v6467_v26, 0.0 }
 0x8fc   :  { %2880 = vrot.lane.b32.xlu1 %v2876_v3, %s4623_s29  ;;  %v3871_v3 = vpack.c.bf16 %v2540_v15, %v2539_v55 }
 0x8fe   :  { %v2922_v8 = vpop.permute.xlu1 %2921 }
 0x8ff   :  { %v2928_v1 = vmul.f32 %v2922_v8, %v2525_v9  ;;  %v6485_v8 = vld [vmem:[#allocation76_spill] sm:$0xff] }
 0x900   :  { %2900 = vrot.lane.b32.xlu1 %v2896_v2, %s4636_s21  ;;  %v2719_v2 = vpop.permute.xlu0 %2718 }
 0x903   :  { %v2942_v62 = vpop.permute.xlu1 %2941 }
 0x904   :  { %v2948_v23 = vmul.f32 %v2942_v62, %v2525_v9  ;;  %2932 = vrot.lane.b32.xlu1 %v2928_v1, %s4635_s7  ;;  %v2739_v62 = vpop.permute.xlu0 %2738 }
 0x906   :  { %2952 = vrot.lane.b32.xlu0 %v2948_v23, %s4623_s29 }
 0x908   :  { %v2994_v53 = vpop.permute.xlu1 %2993  ;;  %3078 = vrot.lane.b32.xlu1 %v3073_v34, %s4635_s7  ;;  %v2759_v34 = vpop.permute.xlu0 %2758 }
 0x909   :  { %v3000_v61 = vmul.f32 %v2994_v53, %v6060_v7 }
 0x90a   :  { %2972 = vrot.lane.b32.xlu0 %v2968_v31, %s4636_s21  ;;  %v2631_v31 = vmul.f32 %v5953_v42, %v5940_v20 }
 0x90c   :  { %3098 = vrot.lane.b32.xlu1 %v3093_v58, %s4623_s29  ;;  %v2863_v58 = vpop.permute.xlu0 %2862 }
 0x90d   :  { %v3014_v37 = vpop.permute.xlu1 %3013 }
 0x90e   :  { %3129 = vperm.xlu0 %4125, %v5746_v14   ;;  %v3020_v63 = vmul.f32 %v3014_v37, %v6060_v7 }
 0x910   :  { %3118 = vrot.lane.b32.xlu1 %v3113_v18, %s4636_s21 }
 0x912   :  { %v3066_v9 = vpop.permute.xlu1 %3065  ;;  %4126 = vset.pattern.permute.xlu0 %v4656_v52  ;;  %v3112_v52 = vmul.f32 %v5990_v44, %v6067_v27  ;;  %v2538_v44 = vld [vmem:[#allocation27 + $0x8] sm:$0xff] }
 0x913   :  { %v3072_v10 = vmul.f32 %v3066_v9, %v6067_v27  ;;  %v3867_v36 = vpack.c.bf16 %v2538_v44, %v2537_v50  ;;  %v2883_v9 = vpop.permute.xlu0 %2882 }
 0x914   :  { %3004 = vrot.lane.b32.xlu1 %v3000_v61, %s4635_s7  ;;  %v2701_v61 = vmul.f32 %v5967_v24, %v5858_v32 }
 0x915   :  { %3868 = vmatprep.subr.bf16.mxu1 %v3867_v36 }
 0x916   :  { %3870 = vmatpush3.bf16.msra.mxu1 %v3867_v36 }
 0x917   :  { %v3086_v54 = vpop.permute.xlu1 %3085  ;;  %3872 = vmatprep.subr.bf16.mxu1 %v3871_v3  ;;  %v2903_v47 = vpop.permute.xlu0 %2902 }
 0x918   :  { %v3092_v14 = vmul.f32 %v3086_v54, %v6067_v27  ;;  %3024 = vrot.lane.b32.xlu1 %v3020_v63, %s4623_s29 }
 0x91a   :  { %3096 = vrot.lane.b32.xlu0 %v3092_v14, %s4623_s29  ;;  %3874 = vmatpush3.bf16.msra.mxu1 %v3871_v3 }
 0x91c   :  { %v3138_v35 = vpop.permute.xlu1 %3137  ;;  %3044 = vrot.lane.b32.xlu1 %v3040_v33, %s4636_s21 }
 0x91d   :  { %v3144_v29 = vmul.f32 %v3138_v35, %v6081_v4  ;;  %3813 = vmatmul.mubr.msk.f32.vlgmr.msra.gmra.mrb[14].mxu1 %vm546_vm4, %v6484_v39  ;;  %v2773_v35 = vmul.f32 %v5976_v13, %v5957_v28 }
 0x91e   :  { %3116 = vrot.lane.b32.xlu0 %v3112_v52, %s4636_s21  ;;  %3819 = vmatprep.mubr.msk.f32.mxu1 %vm850_vm7, %v6485_v8 }
 0x920   :  { %3076 = vrot.lane.b32.xlu1 %v3072_v10, %s4635_s7 }
 0x921   :  { %v2623_v12 = vpop.permute.xlu1 %2622 }
 0x922   :  { %3148 = vrot.lane.b32.xlu0 %v3144_v29, %s4635_s7  ;;  %v2630_v29 = vmul.f32 %v2623_v12, %v5928_v19  ;;  %v2917_v19 = vmul.f32 %v5988_v56, %v5983_v43 }
 0x923   :  { %v2645_v42 = vpop.permute.xlu0 %2644 }
 0x924   :  { %3150 = vrot.lane.b32.xlu1 %v3145_v21, %s4635_s7  ;;  %v2650_v24 = vadd.f32 %v2645_v42, %v2630_v29 }
 0x926   :  { %v3178_v45 = vpop.permute.xlu1 %3177  ;;  %3168 = vrot.lane.b32.xlu0 %v3164_v41, %s4623_s29 }
 0x927   :  { %v3184_v38 = vmul.f32 %v3178_v45, %v6081_v4 }
 0x928   :  { %3170 = vrot.lane.b32.xlu1 %v3165_v59, %s4623_s29 }
 0x92a   :  { %3188 = vrot.lane.b32.xlu0 %v3184_v38, %s4636_s21 }
 0x92b   :  { %v2694_v57 = vpop.permute.xlu1 %2693 }
 0x92c   :  { %3190 = vrot.lane.b32.xlu1 %v3185_v49, %s4636_s21  ;;  %v2700_v45 = vmul.f32 %v2694_v57, %v5732_v0 }
 0x930   :  { %v6112_v1 = vpop.permute.xlu1 %2837 }
 0x935   :  { %v6114_v23 = vpop.permute.xlu1 %2981 }
 0x939   :  { %v2647_v48 = vpop.permute.xlu1 %2646 }
 0x93a   :  { %v2651_v37 = vadd.f32 %v2647_v48, %v2631_v31 }
 0x93d   :  { %v2667_v53 = vpop.permute.xlu1 %2666 }
 0x93e   :  { %v2671_v18 = vadd.f32 %v2667_v53, %v2651_v37 }
 0x941   :  { %v2687_v26 = vpop.permute.xlu1 %2686 }
 0x942   :  { %v2691_v63 = vadd.f32 %v2687_v26, %v2671_v18  ;;  %v2772_v26 = vmul.f32 %v6001_v60, %v6021_v6 }
 0x944   :  { %v2703_v54 = vadd.f32 %v2701_v61, %v2691_v63 }
 0x945   :  { %v2791_v14 = vpop.permute.xlu1 %2790 }
 0x946   :  { %v2723_v11 = vadd.f32 %v2719_v2, %v2703_v54 }
 0x948   :  { %v2743_v33 = vadd.f32 %v2739_v62, %v2723_v11 }
 0x949   :  { %v2811_v52 = vpop.permute.xlu1 %2810 }
 0x94a   :  { %v2763_v20 = vadd.f32 %v2759_v34, %v2743_v33  ;;  %v3061_v33 = vmul.f32 %v5994_v22, %v6043_v40 }
 0x94c   :  { %v2775_v10 = vadd.f32 %v2773_v35, %v2763_v20 }
 0x94d   :  { %v2831_v50 = vpop.permute.xlu1 %2830 }
 0x94e   :  { %v2795_v44 = vadd.f32 %v2791_v14, %v2775_v10 }
 0x950   :  { %v2815_v21 = vadd.f32 %v2811_v52, %v2795_v44  ;;  %v2665_v32 = vpop.permute.xlu0 %2664 }
 0x951   :  { %v2935_v36 = vpop.permute.xlu1 %2934  ;;  %v2670_v55 = vadd.f32 %v2665_v32, %v2650_v24 }
 0x952   :  { %v2835_v41 = vadd.f32 %v2831_v50, %v2815_v21 }
 0x954   :  { %v2847_v15 = vadd.f32 %v5914_v16, %v2835_v41  ;;  %v2685_v59 = vpop.permute.xlu0 %2684 }
 0x955   :  { %v2690_v3 = vadd.f32 %v2685_v59, %v2670_v55  ;;  %v2955_v28 = vpop.permute.xlu1 %2954 }
 0x956   :  { %v2867_v13 = vadd.f32 %v2863_v58, %v2847_v15 }
 0x957   :  { %v2702_v38 = vadd.f32 %v2700_v45, %v2690_v3 }
 0x958   :  { %v2887_v49 = vadd.f32 %v2883_v9, %v2867_v13  ;;  %v3007_v39 = vpop.permute.xlu0 %3006 }
 0x959   :  { %v2975_v2 = vpop.permute.xlu1 %2974 }
 0x95a   :  { %v2907_v12 = vadd.f32 %v2903_v47, %v2887_v49 }
 0x95c   :  { %v2919_v8 = vadd.f32 %v2917_v19, %v2907_v12  ;;  %v3027_v31 = vpop.permute.xlu0 %3026  ;;  %v3060_v12 = vmul.f32 %v6100_v46, %v6067_v27 }
 0x95d   :  { %v2717_v62 = vpop.permute.xlu1 %2716 }
 0x95e   :  { %v2939_v34 = vadd.f32 %v2935_v36, %v2919_v8  ;;  %v2722_v37 = vadd.f32 %v2717_v62, %v2702_v38 }
 0x960   :  { %v2959_v48 = vadd.f32 %v2955_v28, %v2939_v34 }
 0x961   :  { %v2737_v16 = vpop.permute.xlu1 %2736 }
 0x962   :  { %v2979_v53 = vadd.f32 %v2975_v2, %v2959_v48  ;;  %v2742_v57 = vadd.f32 %v2737_v16, %v2722_v37 }
 0x964   :  { %v2991_v0 = vadd.f32 %v5923_v25, %v2979_v53  ;;  %v2809_v58 = vpop.permute.xlu0 %2808  ;;  %v2844_v25 = vmul.f32 %v6112_v1, %v5763_v5  ;;  %v2988_v5 = vmul.f32 %v6114_v23, %v6060_v7 }
 0x965   :  { %v2757_v18 = vpop.permute.xlu1 %2756 }
 0x966   :  { %v2762_v61 = vadd.f32 %v2757_v18, %v2742_v57  ;;  %v3011_v43 = vadd.f32 %v3007_v39, %v2991_v0 }
 0x968   :  { %v2829_v56 = vpop.permute.xlu0 %2828  ;;  %v2774_v9 = vadd.f32 %v2772_v26, %v2762_v61  ;;  %v3031_v14 = vadd.f32 %v3027_v31, %v3011_v43 }
 0x969   :  { %v2789_v63 = vpop.permute.xlu1 %2788 }
 0x96a   :  { %v2794_v54 = vadd.f32 %v2789_v63, %v2774_v9 }
 0x96c   :  { %v2814_v11 = vadd.f32 %v2809_v58, %v2794_v54  ;;  %v3047_v47 = vpop.permute.xlu0 %3046 }
 0x96d   :  { %v3051_v52 = vadd.f32 %v3047_v47, %v3031_v14  ;;  %v6486_v47 = vld [vmem:[#allocation77_spill] sm:$0xff] }
 0x96e   :  { %v2834_v35 = vadd.f32 %v2829_v56, %v2814_v11 }
 0x96f   :  { %v3063_v20 = vadd.f32 %v3061_v33, %v3051_v52  ;;  %v3729_v33 = vld [vmem:[#allocation28] ss:$0 sm:$0xff] }
 0x970   :  { %v2846_v42 = vadd.f32 %v2844_v25, %v2834_v35 }
 0x973   :  { %v3126_v60 = vpop.permute.xlu1 %3125 }
 0x974   :  { %v3132_v37 = vmul.f32 %v3126_v60, %v6081_v4  ;;  %v4669_v4 = vmov 0.0|0.0  }
 0x975   :  { %3889 = vmatprep.subr.bf16.mxu0 %v4669_v4 }
 0x977   :  { %v2861_v6 = vpop.permute.xlu1 %2860 }
 0x978   :  { %v2866_v29 = vadd.f32 %v2861_v6, %v2846_v42  ;;  %v2953_v32 = vpop.permute.xlu0 %2952 }
 0x97b   :  { %v2881_v10 = vpop.permute.xlu1 %2880 }
 0x97c   :  { %v2886_v50 = vadd.f32 %v2881_v10, %v2866_v29  ;;  %v2973_v40 = vpop.permute.xlu0 %2972 }
 0x97f   :  { %v2901_v44 = vpop.permute.xlu1 %2900 }
 0x980   :  { %v2906_v21 = vadd.f32 %v2901_v44, %v2886_v50 }
 0x982   :  { %v2918_v24 = vadd.f32 %v6008_v51, %v2906_v21 }
 0x983   :  { %v2933_v36 = vpop.permute.xlu1 %2932 }
 0x984   :  { %v2938_v41 = vadd.f32 %v2933_v36, %v2918_v24 }
 0x986   :  { %v2958_v22 = vadd.f32 %v2953_v32, %v2938_v41 }
 0x987   :  { %v3079_v55 = vpop.permute.xlu1 %3078 }
 0x988   :  { %v2978_v1 = vadd.f32 %v2973_v40, %v2958_v22  ;;  %v3083_v8 = vadd.f32 %v3079_v55, %v3063_v20 }
 0x98a   :  { %v2990_v15 = vadd.f32 %v2988_v5, %v2978_v1 }
 0x98b   :  { %v3099_v59 = vpop.permute.xlu1 %3098 }
 0x98c   :  { %v3103_v23 = vadd.f32 %v3099_v59, %v3083_v8 }
 0x98d   :  { %v3130_v45 = vpop.permute.xlu0 %3129 }
 0x98e   :  { %v3133_v0 = vmul.f32 %v3130_v45, %v6084_v30  ;;  %v4671_v30 = vmov 0.0  }
 0x98f   :  { %v3119_v3 = vpop.permute.xlu1 %3118  ;;  %3848 = vmatprep.mubr.msk.f32.mxu0 %vm4670_vm9, %v4671_v30 }
 0x990   :  { %v3123_v31 = vadd.f32 %v3119_v3, %v3103_v23 }
 0x991   :  { %v3097_v28 = vpop.permute.xlu0 %3096 }
 0x992   :  { %v3135_v26 = vadd.f32 %v3133_v0, %v3123_v31  ;;  %v3483_v31 = vld [vmem:[#allocation33] sm:$0xff]  ;;  %v3485_v0 = vld [vmem:[#allocation33 + $0x10] sm:$0xff] }
 0x993   :  { %v3005_v13 = vpop.permute.xlu1 %3004 }
 0x994   :  { %v3010_v49 = vadd.f32 %v3005_v13, %v2990_v15 }
 0x995   :  { %v3117_v2 = vpop.permute.xlu0 %3116 }
 0x997   :  { %v3025_v38 = vpop.permute.xlu1 %3024 }
 0x998   :  { %v3030_v19 = vadd.f32 %v3025_v38, %v3010_v49 }
 0x999   :  { %v3149_v34 = vpop.permute.xlu0 %3148 }
 0x99b   :  { %v3045_v51 = vpop.permute.xlu1 %3044 }
 0x99c   :  { %v3050_v39 = vadd.f32 %v3045_v51, %v3030_v19  ;;  %v3730_v19 = vld [vmem:[#allocation30] ss:$0 sm:$0xff] }
 0x99d   :  { %v3169_v58 = vpop.permute.xlu0 %3168 }
 0x99e   :  { %v3062_v62 = vadd.f32 %v3060_v12, %v3050_v39  ;;  %v3731_v39 = vld [vmem:[#allocation31] ss:$0 sm:$0xff] }
 0x99f   :  { %v3077_v7 = vpop.permute.xlu1 %3076 }
 0x9a0   :  { %v3082_v48 = vadd.f32 %v3077_v7, %v3062_v62 }
 0x9a1   :  { %v3189_v9 = vpop.permute.xlu0 %3188 }
 0x9a2   :  { %v3102_v16 = vadd.f32 %v3097_v28, %v3082_v48 }
 0x9a3   :  { %v3151_v53 = vpop.permute.xlu1 %3150 }
 0x9a4   :  { %v3122_v57 = vadd.f32 %v3117_v2, %v3102_v16  ;;  %v3155_v46 = vadd.f32 %v3151_v53, %v3135_v26  ;;  %v3484_v16 = vld [vmem:[#allocation33 + $0x8] sm:$0xff]  ;;  %v3569_v26 = vld [vmem:[%s6199_s23 + $0x8] sm:$0xff] }
 0x9a6   :  { %v3134_v18 = vadd.f32 %v3132_v37, %v3122_v57  ;;  %v3884_v37 = vpack.c.bf16 %v3484_v16, %v3483_v31  ;;  %v3486_v57 = vld [vmem:[#allocation33 + $0x18] sm:$0xff] }
 0x9a7   :  { %v3171_v61 = vpop.permute.xlu1 %3170 }
 0x9a8   :  { %v3154_v27 = vadd.f32 %v3149_v34, %v3134_v18  ;;  %v3175_v56 = vadd.f32 %v3171_v61, %v3155_v46  ;;  %v3887_v18 = vpack.c.bf16 %v3486_v57, %v3485_v0  ;;  %v3890_v61 = vpack.c.bf16 %v3569_v26, %v3568_v17 }
 0x9aa   :  { %v3174_v43 = vadd.f32 %v3169_v58, %v3154_v27  ;;  %v6487_v58 = vld [vmem:[#allocation59_spill] sm:$0xff]  ;;  %3891 = vmatpush3.bf16.msra.mxu0 %v3890_v61 }
 0x9ab   :  { %v3191_v63 = vpop.permute.xlu1 %3190  ;;  %3892 = vmatprep.subr.bf16.mxu0 %v4669_v4 }
 0x9ac   :  { %v3194_v54 = vadd.f32 %v3189_v9, %v3174_v43  ;;  %v3195_v14 = vadd.f32 %v3191_v63, %v3175_v56  ;;  %v3570_v43 = vld [vmem:[%s6199_s23 + $0x10] sm:$0xff]  ;;  %v3571_v56 = vld [vmem:[%s6199_s23 + $0x18] sm:$0xff] }
 0x9ad   :  { %v3893_v9 = vpack.c.bf16 %v3571_v56, %v3570_v43  ;;  %v3734_v63 = vld [vmem:[#allocation34] ss:$0 sm:$0xff] }
 0x9ae   :  { %v3875_v11 = vpack.c.bf16 %v3195_v14, %v3194_v54 }
 0x9af   :  { %3894 = vmatpush3.bf16.msra.mxu0 %v3893_v9 }
 0x9b0   :  { %3876 = vmatprep.subr.bf16.mxu1 %v3875_v11 }
 0x9b1   :  { %3878 = vmatpush3.bf16.msra.mxu1 %v3875_v11 }
 0x9b2   :  { %3879 = vmatprep.subr.bf16.mxu1 %v4669_v4 }
 0x9b4   :  { %3820 = vmatmul.mubr.msk.f32.vlgmr.msra.gmra.mrb[14].mxu1 %vm850_vm7, %v6486_v47 }
 0x9b5   :  { %3826 = vmatprep.mubr.msk.f32.mxu1 %vm4670_vm9, %v4671_v30 }
 0xa87   :  { %v3821_v52 = vpop.f32.mrb[14].mxu1 }
 0xa88   :  { %v3358_v25 = vadd.f32 %v3821_v52, %v3729_v33  ;;  %v3342_v35 = vpop.f32.mrb[15].mxu1 }
 0xa89   :  { %v3357_v20 = vadd.f32 %v3729_v33, %v3342_v35 }
 0xa8a   :  { %v3362_v42 = vsel %vm943_vm8, %v3358_v25, 0.0 }
 0xa8b   :  { %v3361_v60 = vsel %vm546_vm4, %v3357_v20, 0.0 }
 0xa8c   :  { %v3363_v6 = vadd.f32 %v3362_v42, %v3361_v60 }
 0xa8e   :  { %v3364_v10 = vrot.slane %v3363_v6, 4 }
 0xa90   :  { %v3365_v29 = vadd.f32 %v3364_v10, %v3363_v6 }
 0xa92   :  { %v3366_v50 = vrot.slane %v3365_v29, 2 }
 0xa94   :  { %v3367_v44 = vadd.f32 %v3366_v50, %v3365_v29 }
 0xa96   :  { %v3368_v21 = vrot.slane %v3367_v44, 1 }
 0xa98   :  { %v3369_v32 = vadd.f32 %v3368_v21, %v3367_v44 }
 0xa9a   :  { %v3370_v24 = vmul.f32 0.083333336, %v3369_v32 }
 0xa9c   :  { %v3371_v36 = vsub.f32 %v3357_v20, %v3370_v24  ;;  %v3372_v41 = vsub.f32 %v3358_v25, %v3370_v24 }
 0xa9e   :  { %v3373_v22 = vmul.f32 %v3371_v36, %v3371_v36  ;;  %v3374_v40 = vmul.f32 %v3372_v41, %v3372_v41 }
 0xaa0   :  { %v3375_v55 = vsel %vm546_vm4, %v3373_v22, 0.0  ;;  %v3376_v5 = vsel %vm943_vm8, %v3374_v40, 0.0 }
 0xaa1   :  { %v3377_v1 = vadd.f32 %v3376_v5, %v3375_v55 }
 0xaa3   :  { %v3378_v15 = vrot.slane %v3377_v1, 4 }
 0xaa5   :  { %v3379_v59 = vadd.f32 %v3378_v15, %v3377_v1 }
 0xaa7   :  { %v3380_v45 = vrot.slane %v3379_v59, 2 }
 0xaa9   :  { %v3381_v3 = vadd.f32 %v3380_v45, %v3379_v59 }
 0xaab   :  { %v3382_v28 = vrot.slane %v3381_v3, 1 }
 0xaad   :  { %v3383_v13 = vadd.f32 %v3382_v28, %v3381_v3 }
 0xaaf   :  { %v3384_v38 = vmul.f32 0.083333336, %v3383_v13 }
 0xab1   :  { %v3385_v49 = vadd.f32 1e-05, %v3384_v38 }
 0xab3   :  { %4127 = vrsqrt.f32 %v3385_v49 }
 0xabd   :  { %v4128_v2 = vpop.eup %4127 }
 0xabe   :  { %v3387_v51 = vmul.f32 %v4128_v2, %v3371_v36  ;;  %v3388_v12 = vmul.f32 %v4128_v2, %v3372_v41 }
 0xac0   :  { %v3395_v8 = vmul.f32 %v3730_v19, %v3387_v51  ;;  %v3396_v62 = vmul.f32 %v3730_v19, %v3388_v12 }
 0xac2   :  { %v3403_v34 = vadd.f32 %v3731_v39, %v3395_v8  ;;  %v3404_v7 = vadd.f32 %v3731_v39, %v3396_v62 }
 0xac4   :  { %v3405_v23 = vmax.f32 %v3403_v34, 0.0  ;;  %v3406_v48 = vmax.f32 %v3404_v7, 0.0 }
 0xac6   :  { %v3880_v53 = vpack.c.bf16 %v3406_v48, %v3405_v23 }
 0xac8   :  { %3882 = vmatpush3.bf16.msk.msra.mxu1 %vm5104_vm3, %v3880_v53 }
 0xac9   :  { %3883 = vmatprep.subr.bf16.mxu1 %v4669_v4 }
 0xacb   :  { %3827 = vmatmul.mubr.msk.f32.vlgmr.msra.gmra.mrb[16].mxu1 %vm595_vm1, %v6487_v58 }
 0xacc   :  { %3885 = vmatpush3.bf16.msra.mxu1 %v3884_v37  ;;  %3837 = vmatprep.mubr.msk.f32.mxu1 %vm4670_vm9, %v4671_v30 }
 0xacd   :  { %3886 = vmatprep.subr.bf16.mxu1 %v4669_v4  ;;  %v3736_v4 = vld [vmem:[#allocation4] ss:$0 sm:$0xff] }
 0xad0   :  { %3888 = vmatpush3.bf16.msra.mxu1 %v3887_v18 }
 0xb9e   :  { %v3479_v27 = vpop.f32.mrb[16].mxu1 }
 0xb9f   :  { %v3828_v46 = vpop.f32.mrb[17].mxu1  ;;  %3838 = vmatmul.mubr.msk.f32.vlgmr.msra.gmra.mrb[18].mxu1 %vm546_vm4, %v3479_v27 }
 0xc72   :  { %v3563_v54 = vpop.f32.mrb[18].mxu1 }
 0xc73   :  { %v3564_v14 = vadd.f32 %v3734_v63, %v3563_v54  ;;  %v3839_v11 = vpop.f32.mrb[19].mxu1 }
 0xc75   :  { %v3567_v47 = vmax.f32 %v3564_v14, 0.0 }
 0xc77   :  { %3849 = vmatmul.mubr.msk.f32.vlgmr.msra.gmra.mrb[12].mxu0 %vm546_vm4, %v3567_v47 }
 0xd4a   :  { %v3648_v30 = vpop.f32.mrb[12].mxu0 }
 0xd4b   :  { %v3649_v33 = vadd.f32 %v3736_v4, %v3648_v30  ;;  %v3850_v52 = vpop.f32.mrb[13].mxu0 }
 0xd4d   :  { %3653 = vst.msk [vmem:[%s6488_s28] sm:$0x3] %vm3652_vm10, %v3649_v33 }
 0xd4e   :  { %3658 = vsyncpa [#allocation6], 1 }
 0xd4f   :  { %3659 = vsyncpa [#allocation8], 1 }
 0xd50   :  { %3660 = vsyncpa [#allocation11], 1 }
 0xd51   :  { %3661 = vsyncpa [#allocation14], 1 }
 0xd52   :  { %3662 = vsyncpa [#allocation17], 1 }
 0xd53   :  { %3663 = vsyncpa [#allocation20], 1 }
 0xd54   :  { %3664 = vsyncpa [#allocation23], 1 }
 0xd55   :  { %3665 = vsyncpa [#allocation26], 1 }
 0xd56   :  { %3666 = vsyncpa [#allocation29], 1 }
 0xd57   :  { %3667 = vsyncpa [#allocation32], 1 }
 0xd58   :  { %3668 = vsyncpa [#allocation35], 1 }
 0xd59   :  { %3669 = vsyncmov [#allocation3] }
 0xd5c   :  { %s3670_s23 = vpop.sfrf %3669 }
 0xd5d   :  { %p3738_p6 = scmp.ne.s32.totalorder %s3670_s23, 0 }
 0xd5f   :  { %3674 = shalt.err (%p3738_p6)  }
 0xd60   :  { %3676 = vsyncmov [#allocation3 + $0x1] }
 0xd63   :  { %s3677_s9 = vpop.sfrf %3676 }
 0xd64   :  { %p3739_p7 = scmp.ne.s32.totalorder %s3677_s9, 0 }
 0xd66   :  { %3681 = shalt.err (%p3739_p7)  }

</bundles_post_ra>
